<compile_context>
chip_gen: v6e
topology: v6e:2x2x1
jax: 0.10.0
libtpu: 0.0.40
codegen_flags: <defaults>
</compile_context>

<pallas_src>
import jax
import jax.numpy as jnp
from jax.experimental import pallas as pl
from jax.experimental.pallas import tpu as pltpu

EPS = 1e-5      # BatchNorm2d default eps
ALPHA = 0.05    # leaky_relu negative slope used in Generator.forward


# ---------------------------------------------------------------------------
# Pallas kernels
# ---------------------------------------------------------------------------
def _mm_bn_stats_kernel(a_ref, b_ref, y_ref, s_ref, acc_ref):
    """Tiled matmul (bf16 x bf16 -> f32 acc) + per-column sum / sum-of-squares.

    grid = (Cp//tn, Mp//tm, Kp//tk)  ->  program_ids (j, i, k); k is reduction.
    y block   : (tm, tn) at (i, j)   — resident across k.
    stats blk : (8,  tn) at (0, j)   — resident across i and k (accumulator);
                row 0 = column sum, row 1 = column sum of squares.
    """
    i = pl.program_id(1)
    k = pl.program_id(2)
    nk = pl.num_programs(2)

    @pl.when(k == 0)
    def _():
        acc_ref[...] = jnp.zeros_like(acc_ref)

    @pl.when((i == 0) & (k == 0))
    def _():
        s_ref[...] = jnp.zeros_like(s_ref)

    acc_ref[...] += jnp.dot(a_ref[...], b_ref[...],
                            preferred_element_type=jnp.float32)

    @pl.when(k == nk - 1)
    def _():
        y = acc_ref[...]
        y_ref[...] = y
        colsum = jnp.sum(y, axis=0, keepdims=True)        # (1, tn)
        colsq = jnp.sum(y * y, axis=0, keepdims=True)     # (1, tn)
        rows = jax.lax.broadcasted_iota(jnp.int32, s_ref.shape, 0)
        s_ref[...] += jnp.where(rows == 0, colsum,
                                jnp.where(rows == 1, colsq, 0.0))


def _mm_tanh_kernel(a_ref, b_ref, y_ref, acc_ref):
    """Tiled matmul with tanh fused into the K-axis finalize (final layer)."""
    k = pl.program_id(2)

    @pl.when(k == 0)
    def _():
        acc_ref[...] = jnp.zeros_like(acc_ref)

    acc_ref[...] += jnp.dot(a_ref[...], b_ref[...],
                            preferred_element_type=jnp.float32)

    @pl.when(k == pl.num_programs(2) - 1)
    def _():
        y_ref[...] = jnp.tanh(acc_ref[...])


def _affine_lrelu_kernel(y_ref, s_ref, t_ref, o_ref):
    """Folded BatchNorm (y*scale + shift) + LeakyReLU(0.05); f32 math, bf16 out."""
    z = y_ref[...] * s_ref[...] + t_ref[...]
    o_ref[...] = jnp.where(z >= 0.0, z, ALPHA * z).astype(o_ref.dtype)


# ---------------------------------------------------------------------------
# Tiling helpers + pallas_call wrappers
# ---------------------------------------------------------------------------
def _round_up(x, m):
    return (x + m - 1) // m * m


def _pad_dims(M, K, C):
    """Padded dims + tile sizes. Lane dims padded to 128, sublane to 8."""
    Mp = _round_up(M, 8) if M <= 512 else _round_up(M, 128)
    Kp = _round_up(K, 128)
    Cp = _round_up(C, 128)
    tm = Mp if Mp <= 512 else next(t for t in (512, 256, 128) if Mp % t == 0)
    tk = Kp if Kp <= 512 else next(t for t in (512, 256, 128) if Kp % t == 0)
    tn = Cp if Cp <= 512 else next(t for t in (512, 256, 128) if Cp % t == 0)
    return Mp, Kp, Cp, tm, tk, tn


def _fused_conv_bn_lrelu(patches, wmat, gamma, beta):
    """(M,K)@(K,C) + BatchNorm(batch stats) + LeakyReLU(0.05) -> (M,C) bf16."""
    M, K = patches.shape
    C = wmat.shape[1]
    Mp, Kp, Cp, tm, tk, tn = _pad_dims(M, K, C)

    a = jnp.pad(patches.astype(jnp.bfloat16), ((0, Mp - M), (0, Kp - K)))
    b = jnp.pad(wmat.astype(jnp.bfloat16), ((0, Kp - K), (0, Cp - C)))

    y, stats = pl.pallas_call(
        _mm_bn_stats_kernel,
        out_shape=(jax.ShapeDtypeStruct((Mp, Cp), jnp.float32),
                   jax.ShapeDtypeStruct((8, Cp), jnp.float32)),
        grid_spec=pltpu.PrefetchScalarGridSpec(
            num_scalar_prefetch=0,
            grid=(Cp // tn, Mp // tm, Kp // tk),
            in_specs=[pl.BlockSpec((tm, tk), lambda j, i, k: (i, k)),
                      pl.BlockSpec((tk, tn), lambda j, i, k: (k, j))],
            out_specs=(pl.BlockSpec((tm, tn), lambda j, i, k: (i, j)),
                       pl.BlockSpec((8, tn), lambda j, i, k: (0, j))),
            scratch_shapes=[pltpu.VMEM((tm, tn), jnp.float32)]),
        compiler_params=pltpu.CompilerParams(
            dimension_semantics=("parallel", "arbitrary", "arbitrary")),
        cost_estimate=pl.CostEstimate(
            flops=2 * Mp * Kp * Cp, transcendentals=0,
            bytes_accessed=2 * (Mp * Kp + Kp * Cp) + 4 * (Mp * Cp + 8 * Cp)),
    )(a, b)

    # Fold BN (biased batch stats over the true M rows; padded rows are zero
    # and excluded via the true-M divisor) into one scale/shift.
    inv_n = 1.0 / float(M)
    mean = stats[0] * inv_n
    var = jnp.maximum(stats[1] * inv_n - mean * mean, 0.0)
    g = jnp.pad(gamma.astype(jnp.float32), (0, Cp - C))     # padded cols: gamma=0
    bb = jnp.pad(beta.astype(jnp.float32), (0, Cp - C))     # padded cols: beta=0
    scale = g * jax.lax.rsqrt(var + EPS)
    shift = bb - mean * scale

    act = pl.pallas_call(
        _affine_lrelu_kernel,
        out_shape=jax.ShapeDtypeStruct((Mp, Cp), jnp.bfloat16),
        grid_spec=pltpu.PrefetchScalarGridSpec(
            num_scalar_prefetch=0,
            grid=(Mp // tm, Cp // tn),
            in_specs=[pl.BlockSpec((tm, tn), lambda i, j: (i, j)),
                      pl.BlockSpec((1, tn), lambda i, j: (0, j)),
                      pl.BlockSpec((1, tn), lambda i, j: (0, j))],
            out_specs=pl.BlockSpec((tm, tn), lambda i, j: (i, j))),
        compiler_params=pltpu.CompilerParams(
            dimension_semantics=("parallel", "parallel")),
    )(y, scale.reshape(1, Cp), shift.reshape(1, Cp))

    return act[:M, :C]


def _fused_conv_tanh(patches, wmat):
    """(M,K)@(K,C) + tanh -> (M,C) f32 (final layer, no BN)."""
    M, K = patches.shape
    C = wmat.shape[1]
    Mp, Kp, Cp, tm, tk, tn = _pad_dims(M, K, C)

    a = jnp.pad(patches.astype(jnp.bfloat16), ((0, Mp - M), (0, Kp - K)))
    b = jnp.pad(wmat.astype(jnp.bfloat16), ((0, Kp - K), (0, Cp - C)))

    y = pl.pallas_call(
        _mm_tanh_kernel,
        out_shape=jax.ShapeDtypeStruct((Mp, Cp), jnp.float32),
        grid_spec=pltpu.PrefetchScalarGridSpec(
            num_scalar_prefetch=0,
            grid=(Cp // tn, Mp // tm, Kp // tk),
            in_specs=[pl.BlockSpec((tm, tk), lambda j, i, k: (i, k)),
                      pl.BlockSpec((tk, tn), lambda j, i, k: (k, j))],
            out_specs=pl.BlockSpec((tm, tn), lambda j, i, k: (i, j)),
            scratch_shapes=[pltpu.VMEM((tm, tn), jnp.float32)]),
        compiler_params=pltpu.CompilerParams(
            dimension_semantics=("parallel", "parallel", "arbitrary")),
        cost_estimate=pl.CostEstimate(
            flops=2 * Mp * Kp * Cp, transcendentals=Mp * Cp,
            bytes_accessed=2 * (Mp * Kp + Kp * Cp) + 4 * Mp * Cp),
    )(a, b)
    return y[:M, :C]


# ---------------------------------------------------------------------------
# JAX glue: NHWC im2col, deconv->conv rewrite, layer wrappers
# ---------------------------------------------------------------------------
def _im2col_nhwc(x, kh, kw, stride, pad):
    """x: (N,H,W,C) -> patches (N*Ho*Wo, kh*kw*C); K order = (ki, kj, c)."""
    N, H, W, C = x.shape
    xp = jnp.pad(x, ((0, 0), (pad, pad), (pad, pad), (0, 0)))
    Ho = (H + 2 * pad - kh) // stride + 1
    Wo = (W + 2 * pad - kw) // stride + 1
    cols = []
    for i in range(kh):
        for j in range(kw):
            cols.append(xp[:, i:i + stride * Ho:stride, j:j + stride * Wo:stride, :])
    patches = jnp.stack(cols, axis=3)                     # (N, Ho, Wo, kh*kw, C)
    return patches.reshape(N * Ho * Wo, kh * kw * C), N, Ho, Wo


def conv_block(x, w, gamma, beta, stride, pad):
    """Conv2d(bias=False) + BatchNorm2d + LeakyReLU(0.05).  x NHWC, w (Cout,Cin,kh,kw)."""
    Cout, Cin, kh, kw = w.shape
    patches, N, Ho, Wo = _im2col_nhwc(x, kh, kw, stride, pad)
    wmat = jnp.transpose(w, (2, 3, 1, 0)).reshape(kh * kw * Cin, Cout)
    out = _fused_conv_bn_lrelu(patches, wmat, gamma, beta)
    return out.reshape(N, Ho, Wo, Cout)


def _deconv_to_conv(x, wt, stride, pad):
    """ConvTranspose2d == zero-dilate input + stride-1 conv with flipped kernel."""
    N, H, W, C = x.shape
    kh, kw = wt.shape[2], wt.shape[3]
    Hd, Wd = (H - 1) * stride + 1, (W - 1) * stride + 1
    xd = jnp.zeros((N, Hd, Wd, C), x.dtype).at[:, ::stride, ::stride, :].set(x)
    w_conv = jnp.flip(wt, axis=(2, 3)).transpose(1, 0, 2, 3)   # (Cout, Cin, kh, kw)
    return xd, w_conv, kh - 1 - pad


def deconv_block(x, wt, gamma, beta, stride, pad):
    """ConvTranspose2d(bias=False) + BatchNorm2d + LeakyReLU(0.05)."""
    xd, w_conv, new_pad = _deconv_to_conv(x, wt, stride, pad)
    return conv_block(xd, w_conv, gamma, beta, stride=1, pad=new_pad)


def deconv_tanh(x, wt, stride, pad):
    """Final ConvTranspose2d (no BN) + tanh."""
    xd, w_conv, new_pad = _deconv_to_conv(x, wt, stride, pad)
    Cout, Cin, kh, kw = w_conv.shape
    patches, N, Ho, Wo = _im2col_nhwc(xd, kh, kw, 1, new_pad)
    wmat = jnp.transpose(w_conv, (2, 3, 1, 0)).reshape(kh * kw * Cin, Cout)
    out = _fused_conv_tanh(patches, wmat)
    return out.reshape(N, Ho, Wo, Cout)


# ---------------------------------------------------------------------------
# Parameter init (matches normal_init: N(0, 0.02); BN gamma=1, beta=0)
# ---------------------------------------------------------------------------
def init_generator_params(key, conv_dim):
    cd = conv_dim
    conv_shapes = [
        (cd, 1, 4, 4), (2 * cd, cd, 4, 4), (4 * cd, 2 * cd, 4, 4), (8 * cd, 4 * cd, 4, 4),
    ] + [(8 * cd, 8 * cd, 3, 3)] * 8
    deconv_shapes = [  # ConvTranspose2d weight: (Cin, Cout, kh, kw)
        (8 * cd, 4 * cd, 4, 4), (4 * cd, 2 * cd, 4, 4), (2 * cd, cd, 4, 4), (cd, 1, 4, 4),
    ]
    params = {"conv_w": [], "conv_g": [], "conv_b": [],
              "deconv_w": [], "deconv_g": [], "deconv_b": []}
    keys = jax.random.split(key, len(conv_shapes) + len(deconv_shapes))
    for i, s in enumerate(conv_shapes):
        params["conv_w"].append(0.02 * jax.random.normal(keys[i], s, jnp.float32))
        params["conv_g"].append(jnp.ones((s[0],), jnp.float32))
        params["conv_b"].append(jnp.zeros((s[0],), jnp.float32))
    for i, s in enumerate(deconv_shapes):
        params["deconv_w"].append(
            0.02 * jax.random.normal(keys[len(conv_shapes) + i], s, jnp.float32))
        params["deconv_g"].append(jnp.ones((s[1],), jnp.float32))
        params["deconv_b"].append(jnp.zeros((s[1],), jnp.float32))
    return params


# ---------------------------------------------------------------------------
# Full forward: NCHW f32 in -> NCHW f32 out; NHWC bf16 internally
# ---------------------------------------------------------------------------
def generator_forward(params, x_nchw):
    out = jnp.transpose(x_nchw, (0, 2, 3, 1)).astype(jnp.bfloat16)   # NHWC bf16
    # conv1..conv4: k=4, stride=2, pad=1
    for i in range(4):
        out = conv_block(out, params["conv_w"][i], params["conv_g"][i],
                         params["conv_b"][i], stride=2, pad=1)
    # conv5..conv12: k=3, stride=1, pad=1 (residual stack)
    for i in range(4, 12):
        out = conv_block(out, params["conv_w"][i], params["conv_g"][i],
                         params["conv_b"][i], stride=1, pad=1)
    # deconv1..deconv3: k=4, stride=2, pad=1, with BN + leaky relu
    for i in range(3):
        out = deconv_block(out, params["deconv_w"][i], params["deconv_g"][i],
                           params["deconv_b"][i], stride=2, pad=1)
    # deconv4: no BN, tanh (f32 output)
    out = deconv_tanh(out, params["deconv_w"][3], stride=2, pad=1)
    return jnp.transpose(out, (0, 3, 1, 2))                           # NCHW f32


if __name__ == "__main__":
    key = jax.random.PRNGKey(0)
    pkey, xkey = jax.random.split(key)
    conv_dim = 4
    # input: (N=2, C=1, H=16, W=16), grayscale image as in Conv2d(1, conv_dim, ...)
    x = jax.random.normal(xkey, (2, 1, 16, 16), jnp.float32)
    params = init_generator_params(pkey, conv_dim)

    fwd = jax.jit(generator_forward)
    y = jax.block_until_ready(fwd(params, x))

    assert y.shape == (2, 1, 16, 16), y.shape
    assert bool(jnp.all(jnp.isfinite(y)))
    assert float(jnp.max(jnp.abs(y))) <= 1.0 + 1e-6
    print("KERNEL_OK")
</pallas_src>

<mosaic_0001>
module attributes {stable_mosaic.version = 11 : i64} {
  func.func @_affine_lrelu_kernel(%arg0: i32, %arg1: i32, %arg2: memref<128x128xf32, #tpu.memory_space<vmem>>, %arg3: memref<1x128xf32, #tpu.memory_space<vmem>>, %arg4: memref<1x128xf32, #tpu.memory_space<vmem>>, %arg5: memref<128x128xbf16, #tpu.memory_space<vmem>>) attributes {dimension_semantics = [#tpu.dimension_semantics<parallel>, #tpu.dimension_semantics<parallel>], iteration_bounds = array<i64: 1, 1>, scalar_prefetch = 0 : i64, scratch_operands = 0 : i64, tpu.core_type = #tpu.core_type<tc>, window_params = [{transform_indices = @transform_0, window_bounds = array<i64: 128, 128>}, {transform_indices = @transform_1, window_bounds = array<i64: 1, 128>}, {transform_indices = @transform_2, window_bounds = array<i64: 1, 128>}, {transform_indices = @transform_3, window_bounds = array<i64: 128, 128>}]} {
    %c0 = arith.constant 0 : index
    %c0_0 = arith.constant 0 : index
    %0 = vector.load %arg2[%c0, %c0_0] : memref<128x128xf32, #tpu.memory_space<vmem>>, vector<128x128xf32>
    %c0_1 = arith.constant 0 : index
    %c0_2 = arith.constant 0 : index
    %1 = vector.load %arg3[%c0_1, %c0_2] : memref<1x128xf32, #tpu.memory_space<vmem>>, vector<1x128xf32>
    %2 = vector.broadcast %1 : vector<1x128xf32> to vector<128x128xf32>
    %3 = arith.mulf %0, %2 : vector<128x128xf32>
    %c0_3 = arith.constant 0 : index
    %c0_4 = arith.constant 0 : index
    %4 = vector.load %arg4[%c0_3, %c0_4] : memref<1x128xf32, #tpu.memory_space<vmem>>, vector<1x128xf32>
    %5 = vector.broadcast %4 : vector<1x128xf32> to vector<128x128xf32>
    %6 = arith.addf %3, %5 : vector<128x128xf32>
    %cst = arith.constant 0.000000e+00 : f32
    %7 = vector.broadcast %cst : f32 to vector<128x128xf32>
    %8 = arith.cmpf oge, %6, %7 : vector<128x128xf32>
    %cst_5 = arith.constant 5.000000e-02 : f32
    %9 = vector.broadcast %cst_5 : f32 to vector<128x128xf32>
    %10 = arith.mulf %9, %6 : vector<128x128xf32>
    %11 = arith.select %8, %6, %10 : vector<128x128xi1>, vector<128x128xf32>
    %12 = arith.truncf %11 : vector<128x128xf32> to vector<128x128xbf16>
    %c0_6 = arith.constant 0 : index
    %c0_7 = arith.constant 0 : index
    %13 = vector.load %arg5[%c0_6, %c0_7] : memref<128x128xbf16, #tpu.memory_space<vmem>>, vector<128x128xbf16>
    tpu.vector_store %arg5[%c0_6, %c0_7], %12 {strides = array<i32>} : memref<128x128xbf16, #tpu.memory_space<vmem>>, vector<128x128xbf16>,
    return
  }
  func.func @transform_0(%arg0: i32, %arg1: i32) -> (i32, i32) {
    %c0_i32 = arith.constant 0 : i32
    return %arg0, %arg1 : i32, i32
  }
  func.func @transform_1(%arg0: i32, %arg1: i32) -> (i32, i32) {
    %c0_i32 = arith.constant 0 : i32
    %c0_i32_0 = arith.constant 0 : i32
    return %c0_i32, %arg1 : i32, i32
  }
  func.func @transform_2(%arg0: i32, %arg1: i32) -> (i32, i32) {
    %c0_i32 = arith.constant 0 : i32
    %c0_i32_0 = arith.constant 0 : i32
    return %c0_i32, %arg1 : i32, i32
  }
  func.func @transform_3(%arg0: i32, %arg1: i32) -> (i32, i32) {
    %c0_i32 = arith.constant 0 : i32
    return %arg0, %arg1 : i32, i32
  }
}

module attributes {stable_mosaic.version = 11 : i64} {
  func.func @_mm_bn_stats_kernel(%arg0: i32, %arg1: i32, %arg2: i32, %arg3: memref<128x128xbf16, #tpu.memory_space<vmem>>, %arg4: memref<128x128xbf16, #tpu.memory_space<vmem>>, %arg5: memref<128x128xf32, #tpu.memory_space<vmem>>, %arg6: memref<8x128xf32, #tpu.memory_space<vmem>>, %arg7: memref<128x128xf32, #tpu.memory_space<vmem>>) attributes {dimension_semantics = [#tpu.dimension_semantics<parallel>, #tpu.dimension_semantics<arbitrary>, #tpu.dimension_semantics<arbitrary>], iteration_bounds = array<i64: 1, 1, 1>, scalar_prefetch = 0 : i64, scratch_operands = 1 : i64, tpu.core_type = #tpu.core_type<tc>, window_params = [{transform_indices = @transform_0, window_bounds = array<i64: 128, 128>}, {transform_indices = @transform_1, window_bounds = array<i64: 128, 128>}, {transform_indices = @transform_2, window_bounds = array<i64: 128, 128>}, {transform_indices = @transform_3, window_bounds = array<i64: 8, 128>}]} {
    %c0_i32 = arith.constant 0 : i32
    %0 = arith.cmpi eq, %arg2, %c0_i32 : i32
    %1 = arith.extui %0 : i1 to i32
    %c0_i32_0 = arith.constant 0 : i32
    %2 = arith.cmpi ne, %1, %c0_i32_0 : i32
    scf.if %2 {
      %cst_13 = arith.constant 0.000000e+00 : f32
      %17 = vector.broadcast %cst_13 : f32 to vector<128x128xf32>
      %c0_14 = arith.constant 0 : index
      %c0_15 = arith.constant 0 : index
      %18 = vector.load %arg7[%c0_14, %c0_15] : memref<128x128xf32, #tpu.memory_space<vmem>>, vector<128x128xf32>
      tpu.vector_store %arg7[%c0_14, %c0_15], %17 {strides = array<i32>} : memref<128x128xf32, #tpu.memory_space<vmem>>, vector<128x128xf32>,
    } else {
    }
    %c0_i32_1 = arith.constant 0 : i32
    %3 = arith.cmpi eq, %arg1, %c0_i32_1 : i32
    %c0_i32_2 = arith.constant 0 : i32
    %4 = arith.cmpi eq, %arg2, %c0_i32_2 : i32
    %5 = arith.andi %3, %4 : i1
    %6 = arith.extui %5 : i1 to i32
    %c0_i32_3 = arith.constant 0 : i32
    %7 = arith.cmpi ne, %6, %c0_i32_3 : i32
    scf.if %7 {
      %cst_13 = arith.constant 0.000000e+00 : f32
      %17 = vector.broadcast %cst_13 : f32 to vector<8x128xf32>
      %c0_14 = arith.constant 0 : index
      %c0_15 = arith.constant 0 : index
      %18 = vector.load %arg6[%c0_14, %c0_15] : memref<8x128xf32, #tpu.memory_space<vmem>>, vector<8x128xf32>
      tpu.vector_store %arg6[%c0_14, %c0_15], %17 {strides = array<i32>} : memref<8x128xf32, #tpu.memory_space<vmem>>, vector<8x128xf32>,
    } else {
    }
    %c0 = arith.constant 0 : index
    %c0_4 = arith.constant 0 : index
    %8 = vector.load %arg7[%c0, %c0_4] : memref<128x128xf32, #tpu.memory_space<vmem>>, vector<128x128xf32>
    %c0_5 = arith.constant 0 : index
    %c0_6 = arith.constant 0 : index
    %9 = vector.load %arg3[%c0_5, %c0_6] : memref<128x128xbf16, #tpu.memory_space<vmem>>, vector<128x128xbf16>
    %c0_7 = arith.constant 0 : index
    %c0_8 = arith.constant 0 : index
    %10 = vector.load %arg4[%c0_7, %c0_8] : memref<128x128xbf16, #tpu.memory_space<vmem>>, vector<128x128xbf16>
    %cst = arith.constant dense<0.000000e+00> : vector<128x128xf32>
    %11 = tpu.matmul %9, %10, %cst {dimension_numbers = #tpu.dot_dimension_numbers<[1], [0], [0], [1], [0, 0, 1, 1], [], []>} : vector<128x128xbf16>, vector<128x128xbf16>, vector<128x128xf32> -> vector<128x128xf32>
    %12 = arith.addf %8, %11 : vector<128x128xf32>
    %c0_9 = arith.constant 0 : index
    %c0_10 = arith.constant 0 : index
    %13 = vector.load %arg7[%c0_9, %c0_10] : memref<128x128xf32, #tpu.memory_space<vmem>>, vector<128x128xf32>
    tpu.vector_store %arg7[%c0_9, %c0_10], %12 {strides = array<i32>} : memref<128x128xf32, #tpu.memory_space<vmem>>, vector<128x128xf32>,
    %c0_i32_11 = arith.constant 0 : i32
    %14 = arith.cmpi eq, %arg2, %c0_i32_11 : i32
    %15 = arith.extui %14 : i1 to i32
    %c0_i32_12 = arith.constant 0 : i32
    %16 = arith.cmpi ne, %15, %c0_i32_12 : i32
    scf.if %16 {
      %c0_13 = arith.constant 0 : index
      %c0_14 = arith.constant 0 : index
      %17 = vector.load %arg7[%c0_13, %c0_14] : memref<128x128xf32, #tpu.memory_space<vmem>>, vector<128x128xf32>
      %c0_15 = arith.constant 0 : index
      %c0_16 = arith.constant 0 : index
      %18 = vector.load %arg5[%c0_15, %c0_16] : memref<128x128xf32, #tpu.memory_space<vmem>>, vector<128x128xf32>
      tpu.vector_store %arg5[%c0_15, %c0_16], %17 {strides = array<i32>} : memref<128x128xf32, #tpu.memory_space<vmem>>, vector<128x128xf32>,
      %cst_17 = arith.constant dense<0.000000e+00> : vector<128xf32>
      %19 = vector.multi_reduction <add>, %17, %cst_17 [0] : vector<128x128xf32> to vector<128xf32>
      %20 = vector.shape_cast %19 : vector<128xf32> to vector<1x128xf32>
      %21 = arith.mulf %17, %17 : vector<128x128xf32>
      %cst_18 = arith.constant dense<0.000000e+00> : vector<128xf32>
      %22 = vector.multi_reduction <add>, %21, %cst_18 [0] : vector<128x128xf32> to vector<128xf32>
      %23 = vector.shape_cast %22 : vector<128xf32> to vector<1x128xf32>
      %24 = tpu.iota {dimensions = array<i32: 0>} : vector<8x128xi32>
      %c0_19 = arith.constant 0 : index
      %c0_20 = arith.constant 0 : index
      %25 = vector.load %arg6[%c0_19, %c0_20] : memref<8x128xf32, #tpu.memory_space<vmem>>, vector<8x128xf32>
      %c0_i32_21 = arith.constant 0 : i32
      %26 = vector.broadcast %c0_i32_21 : i32 to vector<8x128xi32>
      %27 = arith.cmpi eq, %24, %26 : vector<8x128xi32>
      %c1_i32 = arith.constant 1 : i32
      %28 = vector.broadcast %c1_i32 : i32 to vector<8x128xi32>
      %29 = arith.cmpi eq, %24, %28 : vector<8x128xi32>
      %cst_22 = arith.constant 0.000000e+00 : f32
      %30 = vector.shape_cast %23 : vector<1x128xf32> to vector<1x128xf32>
      %31 = vector.broadcast %30 : vector<1x128xf32> to vector<8x128xf32>
      %32 = vector.broadcast %cst_22 : f32 to vector<8x128xf32>
      %33 = arith.select %29, %31, %32 : vector<8x128xi1>, vector<8x128xf32>
      %34 = vector.shape_cast %20 : vector<1x128xf32> to vector<1x128xf32>
      %35 = vector.broadcast %34 : vector<1x128xf32> to vector<8x128xf32>
      %36 = arith.select %27, %35, %33 : vector<8x128xi1>, vector<8x128xf32>
      %37 = arith.addf %25, %36 : vector<8x128xf32>
      %c0_23 = arith.constant 0 : index
      %c0_24 = arith.constant 0 : index
      %38 = vector.load %arg6[%c0_23, %c0_24] : memref<8x128xf32, #tpu.memory_space<vmem>>, vector<8x128xf32>
      tpu.vector_store %arg6[%c0_23, %c0_24], %37 {strides = array<i32>} : memref<8x128xf32, #tpu.memory_space<vmem>>, vector<8x128xf32>,
    } else {
    }
    return
  }
  func.func @transform_0(%arg0: i32, %arg1: i32, %arg2: i32) -> (i32, i32) {
    %c0_i32 = arith.constant 0 : i32
    return %arg1, %arg2 : i32, i32
  }
  func.func @transform_1(%arg0: i32, %arg1: i32, %arg2: i32) -> (i32, i32) {
    %c0_i32 = arith.constant 0 : i32
    return %arg2, %arg0 : i32, i32
  }
  func.func @transform_2(%arg0: i32, %arg1: i32, %arg2: i32) -> (i32, i32) {
    %c0_i32 = arith.constant 0 : i32
    return %arg1, %arg0 : i32, i32
  }
  func.func @transform_3(%arg0: i32, %arg1: i32, %arg2: i32) -> (i32, i32) {
    %c0_i32 = arith.constant 0 : i32
    %c0_i32_0 = arith.constant 0 : i32
    return %c0_i32, %arg0 : i32, i32
  }
}

module attributes {stable_mosaic.version = 11 : i64} {
  func.func @_affine_lrelu_kernel(%arg0: i32, %arg1: i32, %arg2: memref<32x128xf32, #tpu.memory_space<vmem>>, %arg3: memref<1x128xf32, #tpu.memory_space<vmem>>, %arg4: memref<1x128xf32, #tpu.memory_space<vmem>>, %arg5: memref<32x128xbf16, #tpu.memory_space<vmem>>) attributes {dimension_semantics = [#tpu.dimension_semantics<parallel>, #tpu.dimension_semantics<parallel>], iteration_bounds = array<i64: 1, 1>, scalar_prefetch = 0 : i64, scratch_operands = 0 : i64, tpu.core_type = #tpu.core_type<tc>, window_params = [{transform_indices = @transform_0, window_bounds = array<i64: 32, 128>}, {transform_indices = @transform_1, window_bounds = array<i64: 1, 128>}, {transform_indices = @transform_2, window_bounds = array<i64: 1, 128>}, {transform_indices = @transform_3, window_bounds = array<i64: 32, 128>}]} {
    %c0 = arith.constant 0 : index
    %c0_0 = arith.constant 0 : index
    %0 = vector.load %arg2[%c0, %c0_0] : memref<32x128xf32, #tpu.memory_space<vmem>>, vector<32x128xf32>
    %c0_1 = arith.constant 0 : index
    %c0_2 = arith.constant 0 : index
    %1 = vector.load %arg3[%c0_1, %c0_2] : memref<1x128xf32, #tpu.memory_space<vmem>>, vector<1x128xf32>
    %2 = vector.broadcast %1 : vector<1x128xf32> to vector<32x128xf32>
    %3 = arith.mulf %0, %2 : vector<32x128xf32>
    %c0_3 = arith.constant 0 : index
    %c0_4 = arith.constant 0 : index
    %4 = vector.load %arg4[%c0_3, %c0_4] : memref<1x128xf32, #tpu.memory_space<vmem>>, vector<1x128xf32>
    %5 = vector.broadcast %4 : vector<1x128xf32> to vector<32x128xf32>
    %6 = arith.addf %3, %5 : vector<32x128xf32>
    %cst = arith.constant 0.000000e+00 : f32
    %7 = vector.broadcast %cst : f32 to vector<32x128xf32>
    %8 = arith.cmpf oge, %6, %7 : vector<32x128xf32>
    %cst_5 = arith.constant 5.000000e-02 : f32
    %9 = vector.broadcast %cst_5 : f32 to vector<32x128xf32>
    %10 = arith.mulf %9, %6 : vector<32x128xf32>
    %11 = arith.select %8, %6, %10 : vector<32x128xi1>, vector<32x128xf32>
    %12 = arith.truncf %11 : vector<32x128xf32> to vector<32x128xbf16>
    %c0_6 = arith.constant 0 : index
    %c0_7 = arith.constant 0 : index
    %13 = vector.load %arg5[%c0_6, %c0_7] : memref<32x128xbf16, #tpu.memory_space<vmem>>, vector<32x128xbf16>
    tpu.vector_store %arg5[%c0_6, %c0_7], %12 {strides = array<i32>} : memref<32x128xbf16, #tpu.memory_space<vmem>>, vector<32x128xbf16>,
    return
  }
  func.func @transform_0(%arg0: i32, %arg1: i32) -> (i32, i32) {
    %c0_i32 = arith.constant 0 : i32
    return %arg0, %arg1 : i32, i32
  }
  func.func @transform_1(%arg0: i32, %arg1: i32) -> (i32, i32) {
    %c0_i32 = arith.constant 0 : i32
    %c0_i32_0 = arith.constant 0 : i32
    return %c0_i32, %arg1 : i32, i32
  }
  func.func @transform_2(%arg0: i32, %arg1: i32) -> (i32, i32) {
    %c0_i32 = arith.constant 0 : i32
    %c0_i32_0 = arith.constant 0 : i32
    return %c0_i32, %arg1 : i32, i32
  }
  func.func @transform_3(%arg0: i32, %arg1: i32) -> (i32, i32) {
    %c0_i32 = arith.constant 0 : i32
    return %arg0, %arg1 : i32, i32
  }
}

module attributes {stable_mosaic.version = 11 : i64} {
  func.func @_mm_bn_stats_kernel(%arg0: i32, %arg1: i32, %arg2: i32, %arg3: memref<32x128xbf16, #tpu.memory_space<vmem>>, %arg4: memref<128x128xbf16, #tpu.memory_space<vmem>>, %arg5: memref<32x128xf32, #tpu.memory_space<vmem>>, %arg6: memref<8x128xf32, #tpu.memory_space<vmem>>, %arg7: memref<32x128xf32, #tpu.memory_space<vmem>>) attributes {dimension_semantics = [#tpu.dimension_semantics<parallel>, #tpu.dimension_semantics<arbitrary>, #tpu.dimension_semantics<arbitrary>], iteration_bounds = array<i64: 1, 1, 1>, scalar_prefetch = 0 : i64, scratch_operands = 1 : i64, tpu.core_type = #tpu.core_type<tc>, window_params = [{transform_indices = @transform_0, window_bounds = array<i64: 32, 128>}, {transform_indices = @transform_1, window_bounds = array<i64: 128, 128>}, {transform_indices = @transform_2, window_bounds = array<i64: 32, 128>}, {transform_indices = @transform_3, window_bounds = array<i64: 8, 128>}]} {
    %c0_i32 = arith.constant 0 : i32
    %0 = arith.cmpi eq, %arg2, %c0_i32 : i32
    %1 = arith.extui %0 : i1 to i32
    %c0_i32_0 = arith.constant 0 : i32
    %2 = arith.cmpi ne, %1, %c0_i32_0 : i32
    scf.if %2 {
      %cst_13 = arith.constant 0.000000e+00 : f32
      %17 = vector.broadcast %cst_13 : f32 to vector<32x128xf32>
      %c0_14 = arith.constant 0 : index
      %c0_15 = arith.constant 0 : index
      %18 = vector.load %arg7[%c0_14, %c0_15] : memref<32x128xf32, #tpu.memory_space<vmem>>, vector<32x128xf32>
      tpu.vector_store %arg7[%c0_14, %c0_15], %17 {strides = array<i32>} : memref<32x128xf32, #tpu.memory_space<vmem>>, vector<32x128xf32>,
    } else {
    }
    %c0_i32_1 = arith.constant 0 : i32
    %3 = arith.cmpi eq, %arg1, %c0_i32_1 : i32
    %c0_i32_2 = arith.constant 0 : i32
    %4 = arith.cmpi eq, %arg2, %c0_i32_2 : i32
    %5 = arith.andi %3, %4 : i1
    %6 = arith.extui %5 : i1 to i32
    %c0_i32_3 = arith.constant 0 : i32
    %7 = arith.cmpi ne, %6, %c0_i32_3 : i32
    scf.if %7 {
      %cst_13 = arith.constant 0.000000e+00 : f32
      %17 = vector.broadcast %cst_13 : f32 to vector<8x128xf32>
      %c0_14 = arith.constant 0 : index
      %c0_15 = arith.constant 0 : index
      %18 = vector.load %arg6[%c0_14, %c0_15] : memref<8x128xf32, #tpu.memory_space<vmem>>, vector<8x128xf32>
      tpu.vector_store %arg6[%c0_14, %c0_15], %17 {strides = array<i32>} : memref<8x128xf32, #tpu.memory_space<vmem>>, vector<8x128xf32>,
    } else {
    }
    %c0 = arith.constant 0 : index
    %c0_4 = arith.constant 0 : index
    %8 = vector.load %arg7[%c0, %c0_4] : memref<32x128xf32, #tpu.memory_space<vmem>>, vector<32x128xf32>
    %c0_5 = arith.constant 0 : index
    %c0_6 = arith.constant 0 : index
    %9 = vector.load %arg3[%c0_5, %c0_6] : memref<32x128xbf16, #tpu.memory_space<vmem>>, vector<32x128xbf16>
    %c0_7 = arith.constant 0 : index
    %c0_8 = arith.constant 0 : index
    %10 = vector.load %arg4[%c0_7, %c0_8] : memref<128x128xbf16, #tpu.memory_space<vmem>>, vector<128x128xbf16>
    %cst = arith.constant dense<0.000000e+00> : vector<32x128xf32>
    %11 = tpu.matmul %9, %10, %cst {dimension_numbers = #tpu.dot_dimension_numbers<[1], [0], [0], [1], [0, 0, 1, 1], [], []>} : vector<32x128xbf16>, vector<128x128xbf16>, vector<32x128xf32> -> vector<32x128xf32>
    %12 = arith.addf %8, %11 : vector<32x128xf32>
    %c0_9 = arith.constant 0 : index
    %c0_10 = arith.constant 0 : index
    %13 = vector.load %arg7[%c0_9, %c0_10] : memref<32x128xf32, #tpu.memory_space<vmem>>, vector<32x128xf32>
    tpu.vector_store %arg7[%c0_9, %c0_10], %12 {strides = array<i32>} : memref<32x128xf32, #tpu.memory_space<vmem>>, vector<32x128xf32>,
    %c0_i32_11 = arith.constant 0 : i32
    %14 = arith.cmpi eq, %arg2, %c0_i32_11 : i32
    %15 = arith.extui %14 : i1 to i32
    %c0_i32_12 = arith.constant 0 : i32
    %16 = arith.cmpi ne, %15, %c0_i32_12 : i32
    scf.if %16 {
      %c0_13 = arith.constant 0 : index
      %c0_14 = arith.constant 0 : index
      %17 = vector.load %arg7[%c0_13, %c0_14] : memref<32x128xf32, #tpu.memory_space<vmem>>, vector<32x128xf32>
      %c0_15 = arith.constant 0 : index
      %c0_16 = arith.constant 0 : index
      %18 = vector.load %arg5[%c0_15, %c0_16] : memref<32x128xf32, #tpu.memory_space<vmem>>, vector<32x128xf32>
      tpu.vector_store %arg5[%c0_15, %c0_16], %17 {strides = array<i32>} : memref<32x128xf32, #tpu.memory_space<vmem>>, vector<32x128xf32>,
      %cst_17 = arith.constant dense<0.000000e+00> : vector<128xf32>
      %19 = vector.multi_reduction <add>, %17, %cst_17 [0] : vector<32x128xf32> to vector<128xf32>
      %20 = vector.shape_cast %19 : vector<128xf32> to vector<1x128xf32>
      %21 = arith.mulf %17, %17 : vector<32x128xf32>
      %cst_18 = arith.constant dense<0.000000e+00> : vector<128xf32>
      %22 = vector.multi_reduction <add>, %21, %cst_18 [0] : vector<32x128xf32> to vector<128xf32>
      %23 = vector.shape_cast %22 : vector<128xf32> to vector<1x128xf32>
      %24 = tpu.iota {dimensions = array<i32: 0>} : vector<8x128xi32>
      %c0_19 = arith.constant 0 : index
      %c0_20 = arith.constant 0 : index
      %25 = vector.load %arg6[%c0_19, %c0_20] : memref<8x128xf32, #tpu.memory_space<vmem>>, vector<8x128xf32>
      %c0_i32_21 = arith.constant 0 : i32
      %26 = vector.broadcast %c0_i32_21 : i32 to vector<8x128xi32>
      %27 = arith.cmpi eq, %24, %26 : vector<8x128xi32>
      %c1_i32 = arith.constant 1 : i32
      %28 = vector.broadcast %c1_i32 : i32 to vector<8x128xi32>
      %29 = arith.cmpi eq, %24, %28 : vector<8x128xi32>
      %cst_22 = arith.constant 0.000000e+00 : f32
      %30 = vector.shape_cast %23 : vector<1x128xf32> to vector<1x128xf32>
      %31 = vector.broadcast %30 : vector<1x128xf32> to vector<8x128xf32>
      %32 = vector.broadcast %cst_22 : f32 to vector<8x128xf32>
      %33 = arith.select %29, %31, %32 : vector<8x128xi1>, vector<8x128xf32>
      %34 = vector.shape_cast %20 : vector<1x128xf32> to vector<1x128xf32>
      %35 = vector.broadcast %34 : vector<1x128xf32> to vector<8x128xf32>
      %36 = arith.select %27, %35, %33 : vector<8x128xi1>, vector<8x128xf32>
      %37 = arith.addf %25, %36 : vector<8x128xf32>
      %c0_23 = arith.constant 0 : index
      %c0_24 = arith.constant 0 : index
      %38 = vector.load %arg6[%c0_23, %c0_24] : memref<8x128xf32, #tpu.memory_space<vmem>>, vector<8x128xf32>
      tpu.vector_store %arg6[%c0_23, %c0_24], %37 {strides = array<i32>} : memref<8x128xf32, #tpu.memory_space<vmem>>, vector<8x128xf32>,
    } else {
    }
    return
  }
  func.func @transform_0(%arg0: i32, %arg1: i32, %arg2: i32) -> (i32, i32) {
    %c0_i32 = arith.constant 0 : i32
    return %arg1, %arg2 : i32, i32
  }
  func.func @transform_1(%arg0: i32, %arg1: i32, %arg2: i32) -> (i32, i32) {
    %c0_i32 = arith.constant 0 : i32
    return %arg2, %arg0 : i32, i32
  }
  func.func @transform_2(%arg0: i32, %arg1: i32, %arg2: i32) -> (i32, i32) {
    %c0_i32 = arith.constant 0 : i32
    return %arg1, %arg0 : i32, i32
  }
  func.func @transform_3(%arg0: i32, %arg1: i32, %arg2: i32) -> (i32, i32) {
    %c0_i32 = arith.constant 0 : i32
    %c0_i32_0 = arith.constant 0 : i32
    return %c0_i32, %arg0 : i32, i32
  }
}

module attributes {stable_mosaic.version = 11 : i64} {
  func.func @_mm_bn_stats_kernel(%arg0: i32, %arg1: i32, %arg2: i32, %arg3: memref<8x128xbf16, #tpu.memory_space<vmem>>, %arg4: memref<128x128xbf16, #tpu.memory_space<vmem>>, %arg5: memref<8x128xf32, #tpu.memory_space<vmem>>, %arg6: memref<8x128xf32, #tpu.memory_space<vmem>>, %arg7: memref<8x128xf32, #tpu.memory_space<vmem>>) attributes {dimension_semantics = [#tpu.dimension_semantics<parallel>, #tpu.dimension_semantics<arbitrary>, #tpu.dimension_semantics<arbitrary>], iteration_bounds = array<i64: 1, 1, 1>, scalar_prefetch = 0 : i64, scratch_operands = 1 : i64, tpu.core_type = #tpu.core_type<tc>, window_params = [{transform_indices = @transform_0, window_bounds = array<i64: 8, 128>}, {transform_indices = @transform_1, window_bounds = array<i64: 128, 128>}, {transform_indices = @transform_2, window_bounds = array<i64: 8, 128>}, {transform_indices = @transform_3, window_bounds = array<i64: 8, 128>}]} {
    %c0_i32 = arith.constant 0 : i32
    %0 = arith.cmpi eq, %arg2, %c0_i32 : i32
    %1 = arith.extui %0 : i1 to i32
    %c0_i32_0 = arith.constant 0 : i32
    %2 = arith.cmpi ne, %1, %c0_i32_0 : i32
    scf.if %2 {
      %cst_13 = arith.constant 0.000000e+00 : f32
      %17 = vector.broadcast %cst_13 : f32 to vector<8x128xf32>
      %c0_14 = arith.constant 0 : index
      %c0_15 = arith.constant 0 : index
      %18 = vector.load %arg7[%c0_14, %c0_15] : memref<8x128xf32, #tpu.memory_space<vmem>>, vector<8x128xf32>
      tpu.vector_store %arg7[%c0_14, %c0_15], %17 {strides = array<i32>} : memref<8x128xf32, #tpu.memory_space<vmem>>, vector<8x128xf32>,
    } else {
    }
    %c0_i32_1 = arith.constant 0 : i32
    %3 = arith.cmpi eq, %arg1, %c0_i32_1 : i32
    %c0_i32_2 = arith.constant 0 : i32
    %4 = arith.cmpi eq, %arg2, %c0_i32_2 : i32
    %5 = arith.andi %3, %4 : i1
    %6 = arith.extui %5 : i1 to i32
    %c0_i32_3 = arith.constant 0 : i32
    %7 = arith.cmpi ne, %6, %c0_i32_3 : i32
    scf.if %7 {
      %cst_13 = arith.constant 0.000000e+00 : f32
      %17 = vector.broadcast %cst_13 : f32 to vector<8x128xf32>
      %c0_14 = arith.constant 0 : index
      %c0_15 = arith.constant 0 : index
      %18 = vector.load %arg6[%c0_14, %c0_15] : memref<8x128xf32, #tpu.memory_space<vmem>>, vector<8x128xf32>
      tpu.vector_store %arg6[%c0_14, %c0_15], %17 {strides = array<i32>} : memref<8x128xf32, #tpu.memory_space<vmem>>, vector<8x128xf32>,
    } else {
    }
    %c0 = arith.constant 0 : index
    %c0_4 = arith.constant 0 : index
    %8 = vector.load %arg7[%c0, %c0_4] : memref<8x128xf32, #tpu.memory_space<vmem>>, vector<8x128xf32>
    %c0_5 = arith.constant 0 : index
    %c0_6 = arith.constant 0 : index
    %9 = vector.load %arg3[%c0_5, %c0_6] : memref<8x128xbf16, #tpu.memory_space<vmem>>, vector<8x128xbf16>
    %c0_7 = arith.constant 0 : index
    %c0_8 = arith.constant 0 : index
    %10 = vector.load %arg4[%c0_7, %c0_8] : memref<128x128xbf16, #tpu.memory_space<vmem>>, vector<128x128xbf16>
    %cst = arith.constant dense<0.000000e+00> : vector<8x128xf32>
    %11 = tpu.matmul %9, %10, %cst {dimension_numbers = #tpu.dot_dimension_numbers<[1], [0], [0], [1], [0, 0, 1, 1], [], []>} : vector<8x128xbf16>, vector<128x128xbf16>, vector<8x128xf32> -> vector<8x128xf32>
    %12 = arith.addf %8, %11 : vector<8x128xf32>
    %c0_9 = arith.constant 0 : index
    %c0_10 = arith.constant 0 : index
    %13 = vector.load %arg7[%c0_9, %c0_10] : memref<8x128xf32, #tpu.memory_space<vmem>>, vector<8x128xf32>
    tpu.vector_store %arg7[%c0_9, %c0_10], %12 {strides = array<i32>} : memref<8x128xf32, #tpu.memory_space<vmem>>, vector<8x128xf32>,
    %c0_i32_11 = arith.constant 0 : i32
    %14 = arith.cmpi eq, %arg2, %c0_i32_11 : i32
    %15 = arith.extui %14 : i1 to i32
    %c0_i32_12 = arith.constant 0 : i32
    %16 = arith.cmpi ne, %15, %c0_i32_12 : i32
    scf.if %16 {
      %c0_13 = arith.constant 0 : index
      %c0_14 = arith.constant 0 : index
      %17 = vector.load %arg7[%c0_13, %c0_14] : memref<8x128xf32, #tpu.memory_space<vmem>>, vector<8x128xf32>
      %c0_15 = arith.constant 0 : index
      %c0_16 = arith.constant 0 : index
      %18 = vector.load %arg5[%c0_15, %c0_16] : memref<8x128xf32, #tpu.memory_space<vmem>>, vector<8x128xf32>
      tpu.vector_store %arg5[%c0_15, %c0_16], %17 {strides = array<i32>} : memref<8x128xf32, #tpu.memory_space<vmem>>, vector<8x128xf32>,
      %cst_17 = arith.constant dense<0.000000e+00> : vector<128xf32>
      %19 = vector.multi_reduction <add>, %17, %cst_17 [0] : vector<8x128xf32> to vector<128xf32>
      %20 = vector.shape_cast %19 : vector<128xf32> to vector<1x128xf32>
      %21 = arith.mulf %17, %17 : vector<8x128xf32>
      %cst_18 = arith.constant dense<0.000000e+00> : vector<128xf32>
      %22 = vector.multi_reduction <add>, %21, %cst_18 [0] : vector<8x128xf32> to vector<128xf32>
      %23 = vector.shape_cast %22 : vector<128xf32> to vector<1x128xf32>
      %24 = tpu.iota {dimensions = array<i32: 0>} : vector<8x128xi32>
      %c0_19 = arith.constant 0 : index
      %c0_20 = arith.constant 0 : index
      %25 = vector.load %arg6[%c0_19, %c0_20] : memref<8x128xf32, #tpu.memory_space<vmem>>, vector<8x128xf32>
      %c0_i32_21 = arith.constant 0 : i32
      %26 = vector.broadcast %c0_i32_21 : i32 to vector<8x128xi32>
      %27 = arith.cmpi eq, %24, %26 : vector<8x128xi32>
      %c1_i32 = arith.constant 1 : i32
      %28 = vector.broadcast %c1_i32 : i32 to vector<8x128xi32>
      %29 = arith.cmpi eq, %24, %28 : vector<8x128xi32>
      %cst_22 = arith.constant 0.000000e+00 : f32
      %30 = vector.shape_cast %23 : vector<1x128xf32> to vector<1x128xf32>
      %31 = vector.broadcast %30 : vector<1x128xf32> to vector<8x128xf32>
      %32 = vector.broadcast %cst_22 : f32 to vector<8x128xf32>
      %33 = arith.select %29, %31, %32 : vector<8x128xi1>, vector<8x128xf32>
      %34 = vector.shape_cast %20 : vector<1x128xf32> to vector<1x128xf32>
      %35 = vector.broadcast %34 : vector<1x128xf32> to vector<8x128xf32>
      %36 = arith.select %27, %35, %33 : vector<8x128xi1>, vector<8x128xf32>
      %37 = arith.addf %25, %36 : vector<8x128xf32>
      %c0_23 = arith.constant 0 : index
      %c0_24 = arith.constant 0 : index
      %38 = vector.load %arg6[%c0_23, %c0_24] : memref<8x128xf32, #tpu.memory_space<vmem>>, vector<8x128xf32>
      tpu.vector_store %arg6[%c0_23, %c0_24], %37 {strides = array<i32>} : memref<8x128xf32, #tpu.memory_space<vmem>>, vector<8x128xf32>,
    } else {
    }
    return
  }
  func.func @transform_0(%arg0: i32, %arg1: i32, %arg2: i32) -> (i32, i32) {
    %c0_i32 = arith.constant 0 : i32
    return %arg1, %arg2 : i32, i32
  }
  func.func @transform_1(%arg0: i32, %arg1: i32, %arg2: i32) -> (i32, i32) {
    %c0_i32 = arith.constant 0 : i32
    return %arg2, %arg0 : i32, i32
  }
  func.func @transform_2(%arg0: i32, %arg1: i32, %arg2: i32) -> (i32, i32) {
    %c0_i32 = arith.constant 0 : i32
    return %arg1, %arg0 : i32, i32
  }
  func.func @transform_3(%arg0: i32, %arg1: i32, %arg2: i32) -> (i32, i32) {
    %c0_i32 = arith.constant 0 : i32
    %c0_i32_0 = arith.constant 0 : i32
    return %c0_i32, %arg0 : i32, i32
  }
}

module attributes {stable_mosaic.version = 11 : i64} {
  func.func @_affine_lrelu_kernel(%arg0: i32, %arg1: i32, %arg2: memref<8x128xf32, #tpu.memory_space<vmem>>, %arg3: memref<1x128xf32, #tpu.memory_space<vmem>>, %arg4: memref<1x128xf32, #tpu.memory_space<vmem>>, %arg5: memref<8x128xbf16, #tpu.memory_space<vmem>>) attributes {dimension_semantics = [#tpu.dimension_semantics<parallel>, #tpu.dimension_semantics<parallel>], iteration_bounds = array<i64: 1, 1>, scalar_prefetch = 0 : i64, scratch_operands = 0 : i64, tpu.core_type = #tpu.core_type<tc>, window_params = [{transform_indices = @transform_0, window_bounds = array<i64: 8, 128>}, {transform_indices = @transform_1, window_bounds = array<i64: 1, 128>}, {transform_indices = @transform_2, window_bounds = array<i64: 1, 128>}, {transform_indices = @transform_3, window_bounds = array<i64: 8, 128>}]} {
    %c0 = arith.constant 0 : index
    %c0_0 = arith.constant 0 : index
    %0 = vector.load %arg2[%c0, %c0_0] : memref<8x128xf32, #tpu.memory_space<vmem>>, vector<8x128xf32>
    %c0_1 = arith.constant 0 : index
    %c0_2 = arith.constant 0 : index
    %1 = vector.load %arg3[%c0_1, %c0_2] : memref<1x128xf32, #tpu.memory_space<vmem>>, vector<1x128xf32>
    %2 = vector.broadcast %1 : vector<1x128xf32> to vector<8x128xf32>
    %3 = arith.mulf %0, %2 : vector<8x128xf32>
    %c0_3 = arith.constant 0 : index
    %c0_4 = arith.constant 0 : index
    %4 = vector.load %arg4[%c0_3, %c0_4] : memref<1x128xf32, #tpu.memory_space<vmem>>, vector<1x128xf32>
    %5 = vector.broadcast %4 : vector<1x128xf32> to vector<8x128xf32>
    %6 = arith.addf %3, %5 : vector<8x128xf32>
    %cst = arith.constant 0.000000e+00 : f32
    %7 = vector.broadcast %cst : f32 to vector<8x128xf32>
    %8 = arith.cmpf oge, %6, %7 : vector<8x128xf32>
    %cst_5 = arith.constant 5.000000e-02 : f32
    %9 = vector.broadcast %cst_5 : f32 to vector<8x128xf32>
    %10 = arith.mulf %9, %6 : vector<8x128xf32>
    %11 = arith.select %8, %6, %10 : vector<8x128xi1>, vector<8x128xf32>
    %12 = arith.truncf %11 : vector<8x128xf32> to vector<8x128xbf16>
    %c0_6 = arith.constant 0 : index
    %c0_7 = arith.constant 0 : index
    %13 = vector.load %arg5[%c0_6, %c0_7] : memref<8x128xbf16, #tpu.memory_space<vmem>>, vector<8x128xbf16>
    tpu.vector_store %arg5[%c0_6, %c0_7], %12 {strides = array<i32>} : memref<8x128xbf16, #tpu.memory_space<vmem>>, vector<8x128xbf16>,
    return
  }
  func.func @transform_0(%arg0: i32, %arg1: i32) -> (i32, i32) {
    %c0_i32 = arith.constant 0 : i32
    return %arg0, %arg1 : i32, i32
  }
  func.func @transform_1(%arg0: i32, %arg1: i32) -> (i32, i32) {
    %c0_i32 = arith.constant 0 : i32
    %c0_i32_0 = arith.constant 0 : i32
    return %c0_i32, %arg1 : i32, i32
  }
  func.func @transform_2(%arg0: i32, %arg1: i32) -> (i32, i32) {
    %c0_i32 = arith.constant 0 : i32
    %c0_i32_0 = arith.constant 0 : i32
    return %c0_i32, %arg1 : i32, i32
  }
  func.func @transform_3(%arg0: i32, %arg1: i32) -> (i32, i32) {
    %c0_i32 = arith.constant 0 : i32
    return %arg0, %arg1 : i32, i32
  }
}

module attributes {stable_mosaic.version = 11 : i64} {
  func.func @_mm_bn_stats_kernel(%arg0: i32, %arg1: i32, %arg2: i32, %arg3: memref<8x256xbf16, #tpu.memory_space<vmem>>, %arg4: memref<256x128xbf16, #tpu.memory_space<vmem>>, %arg5: memref<8x128xf32, #tpu.memory_space<vmem>>, %arg6: memref<8x128xf32, #tpu.memory_space<vmem>>, %arg7: memref<8x128xf32, #tpu.memory_space<vmem>>) attributes {dimension_semantics = [#tpu.dimension_semantics<parallel>, #tpu.dimension_semantics<arbitrary>, #tpu.dimension_semantics<arbitrary>], iteration_bounds = array<i64: 1, 1, 1>, scalar_prefetch = 0 : i64, scratch_operands = 1 : i64, tpu.core_type = #tpu.core_type<tc>, window_params = [{transform_indices = @transform_0, window_bounds = array<i64: 8, 256>}, {transform_indices = @transform_1, window_bounds = array<i64: 256, 128>}, {transform_indices = @transform_2, window_bounds = array<i64: 8, 128>}, {transform_indices = @transform_3, window_bounds = array<i64: 8, 128>}]} {
    %c0_i32 = arith.constant 0 : i32
    %0 = arith.cmpi eq, %arg2, %c0_i32 : i32
    %1 = arith.extui %0 : i1 to i32
    %c0_i32_0 = arith.constant 0 : i32
    %2 = arith.cmpi ne, %1, %c0_i32_0 : i32
    scf.if %2 {
      %cst_13 = arith.constant 0.000000e+00 : f32
      %17 = vector.broadcast %cst_13 : f32 to vector<8x128xf32>
      %c0_14 = arith.constant 0 : index
      %c0_15 = arith.constant 0 : index
      %18 = vector.load %arg7[%c0_14, %c0_15] : memref<8x128xf32, #tpu.memory_space<vmem>>, vector<8x128xf32>
      tpu.vector_store %arg7[%c0_14, %c0_15], %17 {strides = array<i32>} : memref<8x128xf32, #tpu.memory_space<vmem>>, vector<8x128xf32>,
    } else {
    }
    %c0_i32_1 = arith.constant 0 : i32
    %3 = arith.cmpi eq, %arg1, %c0_i32_1 : i32
    %c0_i32_2 = arith.constant 0 : i32
    %4 = arith.cmpi eq, %arg2, %c0_i32_2 : i32
    %5 = arith.andi %3, %4 : i1
    %6 = arith.extui %5 : i1 to i32
    %c0_i32_3 = arith.constant 0 : i32
    %7 = arith.cmpi ne, %6, %c0_i32_3 : i32
    scf.if %7 {
      %cst_13 = arith.constant 0.000000e+00 : f32
      %17 = vector.broadcast %cst_13 : f32 to vector<8x128xf32>
      %c0_14 = arith.constant 0 : index
      %c0_15 = arith.constant 0 : index
      %18 = vector.load %arg6[%c0_14, %c0_15] : memref<8x128xf32, #tpu.memory_space<vmem>>, vector<8x128xf32>
      tpu.vector_store %arg6[%c0_14, %c0_15], %17 {strides = array<i32>} : memref<8x128xf32, #tpu.memory_space<vmem>>, vector<8x128xf32>,
    } else {
    }
    %c0 = arith.constant 0 : index
    %c0_4 = arith.constant 0 : index
    %8 = vector.load %arg7[%c0, %c0_4] : memref<8x128xf32, #tpu.memory_space<vmem>>, vector<8x128xf32>
    %c0_5 = arith.constant 0 : index
    %c0_6 = arith.constant 0 : index
    %9 = vector.load %arg3[%c0_5, %c0_6] : memref<8x256xbf16, #tpu.memory_space<vmem>>, vector<8x256xbf16>
    %c0_7 = arith.constant 0 : index
    %c0_8 = arith.constant 0 : index
    %10 = vector.load %arg4[%c0_7, %c0_8] : memref<256x128xbf16, #tpu.memory_space<vmem>>, vector<256x128xbf16>
    %cst = arith.constant dense<0.000000e+00> : vector<8x128xf32>
    %11 = tpu.matmul %9, %10, %cst {dimension_numbers = #tpu.dot_dimension_numbers<[1], [0], [0], [1], [0, 0, 1, 1], [], []>} : vector<8x256xbf16>, vector<256x128xbf16>, vector<8x128xf32> -> vector<8x128xf32>
    %12 = arith.addf %8, %11 : vector<8x128xf32>
    %c0_9 = arith.constant 0 : index
    %c0_10 = arith.constant 0 : index
    %13 = vector.load %arg7[%c0_9, %c0_10] : memref<8x128xf32, #tpu.memory_space<vmem>>, vector<8x128xf32>
    tpu.vector_store %arg7[%c0_9, %c0_10], %12 {strides = array<i32>} : memref<8x128xf32, #tpu.memory_space<vmem>>, vector<8x128xf32>,
    %c0_i32_11 = arith.constant 0 : i32
    %14 = arith.cmpi eq, %arg2, %c0_i32_11 : i32
    %15 = arith.extui %14 : i1 to i32
    %c0_i32_12 = arith.constant 0 : i32
    %16 = arith.cmpi ne, %15, %c0_i32_12 : i32
    scf.if %16 {
      %c0_13 = arith.constant 0 : index
      %c0_14 = arith.constant 0 : index
      %17 = vector.load %arg7[%c0_13, %c0_14] : memref<8x128xf32, #tpu.memory_space<vmem>>, vector<8x128xf32>
      %c0_15 = arith.constant 0 : index
      %c0_16 = arith.constant 0 : index
      %18 = vector.load %arg5[%c0_15, %c0_16] : memref<8x128xf32, #tpu.memory_space<vmem>>, vector<8x128xf32>
      tpu.vector_store %arg5[%c0_15, %c0_16], %17 {strides = array<i32>} : memref<8x128xf32, #tpu.memory_space<vmem>>, vector<8x128xf32>,
      %cst_17 = arith.constant dense<0.000000e+00> : vector<128xf32>
      %19 = vector.multi_reduction <add>, %17, %cst_17 [0] : vector<8x128xf32> to vector<128xf32>
      %20 = vector.shape_cast %19 : vector<128xf32> to vector<1x128xf32>
      %21 = arith.mulf %17, %17 : vector<8x128xf32>
      %cst_18 = arith.constant dense<0.000000e+00> : vector<128xf32>
      %22 = vector.multi_reduction <add>, %21, %cst_18 [0] : vector<8x128xf32> to vector<128xf32>
      %23 = vector.shape_cast %22 : vector<128xf32> to vector<1x128xf32>
      %24 = tpu.iota {dimensions = array<i32: 0>} : vector<8x128xi32>
      %c0_19 = arith.constant 0 : index
      %c0_20 = arith.constant 0 : index
      %25 = vector.load %arg6[%c0_19, %c0_20] : memref<8x128xf32, #tpu.memory_space<vmem>>, vector<8x128xf32>
      %c0_i32_21 = arith.constant 0 : i32
      %26 = vector.broadcast %c0_i32_21 : i32 to vector<8x128xi32>
      %27 = arith.cmpi eq, %24, %26 : vector<8x128xi32>
      %c1_i32 = arith.constant 1 : i32
      %28 = vector.broadcast %c1_i32 : i32 to vector<8x128xi32>
      %29 = arith.cmpi eq, %24, %28 : vector<8x128xi32>
      %cst_22 = arith.constant 0.000000e+00 : f32
      %30 = vector.shape_cast %23 : vector<1x128xf32> to vector<1x128xf32>
      %31 = vector.broadcast %30 : vector<1x128xf32> to vector<8x128xf32>
      %32 = vector.broadcast %cst_22 : f32 to vector<8x128xf32>
      %33 = arith.select %29, %31, %32 : vector<8x128xi1>, vector<8x128xf32>
      %34 = vector.shape_cast %20 : vector<1x128xf32> to vector<1x128xf32>
      %35 = vector.broadcast %34 : vector<1x128xf32> to vector<8x128xf32>
      %36 = arith.select %27, %35, %33 : vector<8x128xi1>, vector<8x128xf32>
      %37 = arith.addf %25, %36 : vector<8x128xf32>
      %c0_23 = arith.constant 0 : index
      %c0_24 = arith.constant 0 : index
      %38 = vector.load %arg6[%c0_23, %c0_24] : memref<8x128xf32, #tpu.memory_space<vmem>>, vector<8x128xf32>
      tpu.vector_store %arg6[%c0_23, %c0_24], %37 {strides = array<i32>} : memref<8x128xf32, #tpu.memory_space<vmem>>, vector<8x128xf32>,
    } else {
    }
    return
  }
  func.func @transform_0(%arg0: i32, %arg1: i32, %arg2: i32) -> (i32, i32) {
    %c0_i32 = arith.constant 0 : i32
    return %arg1, %arg2 : i32, i32
  }
  func.func @transform_1(%arg0: i32, %arg1: i32, %arg2: i32) -> (i32, i32) {
    %c0_i32 = arith.constant 0 : i32
    return %arg2, %arg0 : i32, i32
  }
  func.func @transform_2(%arg0: i32, %arg1: i32, %arg2: i32) -> (i32, i32) {
    %c0_i32 = arith.constant 0 : i32
    return %arg1, %arg0 : i32, i32
  }
  func.func @transform_3(%arg0: i32, %arg1: i32, %arg2: i32) -> (i32, i32) {
    %c0_i32 = arith.constant 0 : i32
    %c0_i32_0 = arith.constant 0 : i32
    return %c0_i32, %arg0 : i32, i32
  }
}

module attributes {stable_mosaic.version = 11 : i64} {
  func.func @_mm_bn_stats_kernel(%arg0: i32, %arg1: i32, %arg2: i32, %arg3: memref<8x384xbf16, #tpu.memory_space<vmem>>, %arg4: memref<384x128xbf16, #tpu.memory_space<vmem>>, %arg5: memref<8x128xf32, #tpu.memory_space<vmem>>, %arg6: memref<8x128xf32, #tpu.memory_space<vmem>>, %arg7: memref<8x128xf32, #tpu.memory_space<vmem>>) attributes {dimension_semantics = [#tpu.dimension_semantics<parallel>, #tpu.dimension_semantics<arbitrary>, #tpu.dimension_semantics<arbitrary>], iteration_bounds = array<i64: 1, 1, 1>, scalar_prefetch = 0 : i64, scratch_operands = 1 : i64, tpu.core_type = #tpu.core_type<tc>, window_params = [{transform_indices = @transform_0, window_bounds = array<i64: 8, 384>}, {transform_indices = @transform_1, window_bounds = array<i64: 384, 128>}, {transform_indices = @transform_2, window_bounds = array<i64: 8, 128>}, {transform_indices = @transform_3, window_bounds = array<i64: 8, 128>}]} {
    %c0_i32 = arith.constant 0 : i32
    %0 = arith.cmpi eq, %arg2, %c0_i32 : i32
    %1 = arith.extui %0 : i1 to i32
    %c0_i32_0 = arith.constant 0 : i32
    %2 = arith.cmpi ne, %1, %c0_i32_0 : i32
    scf.if %2 {
      %cst_13 = arith.constant 0.000000e+00 : f32
      %17 = vector.broadcast %cst_13 : f32 to vector<8x128xf32>
      %c0_14 = arith.constant 0 : index
      %c0_15 = arith.constant 0 : index
      %18 = vector.load %arg7[%c0_14, %c0_15] : memref<8x128xf32, #tpu.memory_space<vmem>>, vector<8x128xf32>
      tpu.vector_store %arg7[%c0_14, %c0_15], %17 {strides = array<i32>} : memref<8x128xf32, #tpu.memory_space<vmem>>, vector<8x128xf32>,
    } else {
    }
    %c0_i32_1 = arith.constant 0 : i32
    %3 = arith.cmpi eq, %arg1, %c0_i32_1 : i32
    %c0_i32_2 = arith.constant 0 : i32
    %4 = arith.cmpi eq, %arg2, %c0_i32_2 : i32
    %5 = arith.andi %3, %4 : i1
    %6 = arith.extui %5 : i1 to i32
    %c0_i32_3 = arith.constant 0 : i32
    %7 = arith.cmpi ne, %6, %c0_i32_3 : i32
    scf.if %7 {
      %cst_13 = arith.constant 0.000000e+00 : f32
      %17 = vector.broadcast %cst_13 : f32 to vector<8x128xf32>
      %c0_14 = arith.constant 0 : index
      %c0_15 = arith.constant 0 : index
      %18 = vector.load %arg6[%c0_14, %c0_15] : memref<8x128xf32, #tpu.memory_space<vmem>>, vector<8x128xf32>
      tpu.vector_store %arg6[%c0_14, %c0_15], %17 {strides = array<i32>} : memref<8x128xf32, #tpu.memory_space<vmem>>, vector<8x128xf32>,
    } else {
    }
    %c0 = arith.constant 0 : index
    %c0_4 = arith.constant 0 : index
    %8 = vector.load %arg7[%c0, %c0_4] : memref<8x128xf32, #tpu.memory_space<vmem>>, vector<8x128xf32>
    %c0_5 = arith.constant 0 : index
    %c0_6 = arith.constant 0 : index
    %9 = vector.load %arg3[%c0_5, %c0_6] : memref<8x384xbf16, #tpu.memory_space<vmem>>, vector<8x384xbf16>
    %c0_7 = arith.constant 0 : index
    %c0_8 = arith.constant 0 : index
    %10 = vector.load %arg4[%c0_7, %c0_8] : memref<384x128xbf16, #tpu.memory_space<vmem>>, vector<384x128xbf16>
    %cst = arith.constant dense<0.000000e+00> : vector<8x128xf32>
    %11 = tpu.matmul %9, %10, %cst {dimension_numbers = #tpu.dot_dimension_numbers<[1], [0], [0], [1], [0, 0, 1, 1], [], []>} : vector<8x384xbf16>, vector<384x128xbf16>, vector<8x128xf32> -> vector<8x128xf32>
    %12 = arith.addf %8, %11 : vector<8x128xf32>
    %c0_9 = arith.constant 0 : index
    %c0_10 = arith.constant 0 : index
    %13 = vector.load %arg7[%c0_9, %c0_10] : memref<8x128xf32, #tpu.memory_space<vmem>>, vector<8x128xf32>
    tpu.vector_store %arg7[%c0_9, %c0_10], %12 {strides = array<i32>} : memref<8x128xf32, #tpu.memory_space<vmem>>, vector<8x128xf32>,
    %c0_i32_11 = arith.constant 0 : i32
    %14 = arith.cmpi eq, %arg2, %c0_i32_11 : i32
    %15 = arith.extui %14 : i1 to i32
    %c0_i32_12 = arith.constant 0 : i32
    %16 = arith.cmpi ne, %15, %c0_i32_12 : i32
    scf.if %16 {
      %c0_13 = arith.constant 0 : index
      %c0_14 = arith.constant 0 : index
      %17 = vector.load %arg7[%c0_13, %c0_14] : memref<8x128xf32, #tpu.memory_space<vmem>>, vector<8x128xf32>
      %c0_15 = arith.constant 0 : index
      %c0_16 = arith.constant 0 : index
      %18 = vector.load %arg5[%c0_15, %c0_16] : memref<8x128xf32, #tpu.memory_space<vmem>>, vector<8x128xf32>
      tpu.vector_store %arg5[%c0_15, %c0_16], %17 {strides = array<i32>} : memref<8x128xf32, #tpu.memory_space<vmem>>, vector<8x128xf32>,
      %cst_17 = arith.constant dense<0.000000e+00> : vector<128xf32>
      %19 = vector.multi_reduction <add>, %17, %cst_17 [0] : vector<8x128xf32> to vector<128xf32>
      %20 = vector.shape_cast %19 : vector<128xf32> to vector<1x128xf32>
      %21 = arith.mulf %17, %17 : vector<8x128xf32>
      %cst_18 = arith.constant dense<0.000000e+00> : vector<128xf32>
      %22 = vector.multi_reduction <add>, %21, %cst_18 [0] : vector<8x128xf32> to vector<128xf32>
      %23 = vector.shape_cast %22 : vector<128xf32> to vector<1x128xf32>
      %24 = tpu.iota {dimensions = array<i32: 0>} : vector<8x128xi32>
      %c0_19 = arith.constant 0 : index
      %c0_20 = arith.constant 0 : index
      %25 = vector.load %arg6[%c0_19, %c0_20] : memref<8x128xf32, #tpu.memory_space<vmem>>, vector<8x128xf32>
      %c0_i32_21 = arith.constant 0 : i32
      %26 = vector.broadcast %c0_i32_21 : i32 to vector<8x128xi32>
      %27 = arith.cmpi eq, %24, %26 : vector<8x128xi32>
      %c1_i32 = arith.constant 1 : i32
      %28 = vector.broadcast %c1_i32 : i32 to vector<8x128xi32>
      %29 = arith.cmpi eq, %24, %28 : vector<8x128xi32>
      %cst_22 = arith.constant 0.000000e+00 : f32
      %30 = vector.shape_cast %23 : vector<1x128xf32> to vector<1x128xf32>
      %31 = vector.broadcast %30 : vector<1x128xf32> to vector<8x128xf32>
      %32 = vector.broadcast %cst_22 : f32 to vector<8x128xf32>
      %33 = arith.select %29, %31, %32 : vector<8x128xi1>, vector<8x128xf32>
      %34 = vector.shape_cast %20 : vector<1x128xf32> to vector<1x128xf32>
      %35 = vector.broadcast %34 : vector<1x128xf32> to vector<8x128xf32>
      %36 = arith.select %27, %35, %33 : vector<8x128xi1>, vector<8x128xf32>
      %37 = arith.addf %25, %36 : vector<8x128xf32>
      %c0_23 = arith.constant 0 : index
      %c0_24 = arith.constant 0 : index
      %38 = vector.load %arg6[%c0_23, %c0_24] : memref<8x128xf32, #tpu.memory_space<vmem>>, vector<8x128xf32>
      tpu.vector_store %arg6[%c0_23, %c0_24], %37 {strides = array<i32>} : memref<8x128xf32, #tpu.memory_space<vmem>>, vector<8x128xf32>,
    } else {
    }
    return
  }
  func.func @transform_0(%arg0: i32, %arg1: i32, %arg2: i32) -> (i32, i32) {
    %c0_i32 = arith.constant 0 : i32
    return %arg1, %arg2 : i32, i32
  }
  func.func @transform_1(%arg0: i32, %arg1: i32, %arg2: i32) -> (i32, i32) {
    %c0_i32 = arith.constant 0 : i32
    return %arg2, %arg0 : i32, i32
  }
  func.func @transform_2(%arg0: i32, %arg1: i32, %arg2: i32) -> (i32, i32) {
    %c0_i32 = arith.constant 0 : i32
    return %arg1, %arg0 : i32, i32
  }
  func.func @transform_3(%arg0: i32, %arg1: i32, %arg2: i32) -> (i32, i32) {
    %c0_i32 = arith.constant 0 : i32
    %c0_i32_0 = arith.constant 0 : i32
    return %c0_i32, %arg0 : i32, i32
  }
}

module attributes {stable_mosaic.version = 11 : i64} {
  func.func @_mm_bn_stats_kernel(%arg0: i32, %arg1: i32, %arg2: i32, %arg3: memref<8x512xbf16, #tpu.memory_space<vmem>>, %arg4: memref<512x128xbf16, #tpu.memory_space<vmem>>, %arg5: memref<8x128xf32, #tpu.memory_space<vmem>>, %arg6: memref<8x128xf32, #tpu.memory_space<vmem>>, %arg7: memref<8x128xf32, #tpu.memory_space<vmem>>) attributes {dimension_semantics = [#tpu.dimension_semantics<parallel>, #tpu.dimension_semantics<arbitrary>, #tpu.dimension_semantics<arbitrary>], iteration_bounds = array<i64: 1, 1, 1>, scalar_prefetch = 0 : i64, scratch_operands = 1 : i64, tpu.core_type = #tpu.core_type<tc>, window_params = [{transform_indices = @transform_0, window_bounds = array<i64: 8, 512>}, {transform_indices = @transform_1, window_bounds = array<i64: 512, 128>}, {transform_indices = @transform_2, window_bounds = array<i64: 8, 128>}, {transform_indices = @transform_3, window_bounds = array<i64: 8, 128>}]} {
    %c0_i32 = arith.constant 0 : i32
    %0 = arith.cmpi eq, %arg2, %c0_i32 : i32
    %1 = arith.extui %0 : i1 to i32
    %c0_i32_0 = arith.constant 0 : i32
    %2 = arith.cmpi ne, %1, %c0_i32_0 : i32
    scf.if %2 {
      %cst_13 = arith.constant 0.000000e+00 : f32
      %17 = vector.broadcast %cst_13 : f32 to vector<8x128xf32>
      %c0_14 = arith.constant 0 : index
      %c0_15 = arith.constant 0 : index
      %18 = vector.load %arg7[%c0_14, %c0_15] : memref<8x128xf32, #tpu.memory_space<vmem>>, vector<8x128xf32>
      tpu.vector_store %arg7[%c0_14, %c0_15], %17 {strides = array<i32>} : memref<8x128xf32, #tpu.memory_space<vmem>>, vector<8x128xf32>,
    } else {
    }
    %c0_i32_1 = arith.constant 0 : i32
    %3 = arith.cmpi eq, %arg1, %c0_i32_1 : i32
    %c0_i32_2 = arith.constant 0 : i32
    %4 = arith.cmpi eq, %arg2, %c0_i32_2 : i32
    %5 = arith.andi %3, %4 : i1
    %6 = arith.extui %5 : i1 to i32
    %c0_i32_3 = arith.constant 0 : i32
    %7 = arith.cmpi ne, %6, %c0_i32_3 : i32
    scf.if %7 {
      %cst_13 = arith.constant 0.000000e+00 : f32
      %17 = vector.broadcast %cst_13 : f32 to vector<8x128xf32>
      %c0_14 = arith.constant 0 : index
      %c0_15 = arith.constant 0 : index
      %18 = vector.load %arg6[%c0_14, %c0_15] : memref<8x128xf32, #tpu.memory_space<vmem>>, vector<8x128xf32>
      tpu.vector_store %arg6[%c0_14, %c0_15], %17 {strides = array<i32>} : memref<8x128xf32, #tpu.memory_space<vmem>>, vector<8x128xf32>,
    } else {
    }
    %c0 = arith.constant 0 : index
    %c0_4 = arith.constant 0 : index
    %8 = vector.load %arg7[%c0, %c0_4] : memref<8x128xf32, #tpu.memory_space<vmem>>, vector<8x128xf32>
    %c0_5 = arith.constant 0 : index
    %c0_6 = arith.constant 0 : index
    %9 = vector.load %arg3[%c0_5, %c0_6] : memref<8x512xbf16, #tpu.memory_space<vmem>>, vector<8x512xbf16>
    %c0_7 = arith.constant 0 : index
    %c0_8 = arith.constant 0 : index
    %10 = vector.load %arg4[%c0_7, %c0_8] : memref<512x128xbf16, #tpu.memory_space<vmem>>, vector<512x128xbf16>
    %cst = arith.constant dense<0.000000e+00> : vector<8x128xf32>
    %11 = tpu.matmul %9, %10, %cst {dimension_numbers = #tpu.dot_dimension_numbers<[1], [0], [0], [1], [0, 0, 1, 1], [], []>} : vector<8x512xbf16>, vector<512x128xbf16>, vector<8x128xf32> -> vector<8x128xf32>
    %12 = arith.addf %8, %11 : vector<8x128xf32>
    %c0_9 = arith.constant 0 : index
    %c0_10 = arith.constant 0 : index
    %13 = vector.load %arg7[%c0_9, %c0_10] : memref<8x128xf32, #tpu.memory_space<vmem>>, vector<8x128xf32>
    tpu.vector_store %arg7[%c0_9, %c0_10], %12 {strides = array<i32>} : memref<8x128xf32, #tpu.memory_space<vmem>>, vector<8x128xf32>,
    %c0_i32_11 = arith.constant 0 : i32
    %14 = arith.cmpi eq, %arg2, %c0_i32_11 : i32
    %15 = arith.extui %14 : i1 to i32
    %c0_i32_12 = arith.constant 0 : i32
    %16 = arith.cmpi ne, %15, %c0_i32_12 : i32
    scf.if %16 {
      %c0_13 = arith.constant 0 : index
      %c0_14 = arith.constant 0 : index
      %17 = vector.load %arg7[%c0_13, %c0_14] : memref<8x128xf32, #tpu.memory_space<vmem>>, vector<8x128xf32>
      %c0_15 = arith.constant 0 : index
      %c0_16 = arith.constant 0 : index
      %18 = vector.load %arg5[%c0_15, %c0_16] : memref<8x128xf32, #tpu.memory_space<vmem>>, vector<8x128xf32>
      tpu.vector_store %arg5[%c0_15, %c0_16], %17 {strides = array<i32>} : memref<8x128xf32, #tpu.memory_space<vmem>>, vector<8x128xf32>,
      %cst_17 = arith.constant dense<0.000000e+00> : vector<128xf32>
      %19 = vector.multi_reduction <add>, %17, %cst_17 [0] : vector<8x128xf32> to vector<128xf32>
      %20 = vector.shape_cast %19 : vector<128xf32> to vector<1x128xf32>
      %21 = arith.mulf %17, %17 : vector<8x128xf32>
      %cst_18 = arith.constant dense<0.000000e+00> : vector<128xf32>
      %22 = vector.multi_reduction <add>, %21, %cst_18 [0] : vector<8x128xf32> to vector<128xf32>
      %23 = vector.shape_cast %22 : vector<128xf32> to vector<1x128xf32>
      %24 = tpu.iota {dimensions = array<i32: 0>} : vector<8x128xi32>
      %c0_19 = arith.constant 0 : index
      %c0_20 = arith.constant 0 : index
      %25 = vector.load %arg6[%c0_19, %c0_20] : memref<8x128xf32, #tpu.memory_space<vmem>>, vector<8x128xf32>
      %c0_i32_21 = arith.constant 0 : i32
      %26 = vector.broadcast %c0_i32_21 : i32 to vector<8x128xi32>
      %27 = arith.cmpi eq, %24, %26 : vector<8x128xi32>
      %c1_i32 = arith.constant 1 : i32
      %28 = vector.broadcast %c1_i32 : i32 to vector<8x128xi32>
      %29 = arith.cmpi eq, %24, %28 : vector<8x128xi32>
      %cst_22 = arith.constant 0.000000e+00 : f32
      %30 = vector.shape_cast %23 : vector<1x128xf32> to vector<1x128xf32>
      %31 = vector.broadcast %30 : vector<1x128xf32> to vector<8x128xf32>
      %32 = vector.broadcast %cst_22 : f32 to vector<8x128xf32>
      %33 = arith.select %29, %31, %32 : vector<8x128xi1>, vector<8x128xf32>
      %34 = vector.shape_cast %20 : vector<1x128xf32> to vector<1x128xf32>
      %35 = vector.broadcast %34 : vector<1x128xf32> to vector<8x128xf32>
      %36 = arith.select %27, %35, %33 : vector<8x128xi1>, vector<8x128xf32>
      %37 = arith.addf %25, %36 : vector<8x128xf32>
      %c0_23 = arith.constant 0 : index
      %c0_24 = arith.constant 0 : index
      %38 = vector.load %arg6[%c0_23, %c0_24] : memref<8x128xf32, #tpu.memory_space<vmem>>, vector<8x128xf32>
      tpu.vector_store %arg6[%c0_23, %c0_24], %37 {strides = array<i32>} : memref<8x128xf32, #tpu.memory_space<vmem>>, vector<8x128xf32>,
    } else {
    }
    return
  }
  func.func @transform_0(%arg0: i32, %arg1: i32, %arg2: i32) -> (i32, i32) {
    %c0_i32 = arith.constant 0 : i32
    return %arg1, %arg2 : i32, i32
  }
  func.func @transform_1(%arg0: i32, %arg1: i32, %arg2: i32) -> (i32, i32) {
    %c0_i32 = arith.constant 0 : i32
    return %arg2, %arg0 : i32, i32
  }
  func.func @transform_2(%arg0: i32, %arg1: i32, %arg2: i32) -> (i32, i32) {
    %c0_i32 = arith.constant 0 : i32
    return %arg1, %arg0 : i32, i32
  }
  func.func @transform_3(%arg0: i32, %arg1: i32, %arg2: i32) -> (i32, i32) {
    %c0_i32 = arith.constant 0 : i32
    %c0_i32_0 = arith.constant 0 : i32
    return %c0_i32, %arg0 : i32, i32
  }
}

module attributes {stable_mosaic.version = 11 : i64} {
  func.func @_mm_bn_stats_kernel(%arg0: i32, %arg1: i32, %arg2: i32, %arg3: memref<32x256xbf16, #tpu.memory_space<vmem>>, %arg4: memref<256x128xbf16, #tpu.memory_space<vmem>>, %arg5: memref<32x128xf32, #tpu.memory_space<vmem>>, %arg6: memref<8x128xf32, #tpu.memory_space<vmem>>, %arg7: memref<32x128xf32, #tpu.memory_space<vmem>>) attributes {dimension_semantics = [#tpu.dimension_semantics<parallel>, #tpu.dimension_semantics<arbitrary>, #tpu.dimension_semantics<arbitrary>], iteration_bounds = array<i64: 1, 1, 1>, scalar_prefetch = 0 : i64, scratch_operands = 1 : i64, tpu.core_type = #tpu.core_type<tc>, window_params = [{transform_indices = @transform_0, window_bounds = array<i64: 32, 256>}, {transform_indices = @transform_1, window_bounds = array<i64: 256, 128>}, {transform_indices = @transform_2, window_bounds = array<i64: 32, 128>}, {transform_indices = @transform_3, window_bounds = array<i64: 8, 128>}]} {
    %c0_i32 = arith.constant 0 : i32
    %0 = arith.cmpi eq, %arg2, %c0_i32 : i32
    %1 = arith.extui %0 : i1 to i32
    %c0_i32_0 = arith.constant 0 : i32
    %2 = arith.cmpi ne, %1, %c0_i32_0 : i32
    scf.if %2 {
      %cst_13 = arith.constant 0.000000e+00 : f32
      %17 = vector.broadcast %cst_13 : f32 to vector<32x128xf32>
      %c0_14 = arith.constant 0 : index
      %c0_15 = arith.constant 0 : index
      %18 = vector.load %arg7[%c0_14, %c0_15] : memref<32x128xf32, #tpu.memory_space<vmem>>, vector<32x128xf32>
      tpu.vector_store %arg7[%c0_14, %c0_15], %17 {strides = array<i32>} : memref<32x128xf32, #tpu.memory_space<vmem>>, vector<32x128xf32>,
    } else {
    }
    %c0_i32_1 = arith.constant 0 : i32
    %3 = arith.cmpi eq, %arg1, %c0_i32_1 : i32
    %c0_i32_2 = arith.constant 0 : i32
    %4 = arith.cmpi eq, %arg2, %c0_i32_2 : i32
    %5 = arith.andi %3, %4 : i1
    %6 = arith.extui %5 : i1 to i32
    %c0_i32_3 = arith.constant 0 : i32
    %7 = arith.cmpi ne, %6, %c0_i32_3 : i32
    scf.if %7 {
      %cst_13 = arith.constant 0.000000e+00 : f32
      %17 = vector.broadcast %cst_13 : f32 to vector<8x128xf32>
      %c0_14 = arith.constant 0 : index
      %c0_15 = arith.constant 0 : index
      %18 = vector.load %arg6[%c0_14, %c0_15] : memref<8x128xf32, #tpu.memory_space<vmem>>, vector<8x128xf32>
      tpu.vector_store %arg6[%c0_14, %c0_15], %17 {strides = array<i32>} : memref<8x128xf32, #tpu.memory_space<vmem>>, vector<8x128xf32>,
    } else {
    }
    %c0 = arith.constant 0 : index
    %c0_4 = arith.constant 0 : index
    %8 = vector.load %arg7[%c0, %c0_4] : memref<32x128xf32, #tpu.memory_space<vmem>>, vector<32x128xf32>
    %c0_5 = arith.constant 0 : index
    %c0_6 = arith.constant 0 : index
    %9 = vector.load %arg3[%c0_5, %c0_6] : memref<32x256xbf16, #tpu.memory_space<vmem>>, vector<32x256xbf16>
    %c0_7 = arith.constant 0 : index
    %c0_8 = arith.constant 0 : index
    %10 = vector.load %arg4[%c0_7, %c0_8] : memref<256x128xbf16, #tpu.memory_space<vmem>>, vector<256x128xbf16>
    %cst = arith.constant dense<0.000000e+00> : vector<32x128xf32>
    %11 = tpu.matmul %9, %10, %cst {dimension_numbers = #tpu.dot_dimension_numbers<[1], [0], [0], [1], [0, 0, 1, 1], [], []>} : vector<32x256xbf16>, vector<256x128xbf16>, vector<32x128xf32> -> vector<32x128xf32>
    %12 = arith.addf %8, %11 : vector<32x128xf32>
    %c0_9 = arith.constant 0 : index
    %c0_10 = arith.constant 0 : index
    %13 = vector.load %arg7[%c0_9, %c0_10] : memref<32x128xf32, #tpu.memory_space<vmem>>, vector<32x128xf32>
    tpu.vector_store %arg7[%c0_9, %c0_10], %12 {strides = array<i32>} : memref<32x128xf32, #tpu.memory_space<vmem>>, vector<32x128xf32>,
    %c0_i32_11 = arith.constant 0 : i32
    %14 = arith.cmpi eq, %arg2, %c0_i32_11 : i32
    %15 = arith.extui %14 : i1 to i32
    %c0_i32_12 = arith.constant 0 : i32
    %16 = arith.cmpi ne, %15, %c0_i32_12 : i32
    scf.if %16 {
      %c0_13 = arith.constant 0 : index
      %c0_14 = arith.constant 0 : index
      %17 = vector.load %arg7[%c0_13, %c0_14] : memref<32x128xf32, #tpu.memory_space<vmem>>, vector<32x128xf32>
      %c0_15 = arith.constant 0 : index
      %c0_16 = arith.constant 0 : index
      %18 = vector.load %arg5[%c0_15, %c0_16] : memref<32x128xf32, #tpu.memory_space<vmem>>, vector<32x128xf32>
      tpu.vector_store %arg5[%c0_15, %c0_16], %17 {strides = array<i32>} : memref<32x128xf32, #tpu.memory_space<vmem>>, vector<32x128xf32>,
      %cst_17 = arith.constant dense<0.000000e+00> : vector<128xf32>
      %19 = vector.multi_reduction <add>, %17, %cst_17 [0] : vector<32x128xf32> to vector<128xf32>
      %20 = vector.shape_cast %19 : vector<128xf32> to vector<1x128xf32>
      %21 = arith.mulf %17, %17 : vector<32x128xf32>
      %cst_18 = arith.constant dense<0.000000e+00> : vector<128xf32>
      %22 = vector.multi_reduction <add>, %21, %cst_18 [0] : vector<32x128xf32> to vector<128xf32>
      %23 = vector.shape_cast %22 : vector<128xf32> to vector<1x128xf32>
      %24 = tpu.iota {dimensions = array<i32: 0>} : vector<8x128xi32>
      %c0_19 = arith.constant 0 : index
      %c0_20 = arith.constant 0 : index
      %25 = vector.load %arg6[%c0_19, %c0_20] : memref<8x128xf32, #tpu.memory_space<vmem>>, vector<8x128xf32>
      %c0_i32_21 = arith.constant 0 : i32
      %26 = vector.broadcast %c0_i32_21 : i32 to vector<8x128xi32>
      %27 = arith.cmpi eq, %24, %26 : vector<8x128xi32>
      %c1_i32 = arith.constant 1 : i32
      %28 = vector.broadcast %c1_i32 : i32 to vector<8x128xi32>
      %29 = arith.cmpi eq, %24, %28 : vector<8x128xi32>
      %cst_22 = arith.constant 0.000000e+00 : f32
      %30 = vector.shape_cast %23 : vector<1x128xf32> to vector<1x128xf32>
      %31 = vector.broadcast %30 : vector<1x128xf32> to vector<8x128xf32>
      %32 = vector.broadcast %cst_22 : f32 to vector<8x128xf32>
      %33 = arith.select %29, %31, %32 : vector<8x128xi1>, vector<8x128xf32>
      %34 = vector.shape_cast %20 : vector<1x128xf32> to vector<1x128xf32>
      %35 = vector.broadcast %34 : vector<1x128xf32> to vector<8x128xf32>
      %36 = arith.select %27, %35, %33 : vector<8x128xi1>, vector<8x128xf32>
      %37 = arith.addf %25, %36 : vector<8x128xf32>
      %c0_23 = arith.constant 0 : index
      %c0_24 = arith.constant 0 : index
      %38 = vector.load %arg6[%c0_23, %c0_24] : memref<8x128xf32, #tpu.memory_space<vmem>>, vector<8x128xf32>
      tpu.vector_store %arg6[%c0_23, %c0_24], %37 {strides = array<i32>} : memref<8x128xf32, #tpu.memory_space<vmem>>, vector<8x128xf32>,
    } else {
    }
    return
  }
  func.func @transform_0(%arg0: i32, %arg1: i32, %arg2: i32) -> (i32, i32) {
    %c0_i32 = arith.constant 0 : i32
    return %arg1, %arg2 : i32, i32
  }
  func.func @transform_1(%arg0: i32, %arg1: i32, %arg2: i32) -> (i32, i32) {
    %c0_i32 = arith.constant 0 : i32
    return %arg2, %arg0 : i32, i32
  }
  func.func @transform_2(%arg0: i32, %arg1: i32, %arg2: i32) -> (i32, i32) {
    %c0_i32 = arith.constant 0 : i32
    return %arg1, %arg0 : i32, i32
  }
  func.func @transform_3(%arg0: i32, %arg1: i32, %arg2: i32) -> (i32, i32) {
    %c0_i32 = arith.constant 0 : i32
    %c0_i32_0 = arith.constant 0 : i32
    return %c0_i32, %arg0 : i32, i32
  }
}

module attributes {stable_mosaic.version = 11 : i64} {
  func.func @_mm_tanh_kernel(%arg0: i32, %arg1: i32, %arg2: i32, %arg3: memref<512x128xbf16, #tpu.memory_space<vmem>>, %arg4: memref<128x128xbf16, #tpu.memory_space<vmem>>, %arg5: memref<512x128xf32, #tpu.memory_space<vmem>>, %arg6: memref<512x128xf32, #tpu.memory_space<vmem>>) attributes {dimension_semantics = [#tpu.dimension_semantics<parallel>, #tpu.dimension_semantics<parallel>, #tpu.dimension_semantics<arbitrary>], iteration_bounds = array<i64: 1, 1, 1>, scalar_prefetch = 0 : i64, scratch_operands = 1 : i64, tpu.core_type = #tpu.core_type<tc>, window_params = [{transform_indices = @transform_0, window_bounds = array<i64: 512, 128>}, {transform_indices = @transform_1, window_bounds = array<i64: 128, 128>}, {transform_indices = @transform_2, window_bounds = array<i64: 512, 128>}]} {
    %c0_i32 = arith.constant 0 : i32
    %0 = arith.cmpi eq, %arg2, %c0_i32 : i32
    %1 = arith.extui %0 : i1 to i32
    %c0_i32_0 = arith.constant 0 : i32
    %2 = arith.cmpi ne, %1, %c0_i32_0 : i32
    scf.if %2 {
      %cst_10 = arith.constant 0.000000e+00 : f32
      %12 = vector.broadcast %cst_10 : f32 to vector<512x128xf32>
      %c0_11 = arith.constant 0 : index
      %c0_12 = arith.constant 0 : index
      %13 = vector.load %arg6[%c0_11, %c0_12] : memref<512x128xf32, #tpu.memory_space<vmem>>, vector<512x128xf32>
      tpu.vector_store %arg6[%c0_11, %c0_12], %12 {strides = array<i32>} : memref<512x128xf32, #tpu.memory_space<vmem>>, vector<512x128xf32>,
    } else {
    }
    %c0 = arith.constant 0 : index
    %c0_1 = arith.constant 0 : index
    %3 = vector.load %arg6[%c0, %c0_1] : memref<512x128xf32, #tpu.memory_space<vmem>>, vector<512x128xf32>
    %c0_2 = arith.constant 0 : index
    %c0_3 = arith.constant 0 : index
    %4 = vector.load %arg3[%c0_2, %c0_3] : memref<512x128xbf16, #tpu.memory_space<vmem>>, vector<512x128xbf16>
    %c0_4 = arith.constant 0 : index
    %c0_5 = arith.constant 0 : index
    %5 = vector.load %arg4[%c0_4, %c0_5] : memref<128x128xbf16, #tpu.memory_space<vmem>>, vector<128x128xbf16>
    %cst = arith.constant dense<0.000000e+00> : vector<512x128xf32>
    %6 = tpu.matmul %4, %5, %cst {dimension_numbers = #tpu.dot_dimension_numbers<[1], [0], [0], [1], [0, 0, 1, 1], [], []>} : vector<512x128xbf16>, vector<128x128xbf16>, vector<512x128xf32> -> vector<512x128xf32>
    %7 = arith.addf %3, %6 : vector<512x128xf32>
    %c0_6 = arith.constant 0 : index
    %c0_7 = arith.constant 0 : index
    %8 = vector.load %arg6[%c0_6, %c0_7] : memref<512x128xf32, #tpu.memory_space<vmem>>, vector<512x128xf32>
    tpu.vector_store %arg6[%c0_6, %c0_7], %7 {strides = array<i32>} : memref<512x128xf32, #tpu.memory_space<vmem>>, vector<512x128xf32>,
    %c0_i32_8 = arith.constant 0 : i32
    %9 = arith.cmpi eq, %arg2, %c0_i32_8 : i32
    %10 = arith.extui %9 : i1 to i32
    %c0_i32_9 = arith.constant 0 : i32
    %11 = arith.cmpi ne, %10, %c0_i32_9 : i32
    scf.if %11 {
      %c0_10 = arith.constant 0 : index
      %c0_11 = arith.constant 0 : index
      %12 = vector.load %arg6[%c0_10, %c0_11] : memref<512x128xf32, #tpu.memory_space<vmem>>, vector<512x128xf32>
      %13 = math.tanh %12 : vector<512x128xf32>
      %c0_12 = arith.constant 0 : index
      %c0_13 = arith.constant 0 : index
      %14 = vector.load %arg5[%c0_12, %c0_13] : memref<512x128xf32, #tpu.memory_space<vmem>>, vector<512x128xf32>
      tpu.vector_store %arg5[%c0_12, %c0_13], %13 {strides = array<i32>} : memref<512x128xf32, #tpu.memory_space<vmem>>, vector<512x128xf32>,
    } else {
    }
    return
  }
  func.func @transform_0(%arg0: i32, %arg1: i32, %arg2: i32) -> (i32, i32) {
    %c0_i32 = arith.constant 0 : i32
    return %arg1, %arg2 : i32, i32
  }
  func.func @transform_1(%arg0: i32, %arg1: i32, %arg2: i32) -> (i32, i32) {
    %c0_i32 = arith.constant 0 : i32
    return %arg2, %arg0 : i32, i32
  }
  func.func @transform_2(%arg0: i32, %arg1: i32, %arg2: i32) -> (i32, i32) {
    %c0_i32 = arith.constant 0 : i32
    return %arg1, %arg0 : i32, i32
  }
}

</mosaic_0001>

<bundles_post_ra>
// kernel: generator_forward.32
= control target key start
LH: loop header
LB: loop body
LE: loop exit
PB: predicated region body
PF: predicated region fallthrough
CT: control target
= control target key end

     0   :  { %s423_s0 = inlined_call_operand.vmem [shape: f32[128,128], index: 0, kind: input, shape index: {}]   ;;  %s424_s1 = inlined_call_operand.vmem [shape: f32[1,128], index: 1, kind: input, shape index: {}]   ;;  %s425_s2 = inlined_call_operand.vmem [shape: f32[1,128], index: 2, kind: input, shape index: {}]   ;;  %s426_s3 = inlined_call_operand.vmem [shape: bf16[128,128], index: 3, kind: output, shape index: {}]  }
   0x1   :  { %v14_v0 = vld [vmem:[%s423_s0] sm:$0xff]  ;;  %v15_v1 = vld [vmem:[%s423_s0 + $0x8] sm:$0xff]  ;;  %v16_v6 = vld [vmem:[%s423_s0 + $0x10] sm:$0xff] }
   0x2   :  { %v318_v2 = vld [vmem:[%s424_s1] ss:$0 sm:$0xff]  ;;  %v17_v7 = vld [vmem:[%s423_s0 + $0x18] sm:$0xff]  ;;  %v19_v11 = vld [vmem:[%s423_s0 + $0x28] sm:$0xff] }
   0x3   :  { %v37_v3 = vmul.f32 %v318_v2, %v14_v0  ;;  %v38_v4 = vmul.f32 %v318_v2, %v15_v1  ;;  %v325_v5 = vld [vmem:[%s425_s2] ss:$0 sm:$0xff]  ;;  %v39_v8 = vmul.f32 %v318_v2, %v16_v6  ;;  %v40_v9 = vmul.f32 %v318_v2, %v17_v7  ;;  %v20_v12 = vld [vmem:[%s423_s0 + $0x30] sm:$0xff]  ;;  %v21_v17 = vld [vmem:[%s423_s0 + $0x38] sm:$0xff] }
   0x4   :  { %v18_v10 = vld [vmem:[%s423_s0 + $0x20] sm:$0xff]  ;;  %v42_v16 = vmul.f32 %v318_v2, %v19_v11  ;;  %v43_v20 = vmul.f32 %v318_v2, %v20_v12  ;;  %v44_v21 = vmul.f32 %v318_v2, %v21_v17  ;;  %v23_v35 = vld [vmem:[%s423_s0 + $0x48] sm:$0xff]  ;;  %v24_v36 = vld [vmem:[%s423_s0 + $0x50] sm:$0xff] }
   0x5   :  { %v60_v13 = vadd.f32 %v325_v5, %v37_v3  ;;  %v61_v14 = vadd.f32 %v325_v5, %v38_v4  ;;  %v41_v15 = vmul.f32 %v318_v2, %v18_v10  ;;  %v62_v18 = vadd.f32 %v325_v5, %v39_v8  ;;  %v22_v34 = vld [vmem:[%s423_s0 + $0x40] sm:$0xff]  ;;  %v25_v42 = vld [vmem:[%s423_s0 + $0x58] sm:$0xff]  ;;  %v27_v48 = vld [vmem:[%s423_s0 + $0x68] sm:$0xff] }
   0x6   :  { %v63_v19 = vadd.f32 %v325_v5, %v40_v9  ;;  %v65_v29 = vadd.f32 %v325_v5, %v42_v16  ;;  %v66_v33 = vadd.f32 %v325_v5, %v43_v20  ;;  %v67_v40 = vadd.f32 %v325_v5, %v44_v21  ;;  %v26_v47 = vld [vmem:[%s423_s0 + $0x60] sm:$0xff]  ;;  %v28_v60 = vld [vmem:[%s423_s0 + $0x70] sm:$0xff]  ;;  %v29_v7 = vld [vmem:[%s423_s0 + $0x78] sm:$0xff] }
   0x7   :  { %vm76_vm0 = vcmp.ge.f32.partialorder %v60_v13, 0.0  ;;  %vm77_vm1 = vcmp.ge.f32.partialorder %v61_v14, 0.0  ;;  %v92_v22 = vmul.f32 0.05, %v60_v13  ;;  %v93_v23 = vmul.f32 0.05, %v61_v14 }
   0x8   :  { %vm78_vm2 = vcmp.ge.f32.partialorder %v62_v18, 0.0  ;;  %vm79_vm3 = vcmp.ge.f32.partialorder %v63_v19, 0.0  ;;  %v94_v24 = vmul.f32 0.05, %v62_v18  ;;  %v95_v25 = vmul.f32 0.05, %v63_v19 }
   0x9   :  { %v108_v26 = vsel %vm76_vm0, %v60_v13, %v92_v22  ;;  %v109_v27 = vsel %vm77_vm1, %v61_v14, %v93_v23  ;;  %v64_v28 = vadd.f32 %v325_v5, %v41_v15  ;;  %vm81_vm5 = vcmp.ge.f32.partialorder %v65_v29, 0.0 }
   0xa   :  { %v245_v30 = vpack.c.bf16 %v109_v27, %v108_v26  ;;  %v110_v31 = vsel %vm78_vm2, %v62_v18, %v94_v24  ;;  %v111_v32 = vsel %vm79_vm3, %v63_v19, %v95_v25  ;;  %v97_v39 = vmul.f32 0.05, %v65_v29 }
   0xb   :  { %v250_v37 = vpack.c.bf16 %v111_v32, %v110_v31  ;;  %vm80_vm4 = vcmp.ge.f32.partialorder %v64_v28, 0.0  ;;  %v96_v38 = vmul.f32 0.05, %v64_v28  ;;  %vm82_vm6 = vcmp.ge.f32.partialorder %v66_v33, 0.0 }
   0xc   :  { %246 = vst [vmem:[%s426_s3] sm:$0xff] %v245_v30   ;;  %v98_v41 = vmul.f32 0.05, %v66_v33  ;;  %v45_v44 = vmul.f32 %v318_v2, %v22_v34  ;;  %v46_v45 = vmul.f32 %v318_v2, %v23_v35  ;;  %v47_v46 = vmul.f32 %v318_v2, %v24_v36 }
   0xd   :  { %282 = vst [vmem:[%s426_s3 + $0x8] sm:$0xff] %v250_v37   ;;  %v112_v43 = vsel %vm80_vm4, %v64_v28, %v96_v38  ;;  %v113_v49 = vsel %vm81_vm5, %v65_v29, %v97_v39  ;;  %vm83_vm7 = vcmp.ge.f32.partialorder %v67_v40, 0.0  ;;  %v99_v50 = vmul.f32 0.05, %v67_v40 }
   0xe   :  { %v114_v51 = vsel %vm82_vm6, %v66_v33, %v98_v41  ;;  %v255_v52 = vpack.c.bf16 %v113_v49, %v112_v43  ;;  %v68_v53 = vadd.f32 %v325_v5, %v45_v44  ;;  %v69_v54 = vadd.f32 %v325_v5, %v46_v45 }
   0xf   :  { %v48_v55 = vmul.f32 %v318_v2, %v25_v42  ;;  %v115_v56 = vsel %vm83_vm7, %v67_v40, %v99_v50  ;;  %v70_v57 = vadd.f32 %v325_v5, %v47_v46  ;;  %v49_v58 = vmul.f32 %v318_v2, %v26_v47 }
  0x10   :  { %v50_v59 = vmul.f32 %v318_v2, %v27_v48  ;;  %283 = vst [vmem:[%s426_s3 + $0x10] sm:$0xff] %v255_v52   ;;  %v260_v61 = vpack.c.bf16 %v115_v56, %v114_v51  ;;  %vm84_vm8 = vcmp.ge.f32.partialorder %v68_v53, 0.0  ;;  %vm85_vm9 = vcmp.ge.f32.partialorder %v69_v54, 0.0 }
  0x11   :  { %v100_v62 = vmul.f32 0.05, %v68_v53  ;;  %v101_v63 = vmul.f32 0.05, %v69_v54  ;;  %v71_v0 = vadd.f32 %v325_v5, %v48_v55  ;;  %vm86_vm10 = vcmp.ge.f32.partialorder %v70_v57, 0.0 }
  0x12   :  { %v102_v1 = vmul.f32 0.05, %v70_v57  ;;  %284 = vst [vmem:[%s426_s3 + $0x18] sm:$0xff] %v260_v61   ;;  %v72_v4 = vadd.f32 %v325_v5, %v49_v58  ;;  %v73_v6 = vadd.f32 %v325_v5, %v50_v59  ;;  %v51_v8 = vmul.f32 %v318_v2, %v28_v60 }
  0x13   :  { %v116_v3 = vsel %vm84_vm8, %v68_v53, %v100_v62  ;;  %v117_v9 = vsel %vm85_vm9, %v69_v54, %v101_v63  ;;  %vm87_vm11 = vcmp.ge.f32.partialorder %v71_v0, 0.0  ;;  %v103_v10 = vmul.f32 0.05, %v71_v0 }
  0x14   :  { %v118_v11 = vsel %vm86_vm10, %v70_v57, %v102_v1  ;;  %v265_v12 = vpack.c.bf16 %v117_v9, %v116_v3  ;;  %vm88_vm12 = vcmp.ge.f32.partialorder %v72_v4, 0.0  ;;  %vm89_vm13 = vcmp.ge.f32.partialorder %v73_v6, 0.0 }
  0x15   :  { %v104_v13 = vmul.f32 0.05, %v72_v4  ;;  %v119_v14 = vsel %vm87_vm11, %v71_v0, %v103_v10  ;;  %v105_v15 = vmul.f32 0.05, %v73_v6  ;;  %v52_v16 = vmul.f32 %v318_v2, %v29_v7 }
  0x16   :  { %v74_v17 = vadd.f32 %v325_v5, %v51_v8  ;;  %285 = vst [vmem:[%s426_s3 + $0x20] sm:$0xff] %v265_v12   ;;  %v270_v18 = vpack.c.bf16 %v119_v14, %v118_v11 }
  0x17   :  { %v120_v19 = vsel %vm88_vm12, %v72_v4, %v104_v13  ;;  %v121_v20 = vsel %vm89_vm13, %v73_v6, %v105_v15  ;;  %v75_v21 = vadd.f32 %v325_v5, %v52_v16 }
  0x18   :  { %vm90_vm14 = vcmp.ge.f32.partialorder %v74_v17, 0.0  ;;  %v106_v22 = vmul.f32 0.05, %v74_v17  ;;  %286 = vst [vmem:[%s426_s3 + $0x28] sm:$0xff] %v270_v18   ;;  %v275_v23 = vpack.c.bf16 %v121_v20, %v120_v19 }
  0x19   :  { %vm91_vm15 = vcmp.ge.f32.partialorder %v75_v21, 0.0  ;;  %v107_v2 = vmul.f32 0.05, %v75_v21 }
  0x1a   :  { %v122_v24 = vsel %vm90_vm14, %v74_v17, %v106_v22  ;;  %287 = vst [vmem:[%s426_s3 + $0x30] sm:$0xff] %v275_v23  }
  0x1b   :  { %v123_v25 = vsel %vm91_vm15, %v75_v21, %v107_v2 }
  0x1c   :  { %v280_v26 = vpack.c.bf16 %v123_v25, %v122_v24 }
  0x1e   :  { %288 = vst [vmem:[%s426_s3 + $0x38] sm:$0xff] %v280_v26  }

// kernel: generator_forward.31
= control target key start
LH: loop header
LB: loop body
LE: loop exit
PB: predicated region body
PF: predicated region fallthrough
CT: control target
= control target key end

     0   :  { %s639_s1 = inlined_call_operand.vmem [shape: bf16[128,128], index: 1, kind: input, shape index: {}]   ;;  %s640_s0 = inlined_call_operand.vmem [shape: bf16[128,128], index: 0, kind: input, shape index: {}]   ;;  %s641_s2 = inlined_call_operand.vmem [shape: f32[128,128], index: 2, kind: output, shape index: {0}]   ;;  %s642_s3 = inlined_call_operand.vmem [shape: f32[8,128], index: 3, kind: output, shape index: {1}]  }
   0x1   :  { %v504_v0 = vld [vmem:[%s639_s1 + $0x38] sm:$0xff]   ;;  %v505_v1 = vld [vmem:[%s639_s1 + $0x30] sm:$0xff]   ;;  %v506_v2 = vld [vmem:[%s639_s1 + $0x28] sm:$0xff]  }
   0x2   :  { %455 = vmatprep.subr.bf16.mxu0 %v504_v0  ;;  %487 = vmatprep.subr.bf16.mxu1 %v504_v0  ;;  %v507_v3 = vld [vmem:[%s639_s1 + $0x20] sm:$0xff]   ;;  %v508_v5 = vld [vmem:[%s639_s1 + $0x18] sm:$0xff]   ;;  %v509_v7 = vld [vmem:[%s639_s1 + $0x10] sm:$0xff]  }
   0x3   :  { %456 = vmatpush3.bf16.msra.mxu0 %v504_v0  ;;  %495 = vmatpush3.bf16.msra.mxu1 %v504_v0  ;;  %v512_v4 = vld [vmem:[%s640_s0] sm:$0xff]   ;;  %v510_v8 = vld [vmem:[%s639_s1 + $0x8] sm:$0xff]   ;;  %v514_v12 = vld [vmem:[%s640_s0 + $0x10] sm:$0xff]  }
   0x4   :  { %457 = vmatprep.subr.bf16.mxu0 %v505_v1  ;;  %488 = vmatprep.subr.bf16.mxu1 %v505_v1  ;;  %v516_v6 = vld [vmem:[%s640_s0 + $0x20] sm:$0xff]   ;;  %v513_v10 = vld [vmem:[%s640_s0 + $0x8] sm:$0xff]   ;;  %v518_v13 = vld [vmem:[%s640_s0 + $0x30] sm:$0xff]  }
   0x5   :  { %471 = vmatprep.mubr.bf16.mxu0 %v512_v4  ;;  %479 = vmatprep.mubr.bf16.mxu1 %v516_v6  ;;  %v511_v9 = vld [vmem:[%s639_s1] sm:$0xff]   ;;  %v517_v11 = vld [vmem:[%s640_s0 + $0x28] sm:$0xff]   ;;  %v515_v14 = vld [vmem:[%s640_s0 + $0x18] sm:$0xff]  }
   0x6   :  { %v519_v15 = vld [vmem:[%s640_s0 + $0x38] sm:$0xff]  }
   0x7   :  { %458 = vmatpush3.bf16.msra.mxu0 %v505_v1  ;;  %496 = vmatpush3.bf16.msra.mxu1 %v505_v1 }
   0x8   :  { %459 = vmatprep.subr.bf16.mxu0 %v506_v2  ;;  %489 = vmatprep.subr.bf16.mxu1 %v506_v2 }
   0xb   :  { %460 = vmatpush3.bf16.msra.mxu0 %v506_v2  ;;  %497 = vmatpush3.bf16.msra.mxu1 %v506_v2 }
   0xc   :  { %461 = vmatprep.subr.bf16.mxu0 %v507_v3  ;;  %490 = vmatprep.subr.bf16.mxu1 %v507_v3 }
   0xf   :  { %462 = vmatpush3.bf16.msra.mxu0 %v507_v3  ;;  %498 = vmatpush3.bf16.msra.mxu1 %v507_v3 }
  0x10   :  { %463 = vmatprep.subr.bf16.mxu0 %v508_v5  ;;  %491 = vmatprep.subr.bf16.mxu1 %v508_v5 }
  0x13   :  { %464 = vmatpush3.bf16.msra.mxu0 %v508_v5  ;;  %499 = vmatpush3.bf16.msra.mxu1 %v508_v5 }
  0x14   :  { %465 = vmatprep.subr.bf16.mxu0 %v509_v7  ;;  %492 = vmatprep.subr.bf16.mxu1 %v509_v7 }
  0x17   :  { %466 = vmatpush3.bf16.msra.mxu0 %v509_v7  ;;  %500 = vmatpush3.bf16.msra.mxu1 %v509_v7 }
  0x18   :  { %467 = vmatprep.subr.bf16.mxu0 %v510_v8  ;;  %493 = vmatprep.subr.bf16.mxu1 %v510_v8 }
  0x1b   :  { %468 = vmatpush3.bf16.msra.mxu0 %v510_v8  ;;  %501 = vmatpush3.bf16.msra.mxu1 %v510_v8 }
  0x1c   :  { %469 = vmatprep.subr.bf16.mxu0 %v511_v9  ;;  %494 = vmatprep.subr.bf16.mxu1 %v511_v9 }
  0x1f   :  { %470 = vmatpush3.bf16.msra.mxu0 %v511_v9  ;;  %502 = vmatpush3.bf16.msra.mxu1 %v511_v9 }
  0x22   :  { %472 = vmatmul.mubr.bf16.vlgmr.msra.gmra.mxu0 %v513_v10  ;;  %480 = vmatmul.mubr.bf16.vlgmr.msra.gmra.mxu1 %v517_v11 }
  0x23   :  { %475 = vmatprep.mubr.bf16.mxu0 %v514_v12  ;;  %483 = vmatprep.mubr.bf16.mxu1 %v518_v13 }
  0x2a   :  { %476 = vmatmul.mubr.bf16.gmra.mxu0 %v515_v14  ;;  %484 = vmatmul.mubr.bf16.gmra.mxu1 %v519_v15 }
  0xe2   :  { %v473_v16 = vpop.f32.mrf.mxu0  ;;  %v481_v17 = vpop.f32.mrf.mxu1 }
  0xe3   :  { %334 = vst [vmem:[%s641_s2 + $0x10] sm:$0xff] %v473_v16  ;;  %342 = vst [vmem:[%s641_s2 + $0x50] sm:$0xff] %v481_v17  ;;  %v371_v29 = vmul.f32 %v473_v16, %v473_v16  ;;  %v379_v59 = vmul.f32 %v481_v17, %v481_v17 }
  0xe4   :  { %v218_v18 = vpop.f32.mrf.mxu0  ;;  %v250_v19 = vpop.f32.mrf.mxu1 }
  0xe5   :  { %332 = vst [vmem:[%s641_s2] sm:$0xff] %v218_v18  ;;  %340 = vst [vmem:[%s641_s2 + $0x40] sm:$0xff] %v250_v19  ;;  %v369_v24 = vmul.f32 %v218_v18, %v218_v18  ;;  %v377_v53 = vmul.f32 %v250_v19, %v250_v19 }
  0xe6   :  { %v474_v20 = vpop.f32.mrf.mxu0  ;;  %v482_v21 = vpop.f32.mrf.mxu1 }
  0xe7   :  { %335 = vst [vmem:[%s641_s2 + $0x18] sm:$0xff] %v474_v20  ;;  %343 = vst [vmem:[%s641_s2 + $0x58] sm:$0xff] %v482_v21  ;;  %v372_v34 = vmul.f32 %v474_v20, %v474_v20  ;;  %v380_v62 = vmul.f32 %v482_v21, %v482_v21 }
  0xe8   :  { %v221_v22 = vpop.f32.mrf.mxu0  ;;  %v253_v23 = vpop.f32.mrf.mxu1 }
  0xe9   :  { %333 = vst [vmem:[%s641_s2 + $0x8] sm:$0xff] %v221_v22  ;;  %v348_v25 = vadd.f32 %v221_v22, %v218_v18  ;;  %v370_v26 = vmul.f32 %v221_v22, %v221_v22  ;;  %341 = vst [vmem:[%s641_s2 + $0x48] sm:$0xff] %v253_v23  ;;  %v378_v57 = vmul.f32 %v253_v23, %v253_v23 }
  0xea   :  { %v477_v27 = vpop.f32.mrf.mxu0  ;;  %v485_v28 = vpop.f32.mrf.mxu1 }
  0xeb   :  { %v349_v30 = vadd.f32 %v473_v16, %v348_v25  ;;  %v385_v31 = vadd.f32 %v370_v26, %v369_v24  ;;  %338 = vst [vmem:[%s641_s2 + $0x30] sm:$0xff] %v477_v27  ;;  %346 = vst [vmem:[%s641_s2 + $0x70] sm:$0xff] %v485_v28  ;;  %v375_v47 = vmul.f32 %v477_v27, %v477_v27 }
  0xec   :  { %v234_v32 = vpop.f32.mrf.mxu0  ;;  %v266_v33 = vpop.f32.mrf.mxu1  ;;  %v383_v7 = vmul.f32 %v485_v28, %v485_v28 }
  0xed   :  { %v386_v35 = vadd.f32 %v385_v31, %v371_v29  ;;  %336 = vst [vmem:[%s641_s2 + $0x20] sm:$0xff] %v234_v32  ;;  %v350_v36 = vadd.f32 %v474_v20, %v349_v30  ;;  %344 = vst [vmem:[%s641_s2 + $0x60] sm:$0xff] %v266_v33  ;;  %v373_v40 = vmul.f32 %v234_v32, %v234_v32 }
  0xee   :  { %v478_v37 = vpop.f32.mrf.mxu0  ;;  %v486_v38 = vpop.f32.mrf.mxu1  ;;  %v381_v2 = vmul.f32 %v266_v33, %v266_v33 }
  0xef   :  { %v351_v39 = vadd.f32 %v350_v36, %v234_v32  ;;  %v387_v41 = vadd.f32 %v386_v35, %v372_v34  ;;  %339 = vst [vmem:[%s641_s2 + $0x38] sm:$0xff] %v478_v37  ;;  %347 = vst [vmem:[%s641_s2 + $0x78] sm:$0xff] %v486_v38  ;;  %v376_v50 = vmul.f32 %v478_v37, %v478_v37 }
  0xf0   :  { %v237_v42 = vpop.f32.mrf.mxu0  ;;  %v269_v43 = vpop.f32.mrf.mxu1  ;;  %v384_v10 = vmul.f32 %v486_v38, %v486_v38 }
  0xf1   :  { %v388_v44 = vadd.f32 %v387_v41, %v373_v40  ;;  %337 = vst [vmem:[%s641_s2 + $0x28] sm:$0xff] %v237_v42  ;;  %v352_v45 = vadd.f32 %v351_v39, %v237_v42  ;;  %v374_v46 = vmul.f32 %v237_v42, %v237_v42  ;;  %345 = vst [vmem:[%s641_s2 + $0x68] sm:$0xff] %v269_v43 }
  0xf2   :  { %v382_v6 = vmul.f32 %v269_v43, %v269_v43 }
  0xf3   :  { %v353_v48 = vadd.f32 %v477_v27, %v352_v45  ;;  %v389_v49 = vadd.f32 %v388_v44, %v374_v46 }
  0xf5   :  { %v354_v51 = vadd.f32 %v478_v37, %v353_v48  ;;  %v390_v52 = vadd.f32 %v389_v49, %v375_v47 }
  0xf7   :  { %v391_v54 = vadd.f32 %v390_v52, %v376_v50  ;;  %v355_v55 = vadd.f32 %v354_v51, %v250_v19 }
  0xf9   :  { %v356_v56 = vadd.f32 %v355_v55, %v253_v23  ;;  %v392_v58 = vadd.f32 %v391_v54, %v377_v53 }
  0xfb   :  { %v357_v60 = vadd.f32 %v481_v17, %v356_v56  ;;  %v393_v61 = vadd.f32 %v392_v58, %v378_v57  ;;  %v406_v17 = vlaneseq }
  0xfd   :  { %v394_v63 = vadd.f32 %v393_v61, %v379_v59  ;;  %v358_v0 = vadd.f32 %v482_v21, %v357_v60  ;;  %v407_v22 = vshrl.u32 %v406_v17, 7 }
  0xff   :  { %v359_v1 = vadd.f32 %v358_v0, %v266_v33  ;;  %v395_v3 = vadd.f32 %v394_v63, %v380_v62  ;;  %vm410_vm0 = vcmp.eq.s32.totalorder %v407_v22, 1  ;;  %vm409_vm1 = vcmp.eq.s32.totalorder %v407_v22, 0 }
 0x101   :  { %v396_v4 = vadd.f32 %v395_v3, %v381_v2  ;;  %v360_v5 = vadd.f32 %v359_v1, %v269_v43 }
 0x103   :  { %v361_v8 = vadd.f32 %v485_v28, %v360_v5  ;;  %v397_v9 = vadd.f32 %v396_v4, %v382_v6 }
 0x105   :  { %v362_v11 = vadd.f32 %v486_v38, %v361_v8  ;;  %v398_v12 = vadd.f32 %v397_v9, %v383_v7 }
 0x107   :  { %v363_v13 = vrot.slane %v362_v11, 4  ;;  %v399_v14 = vadd.f32 %v398_v12, %v384_v10 }
 0x109   :  { %v364_v15 = vadd.f32 %v363_v13, %v362_v11  ;;  %v400_v16 = vrot.slane %v399_v14, 4 }
 0x10b   :  { %v365_v18 = vrot.slane %v364_v15, 2  ;;  %v401_v19 = vadd.f32 %v400_v16, %v399_v14 }
 0x10d   :  { %v366_v20 = vadd.f32 %v365_v18, %v364_v15  ;;  %v402_v21 = vrot.slane %v401_v19, 2 }
 0x10f   :  { %v403_v23 = vadd.f32 %v402_v21, %v401_v19  ;;  %v367_v24 = vrot.slane %v366_v20, 1 }
 0x111   :  { %v404_v25 = vrot.slane %v403_v23, 1  ;;  %v368_v27 = vadd.f32 %v367_v24, %v366_v20 }
 0x113   :  { %v405_v26 = vadd.f32 %v404_v25, %v403_v23 }
 0x115   :  { %v411_v28 = vsel %vm410_vm0, %v405_v26, 0.0 }
 0x116   :  { %v412_v29 = vsel %vm409_vm1, %v368_v27, %v411_v28 }
 0x117   :  { %414 = vst [vmem:[%s642_s3] sm:$0xff] %v412_v29 }

// kernel: generator_forward.34
= control target key start
LH: loop header
LB: loop body
LE: loop exit
PB: predicated region body
PF: predicated region fallthrough
CT: control target
= control target key end

     0   :  { %s141_s0 = inlined_call_operand.vmem [shape: f32[32,128], index: 0, kind: input, shape index: {}]   ;;  %s142_s1 = inlined_call_operand.vmem [shape: f32[1,128], index: 1, kind: input, shape index: {}]   ;;  %s143_s2 = inlined_call_operand.vmem [shape: f32[1,128], index: 2, kind: input, shape index: {}]   ;;  %s144_s3 = inlined_call_operand.vmem [shape: bf16[32,128], index: 3, kind: output, shape index: {}]  }
   0x1   :  { %v14_v0 = vld [vmem:[%s141_s0] sm:$0xff]  ;;  %v15_v1 = vld [vmem:[%s141_s0 + $0x8] sm:$0xff]  ;;  %v16_v6 = vld [vmem:[%s141_s0 + $0x10] sm:$0xff] }
   0x2   :  { %v76_v2 = vld [vmem:[%s142_s1] ss:$0 sm:$0xff]  ;;  %v17_v7 = vld [vmem:[%s141_s0 + $0x18] sm:$0xff] }
   0x3   :  { %v25_v3 = vmul.f32 %v76_v2, %v14_v0  ;;  %v26_v4 = vmul.f32 %v76_v2, %v15_v1  ;;  %v77_v5 = vld [vmem:[%s143_s2] ss:$0 sm:$0xff]  ;;  %v27_v8 = vmul.f32 %v76_v2, %v16_v6  ;;  %v28_v9 = vmul.f32 %v76_v2, %v17_v7 }
   0x5   :  { %v36_v10 = vadd.f32 %v77_v5, %v25_v3  ;;  %v37_v11 = vadd.f32 %v77_v5, %v26_v4  ;;  %v38_v12 = vadd.f32 %v77_v5, %v27_v8  ;;  %v39_v13 = vadd.f32 %v77_v5, %v28_v9 }
   0x7   :  { %vm40_vm0 = vcmp.ge.f32.partialorder %v36_v10, 0.0  ;;  %vm41_vm1 = vcmp.ge.f32.partialorder %v37_v11, 0.0  ;;  %v44_v14 = vmul.f32 0.05, %v36_v10  ;;  %v45_v15 = vmul.f32 0.05, %v37_v11 }
   0x8   :  { %vm42_vm2 = vcmp.ge.f32.partialorder %v38_v12, 0.0  ;;  %vm43_vm3 = vcmp.ge.f32.partialorder %v39_v13, 0.0  ;;  %v46_v16 = vmul.f32 0.05, %v38_v12  ;;  %v47_v17 = vmul.f32 0.05, %v39_v13 }
   0x9   :  { %v48_v18 = vsel %vm40_vm0, %v36_v10, %v44_v14  ;;  %v49_v19 = vsel %vm41_vm1, %v37_v11, %v45_v15 }
   0xa   :  { %v89_v20 = vpack.c.bf16 %v49_v19, %v48_v18  ;;  %v50_v21 = vsel %vm42_vm2, %v38_v12, %v46_v16  ;;  %v51_v22 = vsel %vm43_vm3, %v39_v13, %v47_v17 }
   0xb   :  { %v94_v23 = vpack.c.bf16 %v51_v22, %v50_v21 }
   0xc   :  { %90 = vst [vmem:[%s144_s3] sm:$0xff] %v89_v20  }
   0xd   :  { %96 = vst [vmem:[%s144_s3 + $0x8] sm:$0xff] %v94_v23  }

// kernel: generator_forward.33
= control target key start
LH: loop header
LB: loop body
LE: loop exit
PB: predicated region body
PF: predicated region fallthrough
CT: control target
= control target key end

     0   :  { %v202_v27 = vlaneseq  ;;  %s335_s1 = inlined_call_operand.vmem [shape: bf16[128,128], index: 1, kind: input, shape index: {}]   ;;  %s336_s0 = inlined_call_operand.vmem [shape: bf16[32,128], index: 0, kind: input, shape index: {}]   ;;  %s337_s2 = inlined_call_operand.vmem [shape: f32[32,128], index: 2, kind: output, shape index: {0}]   ;;  %s338_s3 = inlined_call_operand.vmem [shape: f32[8,128], index: 3, kind: output, shape index: {1}]  }
   0x1   :  { %v260_v0 = vld [vmem:[%s335_s1 + $0x38] sm:$0xff]   ;;  %v261_v1 = vld [vmem:[%s335_s1 + $0x30] sm:$0xff]   ;;  %v262_v2 = vld [vmem:[%s335_s1 + $0x28] sm:$0xff]  }
   0x2   :  { %239 = vmatprep.subr.bf16.mxu0 %v260_v0  ;;  %v263_v3 = vld [vmem:[%s335_s1 + $0x20] sm:$0xff]   ;;  %v264_v5 = vld [vmem:[%s335_s1 + $0x18] sm:$0xff]   ;;  %v265_v6 = vld [vmem:[%s335_s1 + $0x10] sm:$0xff]   ;;  %v203_v32 = vshrl.u32 %v202_v27, 7 }
   0x3   :  { %240 = vmatpush3.bf16.msra.mxu0 %v260_v0  ;;  %v268_v4 = vld [vmem:[%s336_s0] sm:$0xff]   ;;  %v266_v7 = vld [vmem:[%s335_s1 + $0x8] sm:$0xff]  }
   0x4   :  { %241 = vmatprep.subr.bf16.mxu0 %v261_v1  ;;  %255 = vmatprep.mubr.bf16.mxu0 %v268_v4  ;;  %v267_v8 = vld [vmem:[%s335_s1] sm:$0xff]   ;;  %v269_v9 = vld [vmem:[%s336_s0 + $0x8] sm:$0xff]   ;;  %vm206_vm0 = vcmp.eq.s32.totalorder %v203_v32, 1  ;;  %vm205_vm1 = vcmp.eq.s32.totalorder %v203_v32, 0 }
   0x7   :  { %242 = vmatpush3.bf16.msra.mxu0 %v261_v1 }
   0x8   :  { %243 = vmatprep.subr.bf16.mxu0 %v262_v2 }
   0xb   :  { %244 = vmatpush3.bf16.msra.mxu0 %v262_v2 }
   0xc   :  { %245 = vmatprep.subr.bf16.mxu0 %v263_v3 }
   0xf   :  { %246 = vmatpush3.bf16.msra.mxu0 %v263_v3 }
  0x10   :  { %247 = vmatprep.subr.bf16.mxu0 %v264_v5 }
  0x13   :  { %248 = vmatpush3.bf16.msra.mxu0 %v264_v5 }
  0x14   :  { %249 = vmatprep.subr.bf16.mxu0 %v265_v6 }
  0x17   :  { %250 = vmatpush3.bf16.msra.mxu0 %v265_v6 }
  0x18   :  { %251 = vmatprep.subr.bf16.mxu0 %v266_v7 }
  0x1b   :  { %252 = vmatpush3.bf16.msra.mxu0 %v266_v7 }
  0x1c   :  { %253 = vmatprep.subr.bf16.mxu0 %v267_v8 }
  0x1f   :  { %254 = vmatpush3.bf16.msra.mxu0 %v267_v8 }
  0x22   :  { %256 = vmatmul.mubr.bf16.vlgmr.msra.gmra.mxu0 %v269_v9 }
  0xe2   :  { %v257_v10 = vpop.f32.mrf.mxu0 }
  0xe3   :  { %178 = vst [vmem:[%s337_s2 + $0x10] sm:$0xff] %v257_v10  ;;  %v191_v17 = vmul.f32 %v257_v10, %v257_v10 }
  0xe4   :  { %v146_v11 = vpop.f32.mrf.mxu0 }
  0xe5   :  { %176 = vst [vmem:[%s337_s2] sm:$0xff] %v146_v11  ;;  %v189_v14 = vmul.f32 %v146_v11, %v146_v11 }
  0xe6   :  { %v258_v12 = vpop.f32.mrf.mxu0 }
  0xe7   :  { %179 = vst [vmem:[%s337_s2 + $0x18] sm:$0xff] %v258_v12  ;;  %v192_v20 = vmul.f32 %v258_v12, %v258_v12 }
  0xe8   :  { %v149_v13 = vpop.f32.mrf.mxu0 }
  0xe9   :  { %177 = vst [vmem:[%s337_s2 + $0x8] sm:$0xff] %v149_v13  ;;  %v180_v15 = vadd.f32 %v149_v13, %v146_v11  ;;  %v190_v16 = vmul.f32 %v149_v13, %v149_v13 }
  0xeb   :  { %v181_v18 = vadd.f32 %v257_v10, %v180_v15  ;;  %v193_v19 = vadd.f32 %v190_v16, %v189_v14 }
  0xed   :  { %v182_v21 = vadd.f32 %v258_v12, %v181_v18  ;;  %v194_v22 = vadd.f32 %v193_v19, %v191_v17 }
  0xef   :  { %v183_v23 = vrot.slane %v182_v21, 4  ;;  %v195_v24 = vadd.f32 %v194_v22, %v192_v20 }
  0xf1   :  { %v184_v25 = vadd.f32 %v183_v23, %v182_v21  ;;  %v196_v26 = vrot.slane %v195_v24, 4 }
  0xf3   :  { %v185_v28 = vrot.slane %v184_v25, 2  ;;  %v197_v29 = vadd.f32 %v196_v26, %v195_v24 }
  0xf5   :  { %v186_v30 = vadd.f32 %v185_v28, %v184_v25  ;;  %v198_v31 = vrot.slane %v197_v29, 2 }
  0xf7   :  { %v199_v33 = vadd.f32 %v198_v31, %v197_v29  ;;  %v187_v34 = vrot.slane %v186_v30, 1 }
  0xf9   :  { %v200_v35 = vrot.slane %v199_v33, 1  ;;  %v188_v37 = vadd.f32 %v187_v34, %v186_v30 }
  0xfb   :  { %v201_v36 = vadd.f32 %v200_v35, %v199_v33 }
  0xfd   :  { %v207_v38 = vsel %vm206_vm0, %v201_v36, 0.0 }
  0xfe   :  { %v208_v39 = vsel %vm205_vm1, %v188_v37, %v207_v38 }
  0xff   :  { %210 = vst [vmem:[%s338_s3] sm:$0xff] %v208_v39 }

// kernel: generator_forward.35
= control target key start
LH: loop header
LB: loop body
LE: loop exit
PB: predicated region body
PF: predicated region fallthrough
CT: control target
= control target key end

     0   :  { %v215_v0 = vmov 0.0   ;;  %vm216_vm0 = vmmov 0   ;;  %v151_v16 = vlaneseq  ;;  %s270_s1 = inlined_call_operand.vmem [shape: bf16[128,128], index: 1, kind: input, shape index: {}]   ;;  %s271_s0 = inlined_call_operand.vmem [shape: bf16[8,128], index: 0, kind: input, shape index: {}]   ;;  %s272_s2 = inlined_call_operand.vmem [shape: f32[8,128], index: 2, kind: output, shape index: {0}]   ;;  %s273_s3 = inlined_call_operand.vmem [shape: f32[8,128], index: 3, kind: output, shape index: {1}]  }
   0x1   :  { %185 = vmatprep.subr.bf16.mxu0 %v215_v0  ;;  %v207_v1 = vld [vmem:[%s270_s1 + $0x38] sm:$0xff]   ;;  %201 = vmatprep.mubr.msk.bf16.mxu0 %vm216_vm0, %v215_v0  ;;  %v208_v2 = vld [vmem:[%s270_s1 + $0x30] sm:$0xff]   ;;  %v209_v3 = vld [vmem:[%s270_s1 + $0x28] sm:$0xff]  }
   0x2   :  { %186 = vmatpush3.bf16.msra.mxu0 %v207_v1  ;;  %v210_v4 = vld [vmem:[%s270_s1 + $0x20] sm:$0xff]   ;;  %v211_v5 = vld [vmem:[%s270_s1 + $0x18] sm:$0xff]   ;;  %v212_v6 = vld [vmem:[%s270_s1 + $0x10] sm:$0xff]   ;;  %v152_v23 = vshrl.u32 %v151_v16, 7 }
   0x3   :  { %187 = vmatprep.subr.bf16.mxu0 %v215_v0  ;;  %v213_v7 = vld [vmem:[%s270_s1 + $0x8] sm:$0xff]   ;;  %v214_v8 = vld [vmem:[%s270_s1] sm:$0xff]  }
   0x4   :  { %v26_v9 = vld [vmem:[%s271_s0] sm:$0xf]  ;;  %vm155_vm1 = vcmp.eq.s32.totalorder %v152_v23, 1  ;;  %vm154_vm2 = vcmp.eq.s32.totalorder %v152_v23, 0 }
   0x6   :  { %188 = vmatpush3.bf16.msra.mxu0 %v208_v2 }
   0x7   :  { %189 = vmatprep.subr.bf16.mxu0 %v215_v0 }
   0xa   :  { %190 = vmatpush3.bf16.msra.mxu0 %v209_v3 }
   0xb   :  { %191 = vmatprep.subr.bf16.mxu0 %v215_v0 }
   0xe   :  { %192 = vmatpush3.bf16.msra.mxu0 %v210_v4 }
   0xf   :  { %193 = vmatprep.subr.bf16.mxu0 %v215_v0 }
  0x12   :  { %194 = vmatpush3.bf16.msra.mxu0 %v211_v5 }
  0x13   :  { %195 = vmatprep.subr.bf16.mxu0 %v215_v0 }
  0x16   :  { %196 = vmatpush3.bf16.msra.mxu0 %v212_v6 }
  0x17   :  { %197 = vmatprep.subr.bf16.mxu0 %v215_v0 }
  0x1a   :  { %198 = vmatpush3.bf16.msra.mxu0 %v213_v7 }
  0x1b   :  { %199 = vmatprep.subr.bf16.mxu0 %v215_v0 }
  0x1e   :  { %200 = vmatpush3.bf16.msra.mxu0 %v214_v8 }
  0x21   :  { %202 = vmatmul.mubr.bf16.vlgmr.msra.gmra.mxu0 %v26_v9 }
  0xe1   :  { %v125_v10 = vpop.f32.mrf.mxu0 }
  0xe2   :  { %137 = vst [vmem:[%s272_s2] sm:$0xff] %v125_v10  ;;  %v138_v11 = vrot.slane %v125_v10, 4  ;;  %v144_v12 = vmul.f32 %v125_v10, %v125_v10 }
  0xe3   :  { %v203_v13 = vpop.f32.mrf.mxu0 }
  0xe4   :  { %v139_v14 = vadd.f32 %v138_v11, %v125_v10  ;;  %v145_v15 = vrot.slane %v144_v12, 4 }
  0xe5   :  { %v128_v17 = vpop.f32.mrf.mxu0 }
  0xe6   :  { %v140_v18 = vrot.slane %v139_v14, 2  ;;  %v146_v19 = vadd.f32 %v145_v15, %v144_v12 }
  0xe7   :  { %v204_v20 = vpop.f32.mrf.mxu0 }
  0xe8   :  { %v141_v21 = vadd.f32 %v140_v18, %v139_v14  ;;  %v147_v22 = vrot.slane %v146_v19, 2 }
  0xea   :  { %v148_v24 = vadd.f32 %v147_v22, %v146_v19  ;;  %v142_v25 = vrot.slane %v141_v21, 1 }
  0xec   :  { %v149_v26 = vrot.slane %v148_v24, 1  ;;  %v143_v28 = vadd.f32 %v142_v25, %v141_v21 }
  0xee   :  { %v150_v27 = vadd.f32 %v149_v26, %v148_v24 }
  0xf0   :  { %v156_v29 = vsel %vm155_vm1, %v150_v27, 0.0 }
  0xf1   :  { %v157_v30 = vsel %vm154_vm2, %v143_v28, %v156_v29 }
  0xf2   :  { %159 = vst [vmem:[%s273_s3] sm:$0xff] %v157_v30 }

// kernel: generator_forward.36
= control target key start
LH: loop header
LB: loop body
LE: loop exit
PB: predicated region body
PF: predicated region fallthrough
CT: control target
= control target key end

     0   :  { %s74_s0 = inlined_call_operand.vmem [shape: f32[8,128], index: 0, kind: input, shape index: {}]   ;;  %s75_s1 = inlined_call_operand.vmem [shape: f32[1,128], index: 1, kind: input, shape index: {}]   ;;  %s76_s2 = inlined_call_operand.vmem [shape: f32[1,128], index: 2, kind: input, shape index: {}]   ;;  %s77_s3 = inlined_call_operand.vmem [shape: bf16[8,128], index: 3, kind: output, shape index: {}]  }
   0x1   :  { %v14_v0 = vld [vmem:[%s74_s0] sm:$0xff] }
   0x2   :  { %v40_v1 = vld [vmem:[%s75_s1] ss:$0 sm:$0xff] }
   0x3   :  { %v41_v2 = vld [vmem:[%s76_s2] ss:$0 sm:$0xff]  ;;  %v22_v3 = vmul.f32 %v40_v1, %v14_v0 }
   0x5   :  { %v30_v4 = vadd.f32 %v41_v2, %v22_v3 }
   0x7   :  { %vm31_vm0 = vcmp.ge.f32.partialorder %v30_v4, 0.0  ;;  %v32_v5 = vmul.f32 0.05, %v30_v4 }
   0x9   :  { %v33_v6 = vsel %vm31_vm0, %v30_v4, %v32_v5 }
   0xa   :  { %v34_v7 = vpack.c.bf16 %v33_v6, %v33_v6 }
   0xc   :  { %35 = vst [vmem:[%s77_s3] sm:$0xf] %v34_v7 }

// kernel: generator_forward.37
= control target key start
LH: loop header
LB: loop body
LE: loop exit
PB: predicated region body
PF: predicated region fallthrough
CT: control target
= control target key end

     0   :  { %v222_v28 = vlaneseq  ;;  %s375_s1 = inlined_call_operand.vmem [shape: bf16[256,128], index: 1, kind: input, shape index: {}]   ;;  %s376_s0 = inlined_call_operand.vmem [shape: bf16[8,256], index: 0, kind: input, shape index: {}]   ;;  %s377_s2 = inlined_call_operand.vmem [shape: f32[8,128], index: 2, kind: output, shape index: {0}]   ;;  %s378_s3 = inlined_call_operand.vmem [shape: f32[8,128], index: 3, kind: output, shape index: {1}]  }
   0x1   :  { %v280_v0 = vld [vmem:[%s375_s1 + $0x78] sm:$0xff]   ;;  %v282_v2 = vld [vmem:[%s375_s1 + $0x70] sm:$0xff]   ;;  %v284_v4 = vld [vmem:[%s375_s1 + $0x68] sm:$0xff]  }
   0x2   :  { %v281_v1 = vld [vmem:[%s375_s1 + $0x38] sm:$0xff]   ;;  %257 = vmatprep.subr.bf16.mxu0 %v280_v0  ;;  %v283_v3 = vld [vmem:[%s375_s1 + $0x30] sm:$0xff]   ;;  %v285_v5 = vld [vmem:[%s375_s1 + $0x28] sm:$0xff]   ;;  %v223_v33 = vshrl.u32 %v222_v28, 7 }
   0x3   :  { %258 = vmatpush3.bf16.msra.mxu0 %v281_v1  ;;  %v286_v6 = vld [vmem:[%s375_s1 + $0x60] sm:$0xff]   ;;  %v288_v8 = vld [vmem:[%s375_s1 + $0x58] sm:$0xff]   ;;  %v290_v10 = vld [vmem:[%s375_s1 + $0x50] sm:$0xff]  }
   0x4   :  { %259 = vmatprep.subr.bf16.mxu0 %v282_v2  ;;  %v287_v7 = vld [vmem:[%s375_s1 + $0x20] sm:$0xff]   ;;  %v289_v9 = vld [vmem:[%s375_s1 + $0x18] sm:$0xff]   ;;  %v291_v13 = vld [vmem:[%s375_s1 + $0x10] sm:$0xff]   ;;  %vm226_vm0 = vcmp.eq.s32.totalorder %v223_v33, 1  ;;  %vm225_vm1 = vcmp.eq.s32.totalorder %v223_v33, 0 }
   0x5   :  { %v26_v11 = vld [vmem:[%s376_s0] sm:$0xff]  ;;  %v292_v14 = vld [vmem:[%s375_s1 + $0x48] sm:$0xff]  }
   0x6   :  { %v240_v12 = vcombine.high %v26_v11, %v26_v11  ;;  %v293_v15 = vld [vmem:[%s375_s1 + $0x8] sm:$0xff]   ;;  %v294_v16 = vld [vmem:[%s375_s1 + $0x40] sm:$0xff]   ;;  %v239_v18 = vcombine.low %v26_v11, %v26_v11 }
   0x7   :  { %260 = vmatpush3.bf16.msra.mxu0 %v283_v3  ;;  %v295_v17 = vld [vmem:[%s375_s1] sm:$0xff]  }
   0x8   :  { %261 = vmatprep.subr.bf16.mxu0 %v284_v4  ;;  %194 = vmatprep.mubr.bf16.mxu0 %v240_v12 }
   0xb   :  { %262 = vmatpush3.bf16.msra.mxu0 %v285_v5 }
   0xc   :  { %263 = vmatprep.subr.bf16.mxu0 %v286_v6 }
   0xf   :  { %264 = vmatpush3.bf16.msra.mxu0 %v287_v7 }
  0x10   :  { %265 = vmatprep.subr.bf16.mxu0 %v288_v8 }
  0x13   :  { %266 = vmatpush3.bf16.msra.mxu0 %v289_v9 }
  0x14   :  { %267 = vmatprep.subr.bf16.mxu0 %v290_v10 }
  0x17   :  { %268 = vmatpush3.bf16.msra.mxu0 %v291_v13 }
  0x18   :  { %269 = vmatprep.subr.bf16.mxu0 %v292_v14 }
  0x1b   :  { %270 = vmatpush3.bf16.msra.mxu0 %v293_v15 }
  0x1c   :  { %271 = vmatprep.subr.bf16.mxu0 %v294_v16 }
  0x1f   :  { %272 = vmatpush3.bf16.msra.mxu0 %v295_v17 }
  0x22   :  { %195 = vmatmul.mubr.bf16.vlgmr.msra.gmra.mxu0 %v239_v18 }
  0xe2   :  { %v273_v19 = vpop.f32.mrf.mxu0 }
  0xe4   :  { %v274_v20 = vpop.f32.mrf.mxu0 }
  0xe5   :  { %v275_v21 = vadd.f32 %v274_v20, %v273_v19 }
  0xe6   :  { %v276_v22 = vpop.f32.mrf.mxu0 }
  0xe7   :  { %208 = vst [vmem:[%s377_s2] sm:$0xff] %v275_v21  ;;  %v209_v23 = vrot.slane %v275_v21, 4  ;;  %v215_v24 = vmul.f32 %v275_v21, %v275_v21 }
  0xe8   :  { %v277_v25 = vpop.f32.mrf.mxu0 }
  0xe9   :  { %v210_v26 = vadd.f32 %v275_v21, %v209_v23  ;;  %v216_v27 = vrot.slane %v215_v24, 4 }
  0xeb   :  { %v211_v29 = vrot.slane %v210_v26, 2  ;;  %v217_v30 = vadd.f32 %v216_v27, %v215_v24 }
  0xed   :  { %v212_v31 = vadd.f32 %v211_v29, %v210_v26  ;;  %v218_v32 = vrot.slane %v217_v30, 2 }
  0xef   :  { %v219_v34 = vadd.f32 %v218_v32, %v217_v30  ;;  %v213_v35 = vrot.slane %v212_v31, 1 }
  0xf1   :  { %v220_v36 = vrot.slane %v219_v34, 1  ;;  %v214_v38 = vadd.f32 %v213_v35, %v212_v31 }
  0xf3   :  { %v221_v37 = vadd.f32 %v220_v36, %v219_v34 }
  0xf5   :  { %v227_v39 = vsel %vm226_vm0, %v221_v37, 0.0 }
  0xf6   :  { %v228_v40 = vsel %vm225_vm1, %v214_v38, %v227_v39 }
  0xf7   :  { %230 = vst [vmem:[%s378_s3] sm:$0xff] %v228_v40 }

// kernel: generator_forward.39
= control target key start
LH: loop header
LB: loop body
LE: loop exit
PB: predicated region body
PF: predicated region fallthrough
CT: control target
= control target key end

     0   :  { %v455_v0 = vmov 0.0   ;;  %vm456_vm0 = vmmov 0   ;;  %v331_v43 = vlaneseq  ;;  %s561_s1 = inlined_call_operand.vmem [shape: bf16[384,128], index: 1, kind: input, shape index: {}]   ;;  %s562_s0 = inlined_call_operand.vmem [shape: bf16[8,384], index: 0, kind: input, shape index: {}]   ;;  %s563_s2 = inlined_call_operand.vmem [shape: f32[8,128], index: 2, kind: output, shape index: {0}]   ;;  %s564_s3 = inlined_call_operand.vmem [shape: f32[8,128], index: 3, kind: output, shape index: {1}]  }
   0x1   :  { %406 = vmatprep.subr.bf16.mxu1 %v455_v0  ;;  %v428_v1 = vld [vmem:[%s561_s1 + $0x78] sm:$0xff]   ;;  %422 = vmatprep.mubr.msk.bf16.mxu1 %vm456_vm0, %v455_v0  ;;  %v431_v4 = vld [vmem:[%s561_s1 + $0x70] sm:$0xff]   ;;  %v434_v7 = vld [vmem:[%s561_s1 + $0x68] sm:$0xff]  }
   0x2   :  { %v429_v2 = vld [vmem:[%s561_s1 + $0xb8] sm:$0xff]   ;;  %375 = vmatprep.subr.bf16.mxu0 %v428_v1  ;;  %v432_v5 = vld [vmem:[%s561_s1 + $0xb0] sm:$0xff]   ;;  %v435_v8 = vld [vmem:[%s561_s1 + $0xa8] sm:$0xff]   ;;  %v332_v48 = vshrl.u32 %v331_v43, 7 }
   0x3   :  { %v430_v3 = vld [vmem:[%s561_s1 + $0x38] sm:$0xff]   ;;  %407 = vmatpush3.bf16.msra.mxu1 %v429_v2  ;;  %v433_v6 = vld [vmem:[%s561_s1 + $0x30] sm:$0xff]   ;;  %v436_v9 = vld [vmem:[%s561_s1 + $0x28] sm:$0xff]  }
   0x4   :  { %376 = vmatpush3.bf16.msra.mxu0 %v430_v3  ;;  %408 = vmatprep.subr.bf16.mxu1 %v455_v0  ;;  %v437_v10 = vld [vmem:[%s561_s1 + $0x60] sm:$0xff]   ;;  %v440_v13 = vld [vmem:[%s561_s1 + $0x58] sm:$0xff]   ;;  %v443_v16 = vld [vmem:[%s561_s1 + $0x50] sm:$0xff]   ;;  %vm335_vm1 = vcmp.eq.s32.totalorder %v332_v48, 1  ;;  %vm334_vm2 = vcmp.eq.s32.totalorder %v332_v48, 0 }
   0x5   :  { %377 = vmatprep.subr.bf16.mxu0 %v431_v4  ;;  %v438_v11 = vld [vmem:[%s561_s1 + $0xa0] sm:$0xff]   ;;  %v441_v14 = vld [vmem:[%s561_s1 + $0x98] sm:$0xff]   ;;  %v444_v17 = vld [vmem:[%s561_s1 + $0x90] sm:$0xff]  }
   0x6   :  { %v439_v12 = vld [vmem:[%s561_s1 + $0x20] sm:$0xff]   ;;  %v442_v15 = vld [vmem:[%s561_s1 + $0x18] sm:$0xff]   ;;  %v445_v18 = vld [vmem:[%s561_s1 + $0x10] sm:$0xff]  }
   0x7   :  { %409 = vmatpush3.bf16.msra.mxu1 %v432_v5  ;;  %v446_v19 = vld [vmem:[%s561_s1 + $0x48] sm:$0xff]   ;;  %v26_v22 = vld [vmem:[%s562_s0] sm:$0xff] }
   0x8   :  { %378 = vmatpush3.bf16.msra.mxu0 %v433_v6  ;;  %410 = vmatprep.subr.bf16.mxu1 %v455_v0  ;;  %v447_v20 = vld [vmem:[%s561_s1 + $0x88] sm:$0xff]   ;;  %v449_v23 = vld [vmem:[%s561_s1 + $0x40] sm:$0xff]   ;;  %v349_v24 = vcombine.high %v26_v22, %v26_v22  ;;  %v348_v28 = vcombine.low %v26_v22, %v26_v22 }
   0x9   :  { %379 = vmatprep.subr.bf16.mxu0 %v434_v7  ;;  %v448_v21 = vld [vmem:[%s561_s1 + $0x8] sm:$0xff]   ;;  %v450_v25 = vld [vmem:[%s561_s1 + $0x80] sm:$0xff]  }
   0xa   :  { %263 = vmatprep.mubr.bf16.mxu0 %v349_v24  ;;  %v451_v26 = vld [vmem:[%s561_s1] sm:$0xff]   ;;  %v454_v27 = vld [vmem:[%s562_s0 + $0x8] ss:$0 sps:$4 sm:$0xff]  }
   0xb   :  { %411 = vmatpush3.bf16.msra.mxu1 %v435_v8 }
   0xc   :  { %380 = vmatpush3.bf16.msra.mxu0 %v436_v9  ;;  %412 = vmatprep.subr.bf16.mxu1 %v455_v0 }
   0xd   :  { %381 = vmatprep.subr.bf16.mxu0 %v437_v10 }
   0xf   :  { %413 = vmatpush3.bf16.msra.mxu1 %v438_v11 }
  0x10   :  { %382 = vmatpush3.bf16.msra.mxu0 %v439_v12  ;;  %414 = vmatprep.subr.bf16.mxu1 %v455_v0 }
  0x11   :  { %383 = vmatprep.subr.bf16.mxu0 %v440_v13 }
  0x13   :  { %415 = vmatpush3.bf16.msra.mxu1 %v441_v14 }
  0x14   :  { %384 = vmatpush3.bf16.msra.mxu0 %v442_v15  ;;  %416 = vmatprep.subr.bf16.mxu1 %v455_v0 }
  0x15   :  { %385 = vmatprep.subr.bf16.mxu0 %v443_v16 }
  0x17   :  { %417 = vmatpush3.bf16.msra.mxu1 %v444_v17 }
  0x18   :  { %386 = vmatpush3.bf16.msra.mxu0 %v445_v18  ;;  %418 = vmatprep.subr.bf16.mxu1 %v455_v0 }
  0x19   :  { %387 = vmatprep.subr.bf16.mxu0 %v446_v19 }
  0x1b   :  { %419 = vmatpush3.bf16.msra.mxu1 %v447_v20 }
  0x1c   :  { %388 = vmatpush3.bf16.msra.mxu0 %v448_v21  ;;  %420 = vmatprep.subr.bf16.mxu1 %v455_v0 }
  0x1d   :  { %389 = vmatprep.subr.bf16.mxu0 %v449_v23 }
  0x1f   :  { %421 = vmatpush3.bf16.msra.mxu1 %v450_v25 }
  0x20   :  { %390 = vmatpush3.bf16.msra.mxu0 %v451_v26 }
  0x22   :  { %423 = vmatmul.mubr.bf16.vlgmr.msra.gmra.mxu1 %v454_v27 }
  0x23   :  { %264 = vmatmul.mubr.bf16.vlgmr.msra.gmra.mxu0 %v348_v28 }
  0xe2   :  { %v305_v29 = vpop.f32.mrf.mxu1 }
  0xe3   :  { %v391_v30 = vpop.f32.mrf.mxu0 }
  0xe4   :  { %v424_v31 = vpop.f32.mrf.mxu1 }
  0xe5   :  { %v392_v32 = vpop.f32.mrf.mxu0 }
  0xe6   :  { %v393_v33 = vadd.f32 %v392_v32, %v391_v30  ;;  %v308_v34 = vpop.f32.mrf.mxu1 }
  0xe7   :  { %v394_v35 = vpop.f32.mrf.mxu0 }
  0xe8   :  { %v306_v36 = vadd.f32 %v393_v33, %v305_v29  ;;  %v425_v37 = vpop.f32.mrf.mxu1 }
  0xe9   :  { %v395_v38 = vpop.f32.mrf.mxu0 }
  0xea   :  { %317 = vst [vmem:[%s563_s2] sm:$0xff] %v306_v36  ;;  %v318_v39 = vrot.slane %v306_v36, 4  ;;  %v324_v40 = vmul.f32 %v306_v36, %v306_v36 }
  0xec   :  { %v319_v41 = vadd.f32 %v318_v39, %v306_v36  ;;  %v325_v42 = vrot.slane %v324_v40, 4 }
  0xee   :  { %v320_v44 = vrot.slane %v319_v41, 2  ;;  %v326_v45 = vadd.f32 %v325_v42, %v324_v40 }
  0xf0   :  { %v321_v46 = vadd.f32 %v320_v44, %v319_v41  ;;  %v327_v47 = vrot.slane %v326_v45, 2 }
  0xf2   :  { %v328_v49 = vadd.f32 %v327_v47, %v326_v45  ;;  %v322_v50 = vrot.slane %v321_v46, 1 }
  0xf4   :  { %v329_v51 = vrot.slane %v328_v49, 1  ;;  %v323_v53 = vadd.f32 %v322_v50, %v321_v46 }
  0xf6   :  { %v330_v52 = vadd.f32 %v329_v51, %v328_v49 }
  0xf8   :  { %v336_v54 = vsel %vm335_vm1, %v330_v52, 0.0 }
  0xf9   :  { %v337_v55 = vsel %vm334_vm2, %v323_v53, %v336_v54 }
  0xfa   :  { %339 = vst [vmem:[%s564_s3] sm:$0xff] %v337_v55 }

// kernel: generator_forward.55
= control target key start
LH: loop header
LB: loop body
LE: loop exit
PB: predicated region body
PF: predicated region fallthrough
CT: control target
= control target key end

     0   :  { %v398_v53 = vlaneseq  ;;  %s660_s1 = inlined_call_operand.vmem [shape: bf16[512,128], index: 1, kind: input, shape index: {}]   ;;  %s661_s0 = inlined_call_operand.vmem [shape: bf16[8,512], index: 0, kind: input, shape index: {}]   ;;  %s662_s2 = inlined_call_operand.vmem [shape: f32[8,128], index: 2, kind: output, shape index: {0}]   ;;  %s663_s3 = inlined_call_operand.vmem [shape: f32[8,128], index: 3, kind: output, shape index: {1}]  }
   0x1   :  { %v496_v0 = vld [vmem:[%s660_s1 + $0x78] sm:$0xff]   ;;  %v500_v4 = vld [vmem:[%s660_s1 + $0x70] sm:$0xff]   ;;  %v504_v8 = vld [vmem:[%s660_s1 + $0x68] sm:$0xff]  }
   0x2   :  { %v497_v1 = vld [vmem:[%s660_s1 + $0xf8] sm:$0xff]   ;;  %451 = vmatprep.subr.bf16.mxu0 %v496_v0  ;;  %v501_v5 = vld [vmem:[%s660_s1 + $0xf0] sm:$0xff]   ;;  %v505_v9 = vld [vmem:[%s660_s1 + $0xe8] sm:$0xff]   ;;  %v399_v58 = vshrl.u32 %v398_v53, 7 }
   0x3   :  { %v498_v2 = vld [vmem:[%s660_s1 + $0x38] sm:$0xff]   ;;  %473 = vmatprep.subr.bf16.mxu1 %v497_v1  ;;  %v502_v6 = vld [vmem:[%s660_s1 + $0x30] sm:$0xff]   ;;  %v506_v10 = vld [vmem:[%s660_s1 + $0x28] sm:$0xff]  }
   0x4   :  { %v499_v3 = vld [vmem:[%s660_s1 + $0xb8] sm:$0xff]   ;;  %452 = vmatpush3.bf16.msra.mxu0 %v498_v2  ;;  %v503_v7 = vld [vmem:[%s660_s1 + $0xb0] sm:$0xff]   ;;  %v507_v11 = vld [vmem:[%s660_s1 + $0xa8] sm:$0xff]   ;;  %vm402_vm0 = vcmp.eq.s32.totalorder %v399_v58, 1  ;;  %vm401_vm1 = vcmp.eq.s32.totalorder %v399_v58, 0 }
   0x5   :  { %474 = vmatpush3.bf16.msra.mxu1 %v499_v3  ;;  %453 = vmatprep.subr.bf16.mxu0 %v500_v4  ;;  %v508_v12 = vld [vmem:[%s660_s1 + $0x60] sm:$0xff]   ;;  %v512_v16 = vld [vmem:[%s660_s1 + $0x58] sm:$0xff]   ;;  %v516_v20 = vld [vmem:[%s660_s1 + $0x50] sm:$0xff]  }
   0x6   :  { %475 = vmatprep.subr.bf16.mxu1 %v501_v5  ;;  %v509_v13 = vld [vmem:[%s660_s1 + $0xe0] sm:$0xff]   ;;  %v513_v17 = vld [vmem:[%s660_s1 + $0xd8] sm:$0xff]   ;;  %v517_v21 = vld [vmem:[%s660_s1 + $0xd0] sm:$0xff]  }
   0x7   :  { %v510_v14 = vld [vmem:[%s660_s1 + $0x20] sm:$0xff]   ;;  %v514_v18 = vld [vmem:[%s660_s1 + $0x18] sm:$0xff]   ;;  %v518_v22 = vld [vmem:[%s660_s1 + $0x10] sm:$0xff]  }
   0x8   :  { %454 = vmatpush3.bf16.msra.mxu0 %v502_v6  ;;  %v511_v15 = vld [vmem:[%s660_s1 + $0xa0] sm:$0xff]   ;;  %v515_v19 = vld [vmem:[%s660_s1 + $0x98] sm:$0xff]   ;;  %v519_v23 = vld [vmem:[%s660_s1 + $0x90] sm:$0xff]  }
   0x9   :  { %476 = vmatpush3.bf16.msra.mxu1 %v503_v7  ;;  %455 = vmatprep.subr.bf16.mxu0 %v504_v8  ;;  %v520_v24 = vld [vmem:[%s660_s1 + $0x48] sm:$0xff]   ;;  %v524_v28 = vld [vmem:[%s660_s1 + $0x40] sm:$0xff]  }
   0xa   :  { %477 = vmatprep.subr.bf16.mxu1 %v505_v9  ;;  %v521_v25 = vld [vmem:[%s660_s1 + $0xc8] sm:$0xff]   ;;  %v525_v29 = vld [vmem:[%s660_s1 + $0xc0] sm:$0xff]  }
   0xb   :  { %v522_v26 = vld [vmem:[%s660_s1 + $0x8] sm:$0xff]   ;;  %v526_v30 = vld [vmem:[%s660_s1] sm:$0xff]  }
   0xc   :  { %456 = vmatpush3.bf16.msra.mxu0 %v506_v10  ;;  %v523_v27 = vld [vmem:[%s660_s1 + $0x88] sm:$0xff]   ;;  %v527_v31 = vld [vmem:[%s660_s1 + $0x80] sm:$0xff]  }
   0xd   :  { %478 = vmatpush3.bf16.msra.mxu1 %v507_v11  ;;  %457 = vmatprep.subr.bf16.mxu0 %v508_v12  ;;  %v26_v32 = vld [vmem:[%s661_s0] sm:$0xff]  ;;  %v27_v33 = vld [vmem:[%s661_s0 + $0x8] sm:$0xff] }
   0xe   :  { %479 = vmatprep.subr.bf16.mxu1 %v509_v13  ;;  %v415_v34 = vcombine.low %v26_v32, %v26_v32  ;;  %v416_v35 = vcombine.high %v26_v32, %v26_v32  ;;  %v417_v36 = vcombine.low %v27_v33, %v27_v33  ;;  %v418_v37 = vcombine.high %v27_v33, %v27_v33 }
  0x10   :  { %458 = vmatpush3.bf16.msra.mxu0 %v510_v14  ;;  %330 = vmatprep.mubr.bf16.mxu0 %v416_v35 }
  0x11   :  { %480 = vmatpush3.bf16.msra.mxu1 %v511_v15  ;;  %459 = vmatprep.subr.bf16.mxu0 %v512_v16 }
  0x12   :  { %481 = vmatprep.subr.bf16.mxu1 %v513_v17  ;;  %370 = vmatprep.mubr.bf16.mxu1 %v418_v37 }
  0x14   :  { %460 = vmatpush3.bf16.msra.mxu0 %v514_v18 }
  0x15   :  { %482 = vmatpush3.bf16.msra.mxu1 %v515_v19  ;;  %461 = vmatprep.subr.bf16.mxu0 %v516_v20 }
  0x16   :  { %483 = vmatprep.subr.bf16.mxu1 %v517_v21 }
  0x18   :  { %462 = vmatpush3.bf16.msra.mxu0 %v518_v22 }
  0x19   :  { %484 = vmatpush3.bf16.msra.mxu1 %v519_v23  ;;  %463 = vmatprep.subr.bf16.mxu0 %v520_v24 }
  0x1a   :  { %485 = vmatprep.subr.bf16.mxu1 %v521_v25 }
  0x1c   :  { %464 = vmatpush3.bf16.msra.mxu0 %v522_v26 }
  0x1d   :  { %486 = vmatpush3.bf16.msra.mxu1 %v523_v27  ;;  %465 = vmatprep.subr.bf16.mxu0 %v524_v28 }
  0x1e   :  { %487 = vmatprep.subr.bf16.mxu1 %v525_v29 }
  0x20   :  { %466 = vmatpush3.bf16.msra.mxu0 %v526_v30 }
  0x21   :  { %488 = vmatpush3.bf16.msra.mxu1 %v527_v31 }
  0x23   :  { %331 = vmatmul.mubr.bf16.vlgmr.msra.gmra.mxu0 %v415_v34 }
  0x24   :  { %371 = vmatmul.mubr.bf16.vlgmr.msra.gmra.mxu1 %v417_v36 }
  0xe3   :  { %v467_v38 = vpop.f32.mrf.mxu0 }
  0xe4   :  { %v489_v39 = vpop.f32.mrf.mxu1 }
  0xe5   :  { %v468_v40 = vpop.f32.mrf.mxu0 }
  0xe6   :  { %v490_v41 = vpop.f32.mrf.mxu1  ;;  %v469_v42 = vadd.f32 %v468_v40, %v467_v38 }
  0xe7   :  { %v491_v43 = vadd.f32 %v490_v41, %v489_v39  ;;  %v470_v44 = vpop.f32.mrf.mxu0 }
  0xe8   :  { %v492_v45 = vpop.f32.mrf.mxu1 }
  0xe9   :  { %v373_v46 = vadd.f32 %v491_v43, %v469_v42  ;;  %v471_v47 = vpop.f32.mrf.mxu0 }
  0xea   :  { %v493_v48 = vpop.f32.mrf.mxu1 }
  0xeb   :  { %384 = vst [vmem:[%s662_s2] sm:$0xff] %v373_v46  ;;  %v385_v49 = vrot.slane %v373_v46, 4  ;;  %v391_v50 = vmul.f32 %v373_v46, %v373_v46 }
  0xed   :  { %v386_v51 = vadd.f32 %v385_v49, %v373_v46  ;;  %v392_v52 = vrot.slane %v391_v50, 4 }
  0xef   :  { %v387_v54 = vrot.slane %v386_v51, 2  ;;  %v393_v55 = vadd.f32 %v392_v52, %v391_v50 }
  0xf1   :  { %v388_v56 = vadd.f32 %v387_v54, %v386_v51  ;;  %v394_v57 = vrot.slane %v393_v55, 2 }
  0xf3   :  { %v395_v59 = vadd.f32 %v394_v57, %v393_v55  ;;  %v389_v60 = vrot.slane %v388_v56, 1 }
  0xf5   :  { %v396_v61 = vrot.slane %v395_v59, 1  ;;  %v390_v63 = vadd.f32 %v389_v60, %v388_v56 }
  0xf7   :  { %v397_v62 = vadd.f32 %v396_v61, %v395_v59 }
  0xf9   :  { %v403_v0 = vsel %vm402_vm0, %v397_v62, 0.0 }
  0xfa   :  { %v404_v1 = vsel %vm401_vm1, %v390_v63, %v403_v0 }
  0xfb   :  { %406 = vst [vmem:[%s663_s3] sm:$0xff] %v404_v1 }

// kernel: generator_forward.57
= control target key start
LH: loop header
LB: loop body
LE: loop exit
PB: predicated region body
PF: predicated region fallthrough
CT: control target
= control target key end

     0   :  { %v274_v45 = vlaneseq  ;;  %s473_s1 = inlined_call_operand.vmem [shape: bf16[256,128], index: 1, kind: input, shape index: {}]   ;;  %s474_s0 = inlined_call_operand.vmem [shape: bf16[32,256], index: 0, kind: input, shape index: {}]   ;;  %s475_s2 = inlined_call_operand.vmem [shape: f32[32,128], index: 2, kind: output, shape index: {0}]   ;;  %s476_s3 = inlined_call_operand.vmem [shape: f32[8,128], index: 3, kind: output, shape index: {1}]  }
   0x1   :  { %v356_v0 = vld [vmem:[%s473_s1 + $0x78] sm:$0xff]   ;;  %v358_v2 = vld [vmem:[%s473_s1 + $0x70] sm:$0xff]   ;;  %v360_v4 = vld [vmem:[%s473_s1 + $0x68] sm:$0xff]  }
   0x2   :  { %v357_v1 = vld [vmem:[%s473_s1 + $0x38] sm:$0xff]   ;;  %311 = vmatprep.subr.bf16.mxu0 %v356_v0  ;;  %339 = vmatprep.subr.bf16.mxu1 %v356_v0  ;;  %v359_v3 = vld [vmem:[%s473_s1 + $0x30] sm:$0xff]   ;;  %v361_v5 = vld [vmem:[%s473_s1 + $0x28] sm:$0xff]   ;;  %v275_v50 = vshrl.u32 %v274_v45, 7 }
   0x3   :  { %312 = vmatpush3.bf16.msra.mxu0 %v357_v1  ;;  %347 = vmatpush3.bf16.msra.mxu1 %v357_v1  ;;  %v362_v6 = vld [vmem:[%s473_s1 + $0x60] sm:$0xff]   ;;  %v364_v8 = vld [vmem:[%s473_s1 + $0x58] sm:$0xff]   ;;  %v366_v10 = vld [vmem:[%s473_s1 + $0x50] sm:$0xff]  }
   0x4   :  { %313 = vmatprep.subr.bf16.mxu0 %v358_v2  ;;  %340 = vmatprep.subr.bf16.mxu1 %v358_v2  ;;  %v363_v7 = vld [vmem:[%s473_s1 + $0x20] sm:$0xff]   ;;  %v365_v9 = vld [vmem:[%s473_s1 + $0x18] sm:$0xff]   ;;  %v367_v13 = vld [vmem:[%s473_s1 + $0x10] sm:$0xff]   ;;  %vm278_vm0 = vcmp.eq.s32.totalorder %v275_v50, 1  ;;  %vm277_vm1 = vcmp.eq.s32.totalorder %v275_v50, 0 }
   0x5   :  { %v374_v11 = vld [vmem:[%s474_s0 + $0x4] ss:$8 sps:$4 sm:$0xff]   ;;  %v377_v12 = vld [vmem:[%s474_s0 + $0x14] ss:$8 sps:$4 sm:$0xff]   ;;  %v372_v18 = vld [vmem:[%s474_s0] ss:$8 sps:$4 sm:$0xff]  }
   0x6   :  { %v368_v14 = vld [vmem:[%s473_s1 + $0x48] sm:$0xff]   ;;  %216 = vmatprep.mubr.bf16.mxu0 %v374_v11  ;;  %224 = vmatprep.mubr.bf16.mxu1 %v377_v12  ;;  %v370_v16 = vld [vmem:[%s473_s1 + $0x40] sm:$0xff]   ;;  %v375_v19 = vld [vmem:[%s474_s0 + $0x10] ss:$8 sps:$4 sm:$0xff]  }
   0x7   :  { %314 = vmatpush3.bf16.msra.mxu0 %v359_v3  ;;  %348 = vmatpush3.bf16.msra.mxu1 %v359_v3  ;;  %v369_v15 = vld [vmem:[%s473_s1 + $0x8] sm:$0xff]   ;;  %v371_v17 = vld [vmem:[%s473_s1] sm:$0xff]  }
   0x8   :  { %315 = vmatprep.subr.bf16.mxu0 %v360_v4  ;;  %341 = vmatprep.subr.bf16.mxu1 %v360_v4 }
   0xb   :  { %316 = vmatpush3.bf16.msra.mxu0 %v361_v5  ;;  %349 = vmatpush3.bf16.msra.mxu1 %v361_v5 }
   0xc   :  { %317 = vmatprep.subr.bf16.mxu0 %v362_v6  ;;  %342 = vmatprep.subr.bf16.mxu1 %v362_v6 }
   0xf   :  { %318 = vmatpush3.bf16.msra.mxu0 %v363_v7  ;;  %350 = vmatpush3.bf16.msra.mxu1 %v363_v7 }
  0x10   :  { %319 = vmatprep.subr.bf16.mxu0 %v364_v8  ;;  %343 = vmatprep.subr.bf16.mxu1 %v364_v8 }
  0x13   :  { %320 = vmatpush3.bf16.msra.mxu0 %v365_v9  ;;  %351 = vmatpush3.bf16.msra.mxu1 %v365_v9 }
  0x14   :  { %321 = vmatprep.subr.bf16.mxu0 %v366_v10  ;;  %344 = vmatprep.subr.bf16.mxu1 %v366_v10 }
  0x17   :  { %322 = vmatpush3.bf16.msra.mxu0 %v367_v13  ;;  %352 = vmatpush3.bf16.msra.mxu1 %v367_v13 }
  0x18   :  { %323 = vmatprep.subr.bf16.mxu0 %v368_v14  ;;  %345 = vmatprep.subr.bf16.mxu1 %v368_v14 }
  0x1b   :  { %324 = vmatpush3.bf16.msra.mxu0 %v369_v15  ;;  %353 = vmatpush3.bf16.msra.mxu1 %v369_v15 }
  0x1c   :  { %325 = vmatprep.subr.bf16.mxu0 %v370_v16  ;;  %346 = vmatprep.subr.bf16.mxu1 %v370_v16 }
  0x1f   :  { %326 = vmatpush3.bf16.msra.mxu0 %v371_v17  ;;  %354 = vmatpush3.bf16.msra.mxu1 %v371_v17 }
  0x22   :  { %217 = vmatmul.mubr.bf16.vlgmr.msra.gmra.mxu0 %v372_v18  ;;  %225 = vmatmul.mubr.bf16.vlgmr.msra.gmra.mxu1 %v375_v19 }
  0xe2   :  { %v327_v20 = vpop.f32.mrf.mxu0  ;;  %v333_v21 = vpop.f32.mrf.mxu1 }
  0xe4   :  { %v328_v22 = vpop.f32.mrf.mxu0  ;;  %v334_v23 = vpop.f32.mrf.mxu1 }
  0xe5   :  { %v329_v24 = vadd.f32 %v328_v22, %v327_v20  ;;  %v335_v25 = vadd.f32 %v334_v23, %v333_v21 }
  0xe6   :  { %v330_v26 = vpop.f32.mrf.mxu0  ;;  %v336_v27 = vpop.f32.mrf.mxu1 }
  0xe7   :  { %248 = vst [vmem:[%s475_s2] sm:$0xff] %v329_v24  ;;  %250 = vst [vmem:[%s475_s2 + $0x10] sm:$0xff] %v335_v25  ;;  %v261_v32 = vmul.f32 %v329_v24, %v329_v24  ;;  %v263_v35 = vmul.f32 %v335_v25, %v335_v25 }
  0xe8   :  { %v331_v28 = vpop.f32.mrf.mxu0  ;;  %v337_v29 = vpop.f32.mrf.mxu1 }
  0xe9   :  { %v332_v30 = vadd.f32 %v331_v28, %v330_v26  ;;  %v338_v31 = vadd.f32 %v337_v29, %v336_v27 }
  0xeb   :  { %249 = vst [vmem:[%s475_s2 + $0x8] sm:$0xff] %v332_v30  ;;  %v252_v33 = vadd.f32 %v332_v30, %v329_v24  ;;  %v262_v34 = vmul.f32 %v332_v30, %v332_v30  ;;  %251 = vst [vmem:[%s475_s2 + $0x18] sm:$0xff] %v338_v31  ;;  %v264_v39 = vmul.f32 %v338_v31, %v338_v31 }
  0xed   :  { %v265_v36 = vadd.f32 %v262_v34, %v261_v32  ;;  %v253_v37 = vadd.f32 %v335_v25, %v252_v33 }
  0xef   :  { %v254_v38 = vadd.f32 %v338_v31, %v253_v37  ;;  %v266_v40 = vadd.f32 %v265_v36, %v263_v35 }
  0xf1   :  { %v255_v41 = vrot.slane %v254_v38, 4  ;;  %v267_v42 = vadd.f32 %v266_v40, %v264_v39 }
  0xf3   :  { %v256_v43 = vadd.f32 %v255_v41, %v254_v38  ;;  %v268_v44 = vrot.slane %v267_v42, 4 }
  0xf5   :  { %v257_v46 = vrot.slane %v256_v43, 2  ;;  %v269_v47 = vadd.f32 %v268_v44, %v267_v42 }
  0xf7   :  { %v258_v48 = vadd.f32 %v257_v46, %v256_v43  ;;  %v270_v49 = vrot.slane %v269_v47, 2 }
  0xf9   :  { %v271_v51 = vadd.f32 %v270_v49, %v269_v47  ;;  %v259_v52 = vrot.slane %v258_v48, 1 }
  0xfb   :  { %v272_v53 = vrot.slane %v271_v51, 1  ;;  %v260_v55 = vadd.f32 %v259_v52, %v258_v48 }
  0xfd   :  { %v273_v54 = vadd.f32 %v272_v53, %v271_v51 }
  0xff   :  { %v279_v56 = vsel %vm278_vm0, %v273_v54, 0.0 }
 0x100   :  { %v280_v57 = vsel %vm277_vm1, %v260_v55, %v279_v56 }
 0x101   :  { %282 = vst [vmem:[%s476_s3] sm:$0xff] %v280_v57 }

// kernel: generator_forward.61
= control target key start
LH: loop header
LB: loop body
LE: loop exit
PB: predicated region body
PF: predicated region fallthrough
CT: control target
= control target key end

     0   :  { %s1751_s1 = inlined_call_operand.vmem [shape: bf16[128,128], index: 1, kind: input, shape index: {}]   ;;  %s1752_s0 = inlined_call_operand.vmem [shape: bf16[512,128], index: 0, kind: input, shape index: {}]   ;;  %s1753_s2 = inlined_call_operand.vmem [shape: f32[512,128], index: 2, kind: output, shape index: {}]  }
   0x1   :  { %v1256_v0 = vld [vmem:[%s1751_s1 + $0x38] sm:$0xff]   ;;  %v1257_v1 = vld [vmem:[%s1751_s1 + $0x30] sm:$0xff]   ;;  %v1258_v2 = vld [vmem:[%s1751_s1 + $0x28] sm:$0xff]  }
   0x2   :  { %1160 = vmatprep.subr.bf16.mxu0 %v1256_v0  ;;  %1240 = vmatprep.subr.bf16.mxu1 %v1256_v0  ;;  %v1259_v3 = vld [vmem:[%s1751_s1 + $0x20] sm:$0xff]   ;;  %v1260_v6 = vld [vmem:[%s1751_s1 + $0x18] sm:$0xff]   ;;  %v1261_v7 = vld [vmem:[%s1751_s1 + $0x10] sm:$0xff]  }
   0x3   :  { %1161 = vmatpush3.bf16.msra.mxu0 %v1256_v0  ;;  %1248 = vmatpush3.bf16.msra.mxu1 %v1256_v0  ;;  %v1264_v4 = vld [vmem:[%s1752_s0] sm:$0xff]   ;;  %v1262_v8 = vld [vmem:[%s1751_s1 + $0x8] sm:$0xff]   ;;  %v1268_v12 = vld [vmem:[%s1752_s0 + $0x10] sm:$0xff]  }
   0x4   :  { %1162 = vmatprep.subr.bf16.mxu0 %v1257_v1  ;;  %1241 = vmatprep.subr.bf16.mxu1 %v1257_v1  ;;  %v1265_v5 = vld [vmem:[%s1752_s0 + $0x80] sm:$0xff]   ;;  %v1266_v10 = vld [vmem:[%s1752_s0 + $0x8] sm:$0xff]   ;;  %v1269_v13 = vld [vmem:[%s1752_s0 + $0x90] sm:$0xff]  }
   0x5   :  { %1176 = vmatprep.mubr.bf16.mxu0 %v1264_v4  ;;  %1208 = vmatprep.mubr.bf16.mxu1 %v1265_v5  ;;  %v1263_v9 = vld [vmem:[%s1751_s1] sm:$0xff]   ;;  %v1267_v11 = vld [vmem:[%s1752_s0 + $0x88] sm:$0xff]   ;;  %v1270_v14 = vld [vmem:[%s1752_s0 + $0x18] sm:$0xff]  }
   0x6   :  { %v1271_v15 = vld [vmem:[%s1752_s0 + $0x98] sm:$0xff]   ;;  %v1272_v16 = vld [vmem:[%s1752_s0 + $0x20] sm:$0xff]   ;;  %v1274_v18 = vld [vmem:[%s1752_s0 + $0x28] sm:$0xff]  }
   0x7   :  { %1163 = vmatpush3.bf16.msra.mxu0 %v1257_v1  ;;  %1249 = vmatpush3.bf16.msra.mxu1 %v1257_v1  ;;  %v1273_v17 = vld [vmem:[%s1752_s0 + $0xa0] sm:$0xff]   ;;  %v1275_v19 = vld [vmem:[%s1752_s0 + $0xa8] sm:$0xff]   ;;  %v1276_v20 = vld [vmem:[%s1752_s0 + $0x30] sm:$0xff]  }
   0x8   :  { %1164 = vmatprep.subr.bf16.mxu0 %v1258_v2  ;;  %1242 = vmatprep.subr.bf16.mxu1 %v1258_v2  ;;  %v1277_v21 = vld [vmem:[%s1752_s0 + $0xb0] sm:$0xff]   ;;  %v1278_v22 = vld [vmem:[%s1752_s0 + $0x38] sm:$0xff]   ;;  %v1280_v24 = vld [vmem:[%s1752_s0 + $0x40] sm:$0xff]  }
   0x9   :  { %v1279_v23 = vld [vmem:[%s1752_s0 + $0xb8] sm:$0xff]   ;;  %v1281_v25 = vld [vmem:[%s1752_s0 + $0xc0] sm:$0xff]   ;;  %v1282_v26 = vld [vmem:[%s1752_s0 + $0x48] sm:$0xff]  }
   0xa   :  { %v1283_v27 = vld [vmem:[%s1752_s0 + $0xc8] sm:$0xff]   ;;  %v1284_v28 = vld [vmem:[%s1752_s0 + $0x50] sm:$0xff]   ;;  %v1286_v30 = vld [vmem:[%s1752_s0 + $0x58] sm:$0xff]  }
   0xb   :  { %1165 = vmatpush3.bf16.msra.mxu0 %v1258_v2  ;;  %1250 = vmatpush3.bf16.msra.mxu1 %v1258_v2  ;;  %v1285_v29 = vld [vmem:[%s1752_s0 + $0xd0] sm:$0xff]   ;;  %v1287_v31 = vld [vmem:[%s1752_s0 + $0xd8] sm:$0xff]   ;;  %v1288_v32 = vld [vmem:[%s1752_s0 + $0x60] sm:$0xff]  }
   0xc   :  { %1166 = vmatprep.subr.bf16.mxu0 %v1259_v3  ;;  %1243 = vmatprep.subr.bf16.mxu1 %v1259_v3  ;;  %v1289_v33 = vld [vmem:[%s1752_s0 + $0xe0] sm:$0xff]   ;;  %v1290_v34 = vld [vmem:[%s1752_s0 + $0x68] sm:$0xff]   ;;  %v1292_v36 = vld [vmem:[%s1752_s0 + $0x70] sm:$0xff]  }
   0xd   :  { %v1291_v35 = vld [vmem:[%s1752_s0 + $0xe8] sm:$0xff]   ;;  %v1293_v37 = vld [vmem:[%s1752_s0 + $0xf0] sm:$0xff]   ;;  %v1294_v38 = vld [vmem:[%s1752_s0 + $0x78] sm:$0xff]  }
   0xe   :  { %v1295_v39 = vld [vmem:[%s1752_s0 + $0xf8] sm:$0xff]  }
   0xf   :  { %1167 = vmatpush3.bf16.msra.mxu0 %v1259_v3  ;;  %1251 = vmatpush3.bf16.msra.mxu1 %v1259_v3 }
  0x10   :  { %1168 = vmatprep.subr.bf16.mxu0 %v1260_v6  ;;  %1244 = vmatprep.subr.bf16.mxu1 %v1260_v6 }
  0x13   :  { %1169 = vmatpush3.bf16.msra.mxu0 %v1260_v6  ;;  %1252 = vmatpush3.bf16.msra.mxu1 %v1260_v6 }
  0x14   :  { %1170 = vmatprep.subr.bf16.mxu0 %v1261_v7  ;;  %1245 = vmatprep.subr.bf16.mxu1 %v1261_v7 }
  0x17   :  { %1171 = vmatpush3.bf16.msra.mxu0 %v1261_v7  ;;  %1253 = vmatpush3.bf16.msra.mxu1 %v1261_v7 }
  0x18   :  { %1172 = vmatprep.subr.bf16.mxu0 %v1262_v8  ;;  %1246 = vmatprep.subr.bf16.mxu1 %v1262_v8 }
  0x1b   :  { %1173 = vmatpush3.bf16.msra.mxu0 %v1262_v8  ;;  %1254 = vmatpush3.bf16.msra.mxu1 %v1262_v8 }
  0x1c   :  { %1174 = vmatprep.subr.bf16.mxu0 %v1263_v9  ;;  %1247 = vmatprep.subr.bf16.mxu1 %v1263_v9 }
  0x1f   :  { %1175 = vmatpush3.bf16.msra.mxu0 %v1263_v9  ;;  %1255 = vmatpush3.bf16.msra.mxu1 %v1263_v9 }
  0x22   :  { %1177 = vmatmul.mubr.bf16.vlgmr.msra.gmra.mxu0 %v1266_v10  ;;  %1209 = vmatmul.mubr.bf16.vlgmr.msra.gmra.mxu1 %v1267_v11 }
  0x23   :  { %1180 = vmatprep.mubr.bf16.mxu0 %v1268_v12  ;;  %1212 = vmatprep.mubr.bf16.mxu1 %v1269_v13 }
  0x2a   :  { %1181 = vmatmul.mubr.bf16.gmra.mxu0 %v1270_v14  ;;  %1213 = vmatmul.mubr.bf16.gmra.mxu1 %v1271_v15 }
  0x2b   :  { %1184 = vmatprep.mubr.bf16.mxu0 %v1272_v16  ;;  %1216 = vmatprep.mubr.bf16.mxu1 %v1273_v17 }
  0x32   :  { %1185 = vmatmul.mubr.bf16.gmra.mxu0 %v1274_v18  ;;  %1217 = vmatmul.mubr.bf16.gmra.mxu1 %v1275_v19 }
  0x33   :  { %1188 = vmatprep.mubr.bf16.mxu0 %v1276_v20  ;;  %1220 = vmatprep.mubr.bf16.mxu1 %v1277_v21 }
  0x3a   :  { %1189 = vmatmul.mubr.bf16.gmra.mxu0 %v1278_v22  ;;  %1221 = vmatmul.mubr.bf16.gmra.mxu1 %v1279_v23 }
  0x3b   :  { %1192 = vmatprep.mubr.bf16.mxu0 %v1280_v24  ;;  %1224 = vmatprep.mubr.bf16.mxu1 %v1281_v25 }
  0x42   :  { %1193 = vmatmul.mubr.bf16.gmra.mxu0 %v1282_v26  ;;  %1225 = vmatmul.mubr.bf16.gmra.mxu1 %v1283_v27 }
  0x43   :  { %1196 = vmatprep.mubr.bf16.mxu0 %v1284_v28  ;;  %1228 = vmatprep.mubr.bf16.mxu1 %v1285_v29 }
  0x4a   :  { %1197 = vmatmul.mubr.bf16.gmra.mxu0 %v1286_v30  ;;  %1229 = vmatmul.mubr.bf16.gmra.mxu1 %v1287_v31 }
  0x4b   :  { %1200 = vmatprep.mubr.bf16.mxu0 %v1288_v32  ;;  %1232 = vmatprep.mubr.bf16.mxu1 %v1289_v33 }
  0x52   :  { %1201 = vmatmul.mubr.bf16.gmra.mxu0 %v1290_v34  ;;  %1233 = vmatmul.mubr.bf16.gmra.mxu1 %v1291_v35 }
  0x53   :  { %1204 = vmatprep.mubr.bf16.mxu0 %v1292_v36  ;;  %1236 = vmatprep.mubr.bf16.mxu1 %v1293_v37 }
  0x5a   :  { %1205 = vmatmul.mubr.bf16.gmra.mxu0 %v1294_v38  ;;  %1237 = vmatmul.mubr.bf16.gmra.mxu1 %v1295_v39 }
  0xe2   :  { %v1178_v40 = vpop.f32.mrf.mxu0  ;;  %v1210_v41 = vpop.f32.mrf.mxu1 }
  0xe3   :  { %1296 = vtanh.f32 %v1178_v40 }
  0xe4   :  { %1298 = vtanh.f32 %v1210_v41  ;;  %v498_v42 = vpop.f32.mrf.mxu0  ;;  %v626_v43 = vpop.f32.mrf.mxu1 }
  0xe5   :  { %1300 = vtanh.f32 %v498_v42 }
  0xe6   :  { %1302 = vtanh.f32 %v626_v43  ;;  %v1179_v44 = vpop.f32.mrf.mxu0  ;;  %v1211_v45 = vpop.f32.mrf.mxu1 }
  0xe7   :  { %1304 = vtanh.f32 %v1179_v44 }
  0xe8   :  { %1306 = vtanh.f32 %v1211_v45  ;;  %v501_v46 = vpop.f32.mrf.mxu0  ;;  %v629_v47 = vpop.f32.mrf.mxu1 }
  0xe9   :  { %1308 = vtanh.f32 %v501_v46 }
  0xea   :  { %1310 = vtanh.f32 %v629_v47  ;;  %v1182_v48 = vpop.f32.mrf.mxu0  ;;  %v1214_v49 = vpop.f32.mrf.mxu1 }
  0xeb   :  { %1312 = vtanh.f32 %v1182_v48 }
  0xec   :  { %1314 = vtanh.f32 %v1214_v49  ;;  %v514_v50 = vpop.f32.mrf.mxu0  ;;  %v642_v51 = vpop.f32.mrf.mxu1 }
  0xed   :  { %1316 = vtanh.f32 %v514_v50 }
  0xee   :  { %1318 = vtanh.f32 %v642_v51  ;;  %v1183_v52 = vpop.f32.mrf.mxu0  ;;  %v1215_v53 = vpop.f32.mrf.mxu1 }
  0xef   :  { %1320 = vtanh.f32 %v1183_v52 }
  0xf0   :  { %v1297_v54 = vpop.eup %1296  ;;  %1322 = vtanh.f32 %v1215_v53  ;;  %v517_v55 = vpop.f32.mrf.mxu0 }
  0xf1   :  { %v645_v56 = vpop.f32.mrf.mxu1  ;;  %v1299_v57 = vpop.eup %1298  ;;  %1014 = vst [vmem:[%s1753_s2 + $0x10] sm:$0xff] %v1297_v54  ;;  %1324 = vtanh.f32 %v517_v55 }
  0xf2   :  { %v1301_v58 = vpop.eup %1300  ;;  %1046 = vst [vmem:[%s1753_s2 + $0x110] sm:$0xff] %v1299_v57  ;;  %1326 = vtanh.f32 %v645_v56  ;;  %v1186_v59 = vpop.f32.mrf.mxu0 }
  0xf3   :  { %v1218_v60 = vpop.f32.mrf.mxu1  ;;  %v1303_v61 = vpop.eup %1302  ;;  %1012 = vst [vmem:[%s1753_s2] sm:$0xff] %v1301_v58  ;;  %1328 = vtanh.f32 %v1186_v59 }
  0xf4   :  { %v1305_v62 = vpop.eup %1304  ;;  %1044 = vst [vmem:[%s1753_s2 + $0x100] sm:$0xff] %v1303_v61  ;;  %1330 = vtanh.f32 %v1218_v60  ;;  %v530_v63 = vpop.f32.mrf.mxu0 }
  0xf5   :  { %v658_v0 = vpop.f32.mrf.mxu1  ;;  %v1307_v1 = vpop.eup %1306  ;;  %1015 = vst [vmem:[%s1753_s2 + $0x18] sm:$0xff] %v1305_v62  ;;  %1332 = vtanh.f32 %v530_v63 }
  0xf6   :  { %v1309_v2 = vpop.eup %1308  ;;  %1047 = vst [vmem:[%s1753_s2 + $0x118] sm:$0xff] %v1307_v1  ;;  %1334 = vtanh.f32 %v658_v0  ;;  %v1187_v3 = vpop.f32.mrf.mxu0 }
  0xf7   :  { %v1219_v4 = vpop.f32.mrf.mxu1  ;;  %v1311_v5 = vpop.eup %1310  ;;  %1013 = vst [vmem:[%s1753_s2 + $0x8] sm:$0xff] %v1309_v2  ;;  %1336 = vtanh.f32 %v1187_v3 }
  0xf8   :  { %v1313_v6 = vpop.eup %1312  ;;  %1045 = vst [vmem:[%s1753_s2 + $0x108] sm:$0xff] %v1311_v5  ;;  %1338 = vtanh.f32 %v1219_v4  ;;  %v533_v7 = vpop.f32.mrf.mxu0 }
  0xf9   :  { %v661_v8 = vpop.f32.mrf.mxu1  ;;  %v1315_v9 = vpop.eup %1314  ;;  %1018 = vst [vmem:[%s1753_s2 + $0x30] sm:$0xff] %v1313_v6  ;;  %1340 = vtanh.f32 %v533_v7 }
  0xfa   :  { %v1317_v10 = vpop.eup %1316  ;;  %1050 = vst [vmem:[%s1753_s2 + $0x130] sm:$0xff] %v1315_v9  ;;  %1342 = vtanh.f32 %v661_v8  ;;  %v1190_v11 = vpop.f32.mrf.mxu0 }
  0xfb   :  { %v1222_v12 = vpop.f32.mrf.mxu1  ;;  %v1319_v13 = vpop.eup %1318  ;;  %1016 = vst [vmem:[%s1753_s2 + $0x20] sm:$0xff] %v1317_v10  ;;  %1344 = vtanh.f32 %v1190_v11 }
  0xfc   :  { %v1321_v14 = vpop.eup %1320  ;;  %1048 = vst [vmem:[%s1753_s2 + $0x120] sm:$0xff] %v1319_v13  ;;  %1346 = vtanh.f32 %v1222_v12  ;;  %v546_v15 = vpop.f32.mrf.mxu0 }
  0xfd   :  { %v674_v16 = vpop.f32.mrf.mxu1  ;;  %v1323_v17 = vpop.eup %1322  ;;  %1019 = vst [vmem:[%s1753_s2 + $0x38] sm:$0xff] %v1321_v14  ;;  %1348 = vtanh.f32 %v546_v15 }
  0xfe   :  { %v1325_v18 = vpop.eup %1324  ;;  %1051 = vst [vmem:[%s1753_s2 + $0x138] sm:$0xff] %v1323_v17  ;;  %1350 = vtanh.f32 %v674_v16  ;;  %v1191_v19 = vpop.f32.mrf.mxu0 }
  0xff   :  { %v1223_v20 = vpop.f32.mrf.mxu1  ;;  %v1327_v21 = vpop.eup %1326  ;;  %1017 = vst [vmem:[%s1753_s2 + $0x28] sm:$0xff] %v1325_v18  ;;  %1352 = vtanh.f32 %v1191_v19 }
 0x100   :  { %v1329_v22 = vpop.eup %1328  ;;  %1049 = vst [vmem:[%s1753_s2 + $0x128] sm:$0xff] %v1327_v21  ;;  %1354 = vtanh.f32 %v1223_v20  ;;  %v549_v23 = vpop.f32.mrf.mxu0 }
 0x101   :  { %v677_v24 = vpop.f32.mrf.mxu1  ;;  %v1331_v25 = vpop.eup %1330  ;;  %1022 = vst [vmem:[%s1753_s2 + $0x50] sm:$0xff] %v1329_v22  ;;  %1356 = vtanh.f32 %v549_v23 }
 0x102   :  { %v1333_v26 = vpop.eup %1332  ;;  %1054 = vst [vmem:[%s1753_s2 + $0x150] sm:$0xff] %v1331_v25  ;;  %1358 = vtanh.f32 %v677_v24  ;;  %v1194_v27 = vpop.f32.mrf.mxu0 }
 0x103   :  { %v1226_v28 = vpop.f32.mrf.mxu1  ;;  %v1335_v29 = vpop.eup %1334  ;;  %1020 = vst [vmem:[%s1753_s2 + $0x40] sm:$0xff] %v1333_v26  ;;  %1360 = vtanh.f32 %v1194_v27 }
 0x104   :  { %v1337_v30 = vpop.eup %1336  ;;  %1052 = vst [vmem:[%s1753_s2 + $0x140] sm:$0xff] %v1335_v29  ;;  %1362 = vtanh.f32 %v1226_v28  ;;  %v562_v31 = vpop.f32.mrf.mxu0 }
 0x105   :  { %v690_v32 = vpop.f32.mrf.mxu1  ;;  %v1339_v33 = vpop.eup %1338  ;;  %1023 = vst [vmem:[%s1753_s2 + $0x58] sm:$0xff] %v1337_v30  ;;  %1364 = vtanh.f32 %v562_v31 }
 0x106   :  { %v1341_v34 = vpop.eup %1340  ;;  %1055 = vst [vmem:[%s1753_s2 + $0x158] sm:$0xff] %v1339_v33  ;;  %1366 = vtanh.f32 %v690_v32  ;;  %v1195_v35 = vpop.f32.mrf.mxu0 }
 0x107   :  { %v1227_v36 = vpop.f32.mrf.mxu1  ;;  %v1343_v37 = vpop.eup %1342  ;;  %1021 = vst [vmem:[%s1753_s2 + $0x48] sm:$0xff] %v1341_v34  ;;  %1368 = vtanh.f32 %v1195_v35 }
 0x108   :  { %v1345_v38 = vpop.eup %1344  ;;  %1053 = vst [vmem:[%s1753_s2 + $0x148] sm:$0xff] %v1343_v37  ;;  %1370 = vtanh.f32 %v1227_v36  ;;  %v565_v39 = vpop.f32.mrf.mxu0 }
 0x109   :  { %v693_v40 = vpop.f32.mrf.mxu1  ;;  %v1347_v41 = vpop.eup %1346  ;;  %1026 = vst [vmem:[%s1753_s2 + $0x70] sm:$0xff] %v1345_v38  ;;  %1372 = vtanh.f32 %v565_v39 }
 0x10a   :  { %v1349_v42 = vpop.eup %1348  ;;  %1058 = vst [vmem:[%s1753_s2 + $0x170] sm:$0xff] %v1347_v41  ;;  %1374 = vtanh.f32 %v693_v40  ;;  %v1198_v43 = vpop.f32.mrf.mxu0 }
 0x10b   :  { %v1230_v44 = vpop.f32.mrf.mxu1  ;;  %v1351_v45 = vpop.eup %1350  ;;  %1024 = vst [vmem:[%s1753_s2 + $0x60] sm:$0xff] %v1349_v42  ;;  %1376 = vtanh.f32 %v1198_v43 }
 0x10c   :  { %v1353_v46 = vpop.eup %1352  ;;  %1056 = vst [vmem:[%s1753_s2 + $0x160] sm:$0xff] %v1351_v45  ;;  %1378 = vtanh.f32 %v1230_v44  ;;  %v578_v47 = vpop.f32.mrf.mxu0 }
 0x10d   :  { %v706_v48 = vpop.f32.mrf.mxu1  ;;  %v1355_v49 = vpop.eup %1354  ;;  %1027 = vst [vmem:[%s1753_s2 + $0x78] sm:$0xff] %v1353_v46  ;;  %1380 = vtanh.f32 %v578_v47 }
 0x10e   :  { %v1357_v50 = vpop.eup %1356  ;;  %1059 = vst [vmem:[%s1753_s2 + $0x178] sm:$0xff] %v1355_v49  ;;  %1382 = vtanh.f32 %v706_v48  ;;  %v1199_v51 = vpop.f32.mrf.mxu0 }
 0x10f   :  { %v1231_v52 = vpop.f32.mrf.mxu1  ;;  %v1359_v53 = vpop.eup %1358  ;;  %1025 = vst [vmem:[%s1753_s2 + $0x68] sm:$0xff] %v1357_v50  ;;  %1384 = vtanh.f32 %v1199_v51 }
 0x110   :  { %v1361_v54 = vpop.eup %1360  ;;  %1057 = vst [vmem:[%s1753_s2 + $0x168] sm:$0xff] %v1359_v53  ;;  %1386 = vtanh.f32 %v1231_v52  ;;  %v581_v55 = vpop.f32.mrf.mxu0 }
 0x111   :  { %v709_v56 = vpop.f32.mrf.mxu1  ;;  %v1363_v57 = vpop.eup %1362  ;;  %1030 = vst [vmem:[%s1753_s2 + $0x90] sm:$0xff] %v1361_v54  ;;  %1388 = vtanh.f32 %v581_v55 }
 0x112   :  { %v1365_v58 = vpop.eup %1364  ;;  %1062 = vst [vmem:[%s1753_s2 + $0x190] sm:$0xff] %v1363_v57  ;;  %1390 = vtanh.f32 %v709_v56  ;;  %v1202_v59 = vpop.f32.mrf.mxu0 }
 0x113   :  { %v1234_v60 = vpop.f32.mrf.mxu1  ;;  %v1367_v61 = vpop.eup %1366  ;;  %1028 = vst [vmem:[%s1753_s2 + $0x80] sm:$0xff] %v1365_v58  ;;  %1392 = vtanh.f32 %v1202_v59 }
 0x114   :  { %v1369_v62 = vpop.eup %1368  ;;  %1060 = vst [vmem:[%s1753_s2 + $0x180] sm:$0xff] %v1367_v61  ;;  %1394 = vtanh.f32 %v1234_v60  ;;  %v594_v63 = vpop.f32.mrf.mxu0 }
 0x115   :  { %v722_v0 = vpop.f32.mrf.mxu1  ;;  %v1371_v1 = vpop.eup %1370  ;;  %1031 = vst [vmem:[%s1753_s2 + $0x98] sm:$0xff] %v1369_v62  ;;  %1396 = vtanh.f32 %v594_v63 }
 0x116   :  { %v1373_v2 = vpop.eup %1372  ;;  %1063 = vst [vmem:[%s1753_s2 + $0x198] sm:$0xff] %v1371_v1  ;;  %1398 = vtanh.f32 %v722_v0  ;;  %v1203_v3 = vpop.f32.mrf.mxu0 }
 0x117   :  { %v1235_v4 = vpop.f32.mrf.mxu1  ;;  %v1375_v5 = vpop.eup %1374  ;;  %1029 = vst [vmem:[%s1753_s2 + $0x88] sm:$0xff] %v1373_v2  ;;  %1400 = vtanh.f32 %v1203_v3 }
 0x118   :  { %v1377_v6 = vpop.eup %1376  ;;  %1061 = vst [vmem:[%s1753_s2 + $0x188] sm:$0xff] %v1375_v5  ;;  %1402 = vtanh.f32 %v1235_v4  ;;  %v597_v7 = vpop.f32.mrf.mxu0 }
 0x119   :  { %v725_v8 = vpop.f32.mrf.mxu1  ;;  %v1379_v9 = vpop.eup %1378  ;;  %1034 = vst [vmem:[%s1753_s2 + $0xb0] sm:$0xff] %v1377_v6  ;;  %1404 = vtanh.f32 %v597_v7 }
 0x11a   :  { %v1381_v10 = vpop.eup %1380  ;;  %1066 = vst [vmem:[%s1753_s2 + $0x1b0] sm:$0xff] %v1379_v9  ;;  %1406 = vtanh.f32 %v725_v8  ;;  %v1206_v11 = vpop.f32.mrf.mxu0 }
 0x11b   :  { %v1238_v12 = vpop.f32.mrf.mxu1  ;;  %v1383_v13 = vpop.eup %1382  ;;  %1032 = vst [vmem:[%s1753_s2 + $0xa0] sm:$0xff] %v1381_v10  ;;  %1408 = vtanh.f32 %v1206_v11 }
 0x11c   :  { %v1385_v14 = vpop.eup %1384  ;;  %1064 = vst [vmem:[%s1753_s2 + $0x1a0] sm:$0xff] %v1383_v13  ;;  %1410 = vtanh.f32 %v1238_v12  ;;  %v610_v15 = vpop.f32.mrf.mxu0 }
 0x11d   :  { %v738_v16 = vpop.f32.mrf.mxu1  ;;  %v1387_v17 = vpop.eup %1386  ;;  %1035 = vst [vmem:[%s1753_s2 + $0xb8] sm:$0xff] %v1385_v14  ;;  %1412 = vtanh.f32 %v610_v15 }
 0x11e   :  { %v1389_v18 = vpop.eup %1388  ;;  %1067 = vst [vmem:[%s1753_s2 + $0x1b8] sm:$0xff] %v1387_v17  ;;  %1414 = vtanh.f32 %v738_v16  ;;  %v1207_v19 = vpop.f32.mrf.mxu0 }
 0x11f   :  { %v1239_v20 = vpop.f32.mrf.mxu1  ;;  %v1391_v21 = vpop.eup %1390  ;;  %1033 = vst [vmem:[%s1753_s2 + $0xa8] sm:$0xff] %v1389_v18  ;;  %1416 = vtanh.f32 %v1207_v19 }
 0x120   :  { %v1393_v22 = vpop.eup %1392  ;;  %1065 = vst [vmem:[%s1753_s2 + $0x1a8] sm:$0xff] %v1391_v21  ;;  %1418 = vtanh.f32 %v1239_v20  ;;  %v613_v23 = vpop.f32.mrf.mxu0 }
 0x121   :  { %v741_v24 = vpop.f32.mrf.mxu1  ;;  %v1395_v25 = vpop.eup %1394  ;;  %1038 = vst [vmem:[%s1753_s2 + $0xd0] sm:$0xff] %v1393_v22  ;;  %1420 = vtanh.f32 %v613_v23 }
 0x122   :  { %v1397_v26 = vpop.eup %1396  ;;  %1070 = vst [vmem:[%s1753_s2 + $0x1d0] sm:$0xff] %v1395_v25  ;;  %1422 = vtanh.f32 %v741_v24 }
 0x123   :  { %v1399_v27 = vpop.eup %1398  ;;  %1036 = vst [vmem:[%s1753_s2 + $0xc0] sm:$0xff] %v1397_v26 }
 0x124   :  { %v1401_v28 = vpop.eup %1400  ;;  %1068 = vst [vmem:[%s1753_s2 + $0x1c0] sm:$0xff] %v1399_v27 }
 0x125   :  { %v1403_v29 = vpop.eup %1402  ;;  %1039 = vst [vmem:[%s1753_s2 + $0xd8] sm:$0xff] %v1401_v28 }
 0x126   :  { %v1405_v30 = vpop.eup %1404  ;;  %1071 = vst [vmem:[%s1753_s2 + $0x1d8] sm:$0xff] %v1403_v29 }
 0x127   :  { %v1407_v31 = vpop.eup %1406  ;;  %1037 = vst [vmem:[%s1753_s2 + $0xc8] sm:$0xff] %v1405_v30 }
 0x128   :  { %v1409_v32 = vpop.eup %1408  ;;  %1069 = vst [vmem:[%s1753_s2 + $0x1c8] sm:$0xff] %v1407_v31 }
 0x129   :  { %v1411_v33 = vpop.eup %1410  ;;  %1042 = vst [vmem:[%s1753_s2 + $0xf0] sm:$0xff] %v1409_v32 }
 0x12a   :  { %v1413_v34 = vpop.eup %1412  ;;  %1074 = vst [vmem:[%s1753_s2 + $0x1f0] sm:$0xff] %v1411_v33 }
 0x12b   :  { %v1415_v35 = vpop.eup %1414  ;;  %1040 = vst [vmem:[%s1753_s2 + $0xe0] sm:$0xff] %v1413_v34 }
 0x12c   :  { %v1417_v36 = vpop.eup %1416  ;;  %1072 = vst [vmem:[%s1753_s2 + $0x1e0] sm:$0xff] %v1415_v35 }
 0x12d   :  { %v1419_v37 = vpop.eup %1418  ;;  %1043 = vst [vmem:[%s1753_s2 + $0xf8] sm:$0xff] %v1417_v36 }
 0x12e   :  { %v1421_v38 = vpop.eup %1420  ;;  %1075 = vst [vmem:[%s1753_s2 + $0x1f8] sm:$0xff] %v1419_v37 }
 0x12f   :  { %v1423_v39 = vpop.eup %1422  ;;  %1041 = vst [vmem:[%s1753_s2 + $0xe8] sm:$0xff] %v1421_v38 }
 0x130   :  { %1073 = vst [vmem:[%s1753_s2 + $0x1e8] sm:$0xff] %v1423_v39 }

</bundles_post_ra>
